<compile_context>
chip_gen: v7x
topology: tpu7x:2x2x1
jax: 0.10.0
libtpu: 0.0.40
codegen_flags: <defaults>
</compile_context>

<pallas_src>
import jax
import jax.numpy as jnp
from jax.experimental import pallas as pl
from jax.experimental.pallas import tpu as pltpu

IN_DIM = 1000           # Linear input features (fixed by the module)
HID_DIM = 1000          # start() output features
ROOT_DIM = 168
VOWEL_DIM = 11
CONS_DIM = 7
HEAD_DIM = ROOT_DIM + VOWEL_DIM + CONS_DIM      # 186

HID_PAD = 1024          # hidden padded to a lane multiple (MXU-friendly N / K)
HEAD_PAD = 256          # fused-head output padded to a lane multiple


def _choose_tb(batch):
    """Batch tile: multiple of 128 (bf16 sublane packing, clean MXU cadence).

    Prefer large tiles to amortize the ~0.35 us per-grid-step overhead, but
    keep >= 2 grid steps once batch > 128 so the "parallel" batch axis can
    shard across v7x's two TensorCores, and pick the candidate wasting the
    fewest padded rows (cdiv tail)."""
    if batch <= 128:
        return 128
    best_tb, best_key = 128, None
    for tb in (512, 384, 256, 128):
        n_steps = (batch + tb - 1) // tb
        if n_steps < 2:
            continue                      # one giant tile would idle a v7x TC
        pad = n_steps * tb - batch
        key = (pad, n_steps)              # minimize wasted rows, then step count
        if best_key is None or key < best_key:
            best_tb, best_key = tb, key
    return best_tb


def appendnet_kernel(x_ref, w1_ref, b1_ref, wh_ref, bh_ref, out_ref):
    # Trunk: f32 x-tile cast to bf16 (VPU, hidden under MXU), then
    # [TB, 1000] @ [1000, 1024] on the MXU with f32 accumulation.
    h = jnp.dot(x_ref[...].astype(jnp.bfloat16), w1_ref[...],
                preferred_element_type=jnp.float32)
    # Bias + ReLU in f32 (v5e VPU has no bf16 path).
    h = jnp.maximum(h + b1_ref[...], 0.0)
    # Fused heads: one lane-dense [TB, 1024] @ [1024, 256] matmul + one bias.
    out = jnp.dot(h.astype(jnp.bfloat16), wh_ref[...],
                  preferred_element_type=jnp.float32) + bh_ref[...]
    out_ref[...] = out.astype(out_ref.dtype)


def prepare_params(raw_params):
    """Fuse the three heads, zero-pad to lane-aligned shapes, cast to bf16.

    raw_params: (w1[1000,1000], b1[1,1000], wr[1000,168], br[1,168],
                 wv[1000,11],  bv[1,11],   wc[1000,7],   bc[1,7]), all f32,
    weights stored [in, out] (y = x @ W + b == PyTorch x @ W.T + b).
    """
    w1, b1, wr, br, wv, bv, wc, bc = raw_params

    # Trunk: keep K = 1000 (x is read unpadded); pad hidden N 1000 -> 1024.
    w1_p = jnp.zeros((IN_DIM, HID_PAD), jnp.float32).at[:, :HID_DIM].set(w1)
    b1_p = jnp.zeros((1, HID_PAD), jnp.float32).at[:, :HID_DIM].set(b1)

    # Heads: concat to [1000, 186], pad to [1024, 256] (zero rows/cols inert).
    wh = jnp.concatenate([wr, wv, wc], axis=1)
    bh = jnp.concatenate([br, bv, bc], axis=1)
    wh_p = jnp.zeros((HID_PAD, HEAD_PAD), jnp.float32).at[:HID_DIM, :HEAD_DIM].set(wh)
    bh_p = jnp.zeros((1, HEAD_PAD), jnp.float32).at[:, :HEAD_DIM].set(bh)

    # Weights bf16 (halves weight HBM traffic); biases stay f32 (post-matmul add).
    return (w1_p.astype(jnp.bfloat16), b1_p,
            wh_p.astype(jnp.bfloat16), bh_p)


@jax.jit
def appendnet_forward(x, prepared_params):
    """x: [B, 1000] f32.  Returns (root [B,168], vowel [B,11], cons [B,7]) f32."""
    B = x.shape[0]
    w1, b1, wh, bh = prepared_params

    TB = _choose_tb(B)
    grid = (pl.cdiv(B, TB),)   # cdiv grid: tail tile clamped, no batch padding

    out = pl.pallas_call(
        appendnet_kernel,
        out_shape=jax.ShapeDtypeStruct((B, HEAD_PAD), jnp.float32),
        grid=grid,
        in_specs=[
            # x tile per step, read as f32 directly from HBM (no wrapper
            # pad/cast); last block dim == full array dim (1000) so it's legal.
            pl.BlockSpec((TB, IN_DIM), lambda i: (i, 0)),
            # Resident weights / biases: constant index maps -> DMA'd once.
            pl.BlockSpec((IN_DIM, HID_PAD), lambda i: (0, 0)),
            pl.BlockSpec((1, HID_PAD), lambda i: (0, 0)),
            pl.BlockSpec((HID_PAD, HEAD_PAD), lambda i: (0, 0)),
            pl.BlockSpec((1, HEAD_PAD), lambda i: (0, 0)),
        ],
        out_specs=pl.BlockSpec((TB, HEAD_PAD), lambda i: (i, 0)),
        compiler_params=pltpu.CompilerParams(
            # Batch tiles are independent -> shard across v7x's 2 TCs.
            dimension_semantics=("parallel",),
            # TB=512 working set (x/out double buffers + resident weights + h)
            # is ~14 MiB; 32 MiB leaves headroom on v5e/v6e/v7x alike.
            vmem_limit_bytes=32 << 20,
        ),
    )(x, w1, b1, wh, bh)

    root = out[:, :ROOT_DIM]
    vowel = out[:, ROOT_DIM:ROOT_DIM + VOWEL_DIM]
    cons = out[:, ROOT_DIM + VOWEL_DIM:HEAD_DIM]
    return root, vowel, cons


def init_params(key):
    """Deterministic synthetic params. Weights stored [in, out]; biases [1, out]."""
    ks = jax.random.split(key, 8)

    def lin(kw, kb, fan_in, fan_out):
        bound = 1.0 / jnp.sqrt(fan_in)
        w = jax.random.uniform(kw, (fan_in, fan_out), jnp.float32, -bound, bound)
        b = jax.random.uniform(kb, (1, fan_out), jnp.float32, -bound, bound)
        return w, b

    w1, b1 = lin(ks[0], ks[1], IN_DIM, HID_DIM)
    wr, br = lin(ks[2], ks[3], HID_DIM, ROOT_DIM)
    wv, bv = lin(ks[4], ks[5], HID_DIM, VOWEL_DIM)
    wc, bc = lin(ks[6], ks[7], HID_DIM, CONS_DIM)
    return (w1, b1, wr, br, wv, bv, wc, bc)


def reference_forward(x, raw_params):
    """Pure-JAX f32 reference matching the PyTorch forward."""
    w1, b1, wr, br, wv, bv, wc, bc = raw_params
    h = jnp.maximum(x @ w1 + b1, 0.0)
    return (h @ wr + br, h @ wv + bv, h @ wc + bc)


if __name__ == "__main__":
    key = jax.random.PRNGKey(0)
    kx, kp = jax.random.split(key)

    B = 8
    x = jax.random.normal(kx, (B, IN_DIM), dtype=jnp.float32)
    raw_params = init_params(kp)
    params = prepare_params(raw_params)      # one-time fuse / pad / bf16 cast

    root, vowel, cons = appendnet_forward(x, params)
    jax.block_until_ready((root, vowel, cons))

    # Correctness vs. a pure-JAX f32 reference (tolerance covers the bf16
    # MXU-input cast; accumulation stays f32).
    r_ref, v_ref, c_ref = reference_forward(x, raw_params)
    assert root.shape == (B, ROOT_DIM)
    assert vowel.shape == (B, VOWEL_DIM)
    assert cons.shape == (B, CONS_DIM)
    assert jnp.allclose(root, r_ref, atol=5e-2, rtol=5e-2)
    assert jnp.allclose(vowel, v_ref, atol=5e-2, rtol=5e-2)
    assert jnp.allclose(cons, c_ref, atol=5e-2, rtol=5e-2)

    print("KERNEL_OK")
</pallas_src>

<mosaic_0001>
module attributes {stable_mosaic.version = 11 : i64} {
  func.func @appendnet_kernel(%arg0: i32, %arg1: memref<128x1000xf32, #tpu.memory_space<vmem>>, %arg2: memref<1000x1024xbf16, #tpu.memory_space<vmem>>, %arg3: memref<1x1024xf32, #tpu.memory_space<vmem>>, %arg4: memref<1024x256xbf16, #tpu.memory_space<vmem>>, %arg5: memref<1x256xf32, #tpu.memory_space<vmem>>, %arg6: memref<128x256xf32, #tpu.memory_space<vmem>>) attributes {dimension_semantics = [#tpu.dimension_semantics<parallel>], iteration_bounds = array<i64: 1>, scalar_prefetch = 0 : i64, scratch_operands = 0 : i64, tpu.core_type = #tpu.core_type<tc>, window_params = [{transform_indices = @transform_0, window_bounds = array<i64: 128, 1000>}, {pipeline_mode = #tpu.pipeline_mode<synchronous>, transform_indices = @transform_1, window_bounds = array<i64: 1000, 1024>}, {pipeline_mode = #tpu.pipeline_mode<synchronous>, transform_indices = @transform_2, window_bounds = array<i64: 1, 1024>}, {pipeline_mode = #tpu.pipeline_mode<synchronous>, transform_indices = @transform_3, window_bounds = array<i64: 1024, 256>}, {pipeline_mode = #tpu.pipeline_mode<synchronous>, transform_indices = @transform_4, window_bounds = array<i64: 1, 256>}, {transform_indices = @transform_5, window_bounds = array<i64: 128, 256>}]} {
    %c0 = arith.constant 0 : index
    %c0_0 = arith.constant 0 : index
    %0 = vector.load %arg1[%c0, %c0_0] : memref<128x1000xf32, #tpu.memory_space<vmem>>, vector<128x1000xf32>
    %1 = arith.truncf %0 : vector<128x1000xf32> to vector<128x1000xbf16>
    %c0_1 = arith.constant 0 : index
    %c0_2 = arith.constant 0 : index
    %2 = vector.load %arg2[%c0_1, %c0_2] : memref<1000x1024xbf16, #tpu.memory_space<vmem>>, vector<1000x1024xbf16>
    %cst = arith.constant dense<0.000000e+00> : vector<128x1024xf32>
    %3 = tpu.matmul %1, %2, %cst {dimension_numbers = #tpu.dot_dimension_numbers<[1], [0], [0], [1], [0, 0, 1, 1], [], []>} : vector<128x1000xbf16>, vector<1000x1024xbf16>, vector<128x1024xf32> -> vector<128x1024xf32>
    %c0_3 = arith.constant 0 : index
    %c0_4 = arith.constant 0 : index
    %4 = vector.load %arg3[%c0_3, %c0_4] : memref<1x1024xf32, #tpu.memory_space<vmem>>, vector<1x1024xf32>
    %5 = vector.broadcast %4 : vector<1x1024xf32> to vector<128x1024xf32>
    %6 = arith.addf %3, %5 : vector<128x1024xf32>
    %cst_5 = arith.constant 0.000000e+00 : f32
    %7 = vector.broadcast %cst_5 : f32 to vector<128x1024xf32>
    %8 = arith.maximumf %6, %7 : vector<128x1024xf32>
    %9 = arith.truncf %8 : vector<128x1024xf32> to vector<128x1024xbf16>
    %c0_6 = arith.constant 0 : index
    %c0_7 = arith.constant 0 : index
    %10 = vector.load %arg4[%c0_6, %c0_7] : memref<1024x256xbf16, #tpu.memory_space<vmem>>, vector<1024x256xbf16>
    %cst_8 = arith.constant dense<0.000000e+00> : vector<128x256xf32>
    %11 = tpu.matmul %9, %10, %cst_8 {dimension_numbers = #tpu.dot_dimension_numbers<[1], [0], [0], [1], [0, 0, 1, 1], [], []>} : vector<128x1024xbf16>, vector<1024x256xbf16>, vector<128x256xf32> -> vector<128x256xf32>
    %c0_9 = arith.constant 0 : index
    %c0_10 = arith.constant 0 : index
    %12 = vector.load %arg5[%c0_9, %c0_10] : memref<1x256xf32, #tpu.memory_space<vmem>>, vector<1x256xf32>
    %13 = vector.broadcast %12 : vector<1x256xf32> to vector<128x256xf32>
    %14 = arith.addf %11, %13 : vector<128x256xf32>
    %c0_11 = arith.constant 0 : index
    %c0_12 = arith.constant 0 : index
    %15 = vector.load %arg6[%c0_11, %c0_12] : memref<128x256xf32, #tpu.memory_space<vmem>>, vector<128x256xf32>
    tpu.vector_store %arg6[%c0_11, %c0_12], %14 {strides = array<i32>} : memref<128x256xf32, #tpu.memory_space<vmem>>, vector<128x256xf32>,
    return
  }
  func.func @transform_0(%arg0: i32) -> (i32, i32) {
    %c0_i32 = arith.constant 0 : i32
    %c0_i32_0 = arith.constant 0 : i32
    return %arg0, %c0_i32 : i32, i32
  }
  func.func @transform_1(%arg0: i32) -> (i32, i32) {
    %c0_i32 = arith.constant 0 : i32
    %c0_i32_0 = arith.constant 0 : i32
    %c0_i32_1 = arith.constant 0 : i32
    return %c0_i32, %c0_i32_0 : i32, i32
  }
  func.func @transform_2(%arg0: i32) -> (i32, i32) {
    %c0_i32 = arith.constant 0 : i32
    %c0_i32_0 = arith.constant 0 : i32
    %c0_i32_1 = arith.constant 0 : i32
    return %c0_i32, %c0_i32_0 : i32, i32
  }
  func.func @transform_3(%arg0: i32) -> (i32, i32) {
    %c0_i32 = arith.constant 0 : i32
    %c0_i32_0 = arith.constant 0 : i32
    %c0_i32_1 = arith.constant 0 : i32
    return %c0_i32, %c0_i32_0 : i32, i32
  }
  func.func @transform_4(%arg0: i32) -> (i32, i32) {
    %c0_i32 = arith.constant 0 : i32
    %c0_i32_0 = arith.constant 0 : i32
    %c0_i32_1 = arith.constant 0 : i32
    return %c0_i32, %c0_i32_0 : i32, i32
  }
  func.func @transform_5(%arg0: i32) -> (i32, i32) {
    %c0_i32 = arith.constant 0 : i32
    %c0_i32_0 = arith.constant 0 : i32
    return %arg0, %c0_i32 : i32, i32
  }
}

</mosaic_0001>

<bundles_post_ra>
// kernel: appendnet_forward.1
= control target key start
LH: loop header
LB: loop body
LE: loop exit
PB: predicated region body
PF: predicated region fallthrough
CT: control target
= control target key end

     0   :  { %10 = vsyncpa [#allocation3], 0  ;;  %s9022_s0 = inlined_call_operand.hbm [shape: f32[8,1000], index: 0, kind: input, shape index: {}]   ;;  %s9023_s1 = inlined_call_operand.hbm [shape: bf16[1000,1024], index: 1, kind: input, shape index: {}]   ;;  %s9024_s2 = inlined_call_operand.hbm [shape: f32[1,1024], index: 2, kind: input, shape index: {}]   ;;  %s9025_s3 = inlined_call_operand.hbm [shape: bf16[1024,256], index: 3, kind: input, shape index: {}]   ;;  %s9026_s4 = inlined_call_operand.hbm [shape: f32[1,256], index: 4, kind: input, shape index: {}]   ;;  %s9027_s5 = inlined_call_operand.vmem [shape: f32[8,256], index: 5, kind: output, shape index: {}]  }
   0x1   :  { %11 = vsyncpa [#allocation5], 0 }
   0x2   :  { %12 = vsyncpa [#allocation8], 0 }
   0x3   :  { %17 = vsyncadd [#allocation3], 15360  ;;  %s8186_s18 = smov [#allocation4]   ;;  %s8070_s22 = scalar_lea.hbm %s9023_s1, 64000 }
   0x4   :  { %s30_s19 = sshll.u32 %s8186_s18, 4  ;;  %p8071_p0 = scmp.ne.s32.totalorder %s9023_s1, %s8070_s22  ;;  %s31_s19 = int_to_ptr.vmem [resolvable:$true] %s30_s19 }
   0x5   :  { %p8074_p1 = scmp.lt.u32.totalorder %s8070_s22, %s9023_s1 }
   0x7   :  { %p8076_p2 = pnand %p8074_p1, %p8071_p0 }
   0x9   :  { %8079 = shalt.err (!%p8076_p2)
}
   0xa   :  { %s8080_s27 = scalar_lea.vmem %s31_s19, 64000  ;;  %p8085_p4 = scmp.lt.s32.totalorder %s31_s19, %s31_s19 }
   0xb   :  { %p8081_p3 = scmp.ne.s32.totalorder %s31_s19, %s8080_s27  ;;  %p8086_p5 = scmp.lt.s32.totalorder %s8080_s27, %s8080_s27 }
   0xd   :  { %p8087_p6 = por %p8086_p5, %p8085_p4 }
   0xf   :  { %p8088_p7 = pnand %p8087_p6, %p8081_p3 }
  0x11   :  { %8091 = shalt.err (!%p8088_p7)
}
  0x12   :  { %s8187_s28 = smov 512   ;;  %s8188_s29 = smov 32  }
  0x13   :  { %36 = dma.hbm_to_vmem [thread:$0]  %s9023_s1, 64000, %s31_s19, [#allocation5], %s8187_s28, %s8187_s28, %s8188_s29  }
  0x14   :  { %s8189_s7 = smov [#allocation7]   ;;  %s8092_s11 = scalar_lea.hbm %s9025_s3, 16384 }
  0x15   :  { %s52_s8 = sshll.u32 %s8189_s7, 4  ;;  %p8093_p8 = scmp.ne.s32.totalorder %s9025_s3, %s8092_s11  ;;  %s53_s8 = int_to_ptr.vmem [resolvable:$true] %s52_s8 }
  0x16   :  { %p8096_p9 = scmp.lt.u32.totalorder %s8092_s11, %s9025_s3 }
  0x18   :  { %p8098_p10 = pnand %p8096_p9, %p8093_p8 }
  0x1a   :  { %8101 = shalt.err (!%p8098_p10)
}
  0x1b   :  { %s8102_s16 = scalar_lea.vmem %s53_s8, 16384  ;;  %p8107_p12 = scmp.lt.s32.totalorder %s53_s8, %s53_s8 }
  0x1c   :  { %p8103_p11 = scmp.ne.s32.totalorder %s53_s8, %s8102_s16  ;;  %p8108_p13 = scmp.lt.s32.totalorder %s8102_s16, %s8102_s16 }
  0x1e   :  { %p8109_p0 = por %p8108_p13, %p8107_p12 }
  0x20   :  { %p8110_p1 = pnand %p8109_p0, %p8103_p11 }
  0x22   :  { %8113 = shalt.err (!%p8110_p1)
}
  0x23   :  { %s8190_s1 = smov 128   ;;  %s8191_s17 = smov 8  }
  0x24   :  { %58 = dma.hbm_to_vmem [thread:$0]  %s9025_s3, 16384, %s53_s8, [#allocation8], %s8190_s1, %s8190_s1, %s8191_s17  }
  0x25   :  { %s8192_s20 = smov [#allocation2]   ;;  %s8114_s24 = scalar_lea.hbm %s9022_s0, 1024 }
  0x26   :  { %s18_s21 = sshll.u32 %s8192_s20, 4  ;;  %p8115_p2 = scmp.ne.s32.totalorder %s9022_s0, %s8114_s24  ;;  %s19_s21 = int_to_ptr.vmem [resolvable:$true] %s18_s21 }
  0x27   :  { %p8118_p3 = scmp.lt.u32.totalorder %s8114_s24, %s9022_s0 }
  0x29   :  { %p8120_p4 = pnand %p8118_p3, %p8115_p2 }
  0x2b   :  { %8123 = shalt.err (!%p8120_p4)
}
  0x2c   :  { %s8124_s29 = scalar_lea.vmem %s19_s21, 1024  ;;  %s8128_s3 = scalar_lea.vmem %s19_s21, 16384 }
  0x2d   :  { %p8125_p5 = scmp.ne.s32.totalorder %s19_s21, %s8124_s29  ;;  %p8129_p6 = scmp.lt.s32.totalorder %s19_s21, %s19_s21 }
  0x2e   :  { %p8130_p7 = scmp.lt.s32.totalorder %s8128_s3, %s8124_s29 }
  0x30   :  { %p8131_p8 = por %p8130_p7, %p8129_p6 }
  0x32   :  { %p8132_p9 = pnand %p8131_p8, %p8125_p5 }
  0x34   :  { %8135 = shalt.err (!%p8132_p9)
}
  0x35   :  { %s8193_s30 = smov 1024   ;;  %s8194_s6 = smov 64  }
  0x36   :  { %24 = dma.hbm_to_vmem [thread:$0]  %s9022_s0, 1024, %s19_s21, [#allocation3], %s8193_s30, %s8193_s30, %s8194_s6  }
  0x37   :  { %s8195_s9 = smov [#allocation6]   ;;  %s8196_s11 = smov [#allocation9]  }
  0x38   :  { %s43_s10 = sshll.u32 %s8195_s9, 4  ;;  %s65_s12 = sshll.u32 %s8196_s11, 4  ;;  %s44_s10 = int_to_ptr.vmem [resolvable:$true] %s43_s10  ;;  %s66_s12 = int_to_ptr.vmem [resolvable:$true] %s65_s12 }
  0x39   :  { %s8136_s15 = scalar_lea.hbm %s9024_s2, 128 }
  0x3a   :  { %p8137_p10 = scmp.ne.s32.totalorder %s9024_s2, %s8136_s15  ;;  %p8140_p11 = scmp.lt.u32.totalorder %s8136_s15, %s9024_s2 }
  0x3c   :  { %p8142_p12 = pnand %p8140_p11, %p8137_p10 }
  0x3e   :  { %8145 = shalt.err (!%p8142_p12)
}
  0x3f   :  { %s8146_s0 = scalar_lea.vmem %s44_s10, 128  ;;  %p8151_p0 = scmp.lt.s32.totalorder %s44_s10, %s44_s10 }
  0x40   :  { %p8147_p13 = scmp.ne.s32.totalorder %s44_s10, %s8146_s0  ;;  %p8152_p1 = scmp.lt.s32.totalorder %s8146_s0, %s8146_s0 }
  0x42   :  { %p8153_p2 = por %p8152_p1, %p8151_p0 }
  0x44   :  { %p8154_p3 = pnand %p8153_p2, %p8147_p13 }
  0x46   :  { %8157 = shalt.err (!%p8154_p3)
}
  0x47   :  { %46 = dma.hbm_to_vmem [thread:$0]  %s9024_s2, 128, %s44_s10, [#allocation5]  }
  0x48   :  { %s8158_s23 = scalar_lea.hbm %s9026_s4, 32 }
  0x49   :  { %p8159_p4 = scmp.ne.s32.totalorder %s9026_s4, %s8158_s23  ;;  %p8162_p5 = scmp.lt.u32.totalorder %s8158_s23, %s9026_s4 }
  0x4b   :  { %p8164_p6 = pnand %p8162_p5, %p8159_p4 }
  0x4d   :  { %8167 = shalt.err (!%p8164_p6)
}
  0x4e   :  { %s8168_s28 = scalar_lea.vmem %s66_s12, 32  ;;  %p8173_p8 = scmp.lt.s32.totalorder %s66_s12, %s66_s12 }
  0x4f   :  { %p8169_p7 = scmp.ne.s32.totalorder %s66_s12, %s8168_s28  ;;  %p8174_p9 = scmp.lt.s32.totalorder %s8168_s28, %s8168_s28 }
  0x51   :  { %p8175_p10 = por %p8174_p9, %p8173_p8 }
  0x53   :  { %p8176_p11 = pnand %p8175_p10, %p8169_p7 }
  0x55   :  { %8179 = shalt.err (!%p8176_p11)
}
  0x56   :  { %68 = dma.hbm_to_vmem [thread:$0]  %s9026_s4, 32, %s66_s12, [#allocation8]  }
  0x57   :  { %8180 = dma.done.wait [#allocation3], 16384  }
  0x58   :  { %8181 = vsyncadd [#allocation3], 4294950912 }
  0x59   :  { %8182 = dma.done.wait [#allocation5], 64128  }
  0x5a   :  { %8183 = vsyncadd [#allocation5], 4294903168 }
  0x5b   :  { %8184 = dma.done.wait [#allocation8], 16416  }
  0x5c   :  { %8185 = vsyncadd [#allocation8], 4294950880  ;;  %v277_v0 = vld [vmem:[#allocation4] sm:$0xff]  ;;  %v86_v54 = vld [vmem:[#allocation2 + $0x8] sm:$0xff]  ;;  %vm3344_vm0 = vcmask 1043456   ;;  %vm3319_vm1 = vcmask 850944  }
  0x5d   :  { %v281_v1 = vld [vmem:[#allocation4 + $0x20] sm:$0xff]  ;;  %v94_v55 = vld [vmem:[#allocation2 + $0x48] sm:$0xff] }
  0x5e   :  { %v533_v2 = vld [vmem:[#allocation4 + $0x800] sm:$0xff]  ;;  %v6664_v3 = vcombine.high %v277_v0, %v281_v1  ;;  %v6663_v5 = vcombine.low %v277_v0, %v281_v1  ;;  %v8287_v58 = vpack.c.bf16 %v94_v55, %v86_v54  ;;  %v90_v59 = vld [vmem:[#allocation2 + $0x28] sm:$0xff] }
  0x5f   :  { %v537_v4 = vld [vmem:[#allocation4 + $0x820] sm:$0xff]  ;;  %v98_v60 = vld [vmem:[#allocation2 + $0x68] sm:$0xff] }
  0x60   :  { %v285_v6 = vld [vmem:[#allocation4 + $0x40] sm:$0xff]  ;;  %v6920_v8 = vcombine.high %v533_v2, %v537_v4  ;;  %v6919_v9 = vcombine.low %v533_v2, %v537_v4  ;;  %3369 = vmatprep.subr.bf16.mxu1 %v6664_v3  ;;  %v8289_v63 = vpack.c.bf16 %v98_v60, %v90_v59  ;;  %3401 = vmatprep.mubr.bf16.mxu1 %v8287_v58 }
  0x61   :  { %v289_v7 = vld [vmem:[#allocation4 + $0x60] sm:$0xff]  ;;  %3370 = vmatpush1.bf16.msra.mxu1 %v6663_v5 }
  0x62   :  { %v6672_v10 = vcombine.high %v285_v6, %v289_v7  ;;  %v541_v11 = vld [vmem:[#allocation4 + $0x840] sm:$0xff]  ;;  %3595 = vmatprep.subr.bf16.mxu0 %v6920_v8  ;;  %v6671_v18 = vcombine.low %v285_v6, %v289_v7  ;;  %9121 = vst [vmem:[#allocation14_spill] sm:$0xff] %v8289_v63  ;;  %3627 = vmatprep.mubr.bf16.mxu0 %v8289_v63 }
  0x63   :  { %v545_v12 = vld [vmem:[#allocation4 + $0x860] sm:$0xff]  ;;  %3596 = vmatpush1.bf16.msra.mxu0 %v6919_v9 }
  0x64   :  { %v293_v13 = vld [vmem:[#allocation4 + $0x80] sm:$0xff]  ;;  %v6928_v14 = vcombine.high %v541_v11, %v545_v12  ;;  %3371 = vmatprep.subr.bf16.mxu1 %v6672_v10  ;;  %v6927_v19 = vcombine.low %v541_v11, %v545_v12 }
  0x65   :  { %v297_v15 = vld [vmem:[#allocation4 + $0xa0] sm:$0xff]  ;;  %3372 = vmatpush1.bf16.msra.mxu1 %v6671_v18 }
  0x66   :  { %v549_v16 = vld [vmem:[#allocation4 + $0x880] sm:$0xff]  ;;  %v6680_v20 = vcombine.high %v293_v13, %v297_v15  ;;  %3597 = vmatprep.subr.bf16.mxu0 %v6928_v14  ;;  %v6679_v26 = vcombine.low %v293_v13, %v297_v15 }
  0x67   :  { %v553_v17 = vld [vmem:[#allocation4 + $0x8a0] sm:$0xff]  ;;  %3598 = vmatpush1.bf16.msra.mxu0 %v6927_v19 }
  0x68   :  { %v6936_v21 = vcombine.high %v549_v16, %v553_v17  ;;  %v301_v22 = vld [vmem:[#allocation4 + $0xc0] sm:$0xff]  ;;  %3373 = vmatprep.subr.bf16.mxu1 %v6680_v20  ;;  %v6935_v27 = vcombine.low %v549_v16, %v553_v17 }
  0x69   :  { %v305_v23 = vld [vmem:[#allocation4 + $0xe0] sm:$0xff]  ;;  %3374 = vmatpush1.bf16.msra.mxu1 %v6679_v26 }
  0x6a   :  { %v557_v24 = vld [vmem:[#allocation4 + $0x8c0] sm:$0xff]  ;;  %v6688_v28 = vcombine.high %v301_v22, %v305_v23  ;;  %3599 = vmatprep.subr.bf16.mxu0 %v6936_v21  ;;  %v6687_v34 = vcombine.low %v301_v22, %v305_v23 }
  0x6b   :  { %v561_v25 = vld [vmem:[#allocation4 + $0x8e0] sm:$0xff]  ;;  %3600 = vmatpush1.bf16.msra.mxu0 %v6935_v27 }
  0x6c   :  { %v6944_v29 = vcombine.high %v557_v24, %v561_v25  ;;  %v309_v30 = vld [vmem:[#allocation4 + $0x100] sm:$0xff]  ;;  %3375 = vmatprep.subr.bf16.mxu1 %v6688_v28  ;;  %v6943_v35 = vcombine.low %v557_v24, %v561_v25 }
  0x6d   :  { %v313_v31 = vld [vmem:[#allocation4 + $0x120] sm:$0xff]  ;;  %3376 = vmatpush1.bf16.msra.mxu1 %v6687_v34 }
  0x6e   :  { %v565_v32 = vld [vmem:[#allocation4 + $0x900] sm:$0xff]  ;;  %v6696_v36 = vcombine.high %v309_v30, %v313_v31  ;;  %3601 = vmatprep.subr.bf16.mxu0 %v6944_v29  ;;  %v6695_v42 = vcombine.low %v309_v30, %v313_v31 }
  0x6f   :  { %v569_v33 = vld [vmem:[#allocation4 + $0x920] sm:$0xff]  ;;  %3602 = vmatpush1.bf16.msra.mxu0 %v6943_v35 }
  0x70   :  { %v6952_v37 = vcombine.high %v565_v32, %v569_v33  ;;  %v317_v38 = vld [vmem:[#allocation4 + $0x140] sm:$0xff]  ;;  %3377 = vmatprep.subr.bf16.mxu1 %v6696_v36  ;;  %v6951_v43 = vcombine.low %v565_v32, %v569_v33 }
  0x71   :  { %v321_v39 = vld [vmem:[#allocation4 + $0x160] sm:$0xff]  ;;  %3378 = vmatpush1.bf16.msra.mxu1 %v6695_v42 }
  0x72   :  { %v573_v40 = vld [vmem:[#allocation4 + $0x940] sm:$0xff]  ;;  %v6704_v44 = vcombine.high %v317_v38, %v321_v39  ;;  %3603 = vmatprep.subr.bf16.mxu0 %v6952_v37  ;;  %v6703_v50 = vcombine.low %v317_v38, %v321_v39 }
  0x73   :  { %v577_v41 = vld [vmem:[#allocation4 + $0x960] sm:$0xff]  ;;  %3604 = vmatpush1.bf16.msra.mxu0 %v6951_v43 }
  0x74   :  { %v6960_v45 = vcombine.high %v573_v40, %v577_v41  ;;  %v325_v46 = vld [vmem:[#allocation4 + $0x180] sm:$0xff]  ;;  %3379 = vmatprep.subr.bf16.mxu1 %v6704_v44  ;;  %v6959_v51 = vcombine.low %v573_v40, %v577_v41 }
  0x75   :  { %v329_v47 = vld [vmem:[#allocation4 + $0x1a0] sm:$0xff]  ;;  %3380 = vmatpush1.bf16.msra.mxu1 %v6703_v50 }
  0x76   :  { %v581_v48 = vld [vmem:[#allocation4 + $0x980] sm:$0xff]  ;;  %v6712_v52 = vcombine.high %v325_v46, %v329_v47  ;;  %3605 = vmatprep.subr.bf16.mxu0 %v6960_v45  ;;  %v6711_v0 = vcombine.low %v325_v46, %v329_v47 }
  0x77   :  { %v585_v49 = vld [vmem:[#allocation4 + $0x9a0] sm:$0xff]  ;;  %3606 = vmatpush1.bf16.msra.mxu0 %v6959_v51 }
  0x78   :  { %v333_v53 = vld [vmem:[#allocation4 + $0x1c0] sm:$0xff]  ;;  %v6968_v56 = vcombine.high %v581_v48, %v585_v49  ;;  %3381 = vmatprep.subr.bf16.mxu1 %v6712_v52  ;;  %v6967_v1 = vcombine.low %v581_v48, %v585_v49 }
  0x79   :  { %v337_v57 = vld [vmem:[#allocation4 + $0x1e0] sm:$0xff]  ;;  %3382 = vmatpush1.bf16.msra.mxu1 %v6711_v0 }
  0x7a   :  { %v589_v61 = vld [vmem:[#allocation4 + $0x9c0] sm:$0xff]  ;;  %v6720_v2 = vcombine.high %v333_v53, %v337_v57  ;;  %3607 = vmatprep.subr.bf16.mxu0 %v6968_v56  ;;  %v6719_v8 = vcombine.low %v333_v53, %v337_v57 }
  0x7b   :  { %v593_v62 = vld [vmem:[#allocation4 + $0x9e0] sm:$0xff]  ;;  %3608 = vmatpush1.bf16.msra.mxu0 %v6967_v1 }
  0x7c   :  { %v6976_v3 = vcombine.high %v589_v61, %v593_v62  ;;  %v341_v4 = vld [vmem:[#allocation4 + $0x200] sm:$0xff]  ;;  %3383 = vmatprep.subr.bf16.mxu1 %v6720_v2  ;;  %v6975_v9 = vcombine.low %v589_v61, %v593_v62 }
  0x7d   :  { %v345_v5 = vld [vmem:[#allocation4 + $0x220] sm:$0xff]  ;;  %3384 = vmatpush1.bf16.msra.mxu1 %v6719_v8 }
  0x7e   :  { %v597_v6 = vld [vmem:[#allocation4 + $0xa00] sm:$0xff]  ;;  %v6728_v10 = vcombine.high %v341_v4, %v345_v5  ;;  %3609 = vmatprep.subr.bf16.mxu0 %v6976_v3  ;;  %v6727_v16 = vcombine.low %v341_v4, %v345_v5 }
  0x7f   :  { %v601_v7 = vld [vmem:[#allocation4 + $0xa20] sm:$0xff]  ;;  %3610 = vmatpush1.bf16.msra.mxu0 %v6975_v9 }
  0x80   :  { %v6984_v11 = vcombine.high %v597_v6, %v601_v7  ;;  %v349_v12 = vld [vmem:[#allocation4 + $0x240] sm:$0xff]  ;;  %3385 = vmatprep.subr.bf16.mxu1 %v6728_v10  ;;  %v6983_v17 = vcombine.low %v597_v6, %v601_v7 }
  0x81   :  { %v353_v13 = vld [vmem:[#allocation4 + $0x260] sm:$0xff]  ;;  %3386 = vmatpush1.bf16.msra.mxu1 %v6727_v16 }
  0x82   :  { %v605_v14 = vld [vmem:[#allocation4 + $0xa40] sm:$0xff]  ;;  %v6736_v18 = vcombine.high %v349_v12, %v353_v13  ;;  %3611 = vmatprep.subr.bf16.mxu0 %v6984_v11  ;;  %v6735_v24 = vcombine.low %v349_v12, %v353_v13 }
  0x83   :  { %v609_v15 = vld [vmem:[#allocation4 + $0xa60] sm:$0xff]  ;;  %3612 = vmatpush1.bf16.msra.mxu0 %v6983_v17 }
  0x84   :  { %v6992_v19 = vcombine.high %v605_v14, %v609_v15  ;;  %v357_v20 = vld [vmem:[#allocation4 + $0x280] sm:$0xff]  ;;  %3387 = vmatprep.subr.bf16.mxu1 %v6736_v18  ;;  %v6991_v25 = vcombine.low %v605_v14, %v609_v15 }
  0x85   :  { %v361_v21 = vld [vmem:[#allocation4 + $0x2a0] sm:$0xff]  ;;  %3388 = vmatpush1.bf16.msra.mxu1 %v6735_v24  ;;  %v114_v24 = vld [vmem:[#allocation2 + $0xe8] sm:$0xff] }
  0x86   :  { %v613_v22 = vld [vmem:[#allocation4 + $0xa80] sm:$0xff]  ;;  %v6744_v26 = vcombine.high %v357_v20, %v361_v21  ;;  %3613 = vmatprep.subr.bf16.mxu0 %v6992_v19  ;;  %v6743_v32 = vcombine.low %v357_v20, %v361_v21  ;;  %v102_v20 = vld [vmem:[#allocation2 + $0x88] sm:$0xff] }
  0x87   :  { %v617_v23 = vld [vmem:[#allocation4 + $0xaa0] sm:$0xff]  ;;  %3614 = vmatpush1.bf16.msra.mxu0 %v6991_v25 }
  0x88   :  { %v7000_v27 = vcombine.high %v613_v22, %v617_v23  ;;  %v365_v28 = vld [vmem:[#allocation4 + $0x2c0] sm:$0xff]  ;;  %3389 = vmatprep.subr.bf16.mxu1 %v6744_v26  ;;  %v6999_v33 = vcombine.low %v613_v22, %v617_v23  ;;  %v110_v22 = vld [vmem:[#allocation2 + $0xc8] sm:$0xff] }
  0x89   :  { %v369_v29 = vld [vmem:[#allocation4 + $0x2e0] sm:$0xff]  ;;  %3390 = vmatpush1.bf16.msra.mxu1 %v6743_v32  ;;  %v106_v23 = vld [vmem:[#allocation2 + $0xa8] sm:$0xff] }
  0x8a   :  { %v621_v30 = vld [vmem:[#allocation4 + $0xac0] sm:$0xff]  ;;  %v6752_v34 = vcombine.high %v365_v28, %v369_v29  ;;  %3615 = vmatprep.subr.bf16.mxu0 %v7000_v27  ;;  %v6751_v40 = vcombine.low %v365_v28, %v369_v29  ;;  %v8299_v32 = vpack.c.bf16 %v114_v24, %v106_v23 }
  0x8b   :  { %v625_v31 = vld [vmem:[#allocation4 + $0xae0] sm:$0xff]  ;;  %3616 = vmatpush1.bf16.msra.mxu0 %v6999_v33 }
  0x8c   :  { %v7008_v35 = vcombine.high %v621_v30, %v625_v31  ;;  %v373_v36 = vld [vmem:[#allocation4 + $0x300] sm:$0xff]  ;;  %3391 = vmatprep.subr.bf16.mxu1 %v6752_v34  ;;  %v7007_v41 = vcombine.low %v621_v30, %v625_v31  ;;  %v8297_v31 = vpack.c.bf16 %v110_v22, %v102_v20  ;;  %9123 = vst [vmem:[#allocation16_spill] sm:$0xff] %v8299_v32 }
  0x8d   :  { %v377_v37 = vld [vmem:[#allocation4 + $0x320] sm:$0xff]  ;;  %3392 = vmatpush1.bf16.msra.mxu1 %v6751_v40 }
  0x8e   :  { %v629_v38 = vld [vmem:[#allocation4 + $0xb00] sm:$0xff]  ;;  %v6760_v42 = vcombine.high %v373_v36, %v377_v37  ;;  %3617 = vmatprep.subr.bf16.mxu0 %v7008_v35  ;;  %v6759_v48 = vcombine.low %v373_v36, %v377_v37 }
  0x8f   :  { %v633_v39 = vld [vmem:[#allocation4 + $0xb20] sm:$0xff]  ;;  %3618 = vmatpush1.bf16.msra.mxu0 %v7007_v41 }
  0x90   :  { %v7016_v43 = vcombine.high %v629_v38, %v633_v39  ;;  %v381_v44 = vld [vmem:[#allocation4 + $0x340] sm:$0xff]  ;;  %3393 = vmatprep.subr.bf16.mxu1 %v6760_v42  ;;  %v7015_v49 = vcombine.low %v629_v38, %v633_v39 }
  0x91   :  { %v385_v45 = vld [vmem:[#allocation4 + $0x360] sm:$0xff]  ;;  %3394 = vmatpush1.bf16.msra.mxu1 %v6759_v48  ;;  %v118_v48 = vld [vmem:[#allocation2 + $0x108] sm:$0xff] }
  0x92   :  { %v637_v46 = vld [vmem:[#allocation4 + $0xb40] sm:$0xff]  ;;  %v6768_v50 = vcombine.high %v381_v44, %v385_v45  ;;  %3619 = vmatprep.subr.bf16.mxu0 %v7016_v43  ;;  %v6767_v56 = vcombine.low %v381_v44, %v385_v45 }
  0x93   :  { %v641_v47 = vld [vmem:[#allocation4 + $0xb60] sm:$0xff]  ;;  %3620 = vmatpush1.bf16.msra.mxu0 %v7015_v49 }
  0x94   :  { %v7024_v51 = vcombine.high %v637_v46, %v641_v47  ;;  %v389_v52 = vld [vmem:[#allocation4 + $0x380] sm:$0xff]  ;;  %3395 = vmatprep.subr.bf16.mxu1 %v6768_v50  ;;  %v7023_v57 = vcombine.low %v637_v46, %v641_v47  ;;  %v126_v50 = vld [vmem:[#allocation2 + $0x148] sm:$0xff] }
  0x95   :  { %v393_v53 = vld [vmem:[#allocation4 + $0x3a0] sm:$0xff]  ;;  %3396 = vmatpush1.bf16.msra.mxu1 %v6767_v56 }
  0x96   :  { %v645_v54 = vld [vmem:[#allocation4 + $0xb80] sm:$0xff]  ;;  %v6776_v59 = vcombine.high %v389_v52, %v393_v53  ;;  %3621 = vmatprep.subr.bf16.mxu0 %v7024_v51  ;;  %v6775_v2 = vcombine.low %v389_v52, %v393_v53  ;;  %v122_v51 = vld [vmem:[#allocation2 + $0x128] sm:$0xff] }
  0x97   :  { %v649_v55 = vld [vmem:[#allocation4 + $0xba0] sm:$0xff]  ;;  %3622 = vmatpush1.bf16.msra.mxu0 %v7023_v57  ;;  %v130_v52 = vld [vmem:[#allocation2 + $0x168] sm:$0xff] }
  0x98   :  { %v7032_v60 = vcombine.high %v645_v54, %v649_v55  ;;  %v397_v61 = vld [vmem:[#allocation4 + $0x3c0] sm:$0xff]  ;;  %3397 = vmatprep.subr.bf16.mxu1 %v6776_v59  ;;  %v7031_v3 = vcombine.low %v645_v54, %v649_v55 }
  0x99   :  { %v401_v62 = vld [vmem:[#allocation4 + $0x3e0] sm:$0xff]  ;;  %3398 = vmatpush1.bf16.msra.mxu1 %v6775_v2 }
  0x9a   :  { %v653_v0 = vld [vmem:[#allocation4 + $0xbc0] sm:$0xff]  ;;  %v6784_v4 = vcombine.high %v397_v61, %v401_v62  ;;  %3623 = vmatprep.subr.bf16.mxu0 %v7032_v60  ;;  %v6783_v10 = vcombine.low %v397_v61, %v401_v62  ;;  %v8309_v60 = vpack.c.bf16 %v126_v50, %v118_v48  ;;  %v8311_v61 = vpack.c.bf16 %v130_v52, %v122_v51  ;;  %v158_v48 = vld [vmem:[#allocation2 + $0x248] sm:$0xff] }
  0x9b   :  { %v657_v1 = vld [vmem:[#allocation4 + $0xbe0] sm:$0xff]  ;;  %3624 = vmatpush1.bf16.msra.mxu0 %v7031_v3  ;;  %v154_v50 = vld [vmem:[#allocation2 + $0x228] sm:$0xff] }
  0x9c   :  { %v7040_v5 = vcombine.high %v653_v0, %v657_v1  ;;  %v405_v6 = vld [vmem:[#allocation4 + $0x400] sm:$0xff]  ;;  %3399 = vmatprep.subr.bf16.mxu1 %v6784_v4  ;;  %v7039_v13 = vcombine.low %v653_v0, %v657_v1  ;;  %9125 = vst [vmem:[#allocation18_spill] sm:$0xff] %v8311_v61  ;;  %v162_v51 = vld [vmem:[#allocation2 + $0x268] sm:$0xff] }
  0x9d   :  { %v409_v7 = vld [vmem:[#allocation4 + $0x420] sm:$0xff]  ;;  %3400 = vmatpush1.bf16.msra.mxu1 %v6783_v10 }
  0x9e   :  { %v661_v8 = vld [vmem:[#allocation4 + $0xc00] sm:$0xff]  ;;  %v6792_v14 = vcombine.high %v405_v6, %v409_v7  ;;  %3625 = vmatprep.subr.bf16.mxu0 %v7040_v5  ;;  %v6791_v25 = vcombine.low %v405_v6, %v409_v7 }
  0x9f   :  { %v665_v9 = vld [vmem:[#allocation4 + $0xc20] sm:$0xff]  ;;  %3626 = vmatpush1.bf16.msra.mxu0 %v7039_v13 }
  0xa0   :  { %v85_v11 = vld [vmem:[#allocation2] sm:$0xff]  ;;  %v7048_v19 = vcombine.high %v661_v8, %v665_v9  ;;  %3482 = vmatprep.subr.bf16.mxu1 %v6792_v14  ;;  %v7047_v30 = vcombine.low %v661_v8, %v665_v9  ;;  %v134_v14 = vld [vmem:[#allocation2 + $0x188] sm:$0xff] }
  0xa1   :  { %v93_v12 = vld [vmem:[#allocation2 + $0x40] sm:$0xff] }
  0xa2   :  { %v89_v15 = vld [vmem:[#allocation2 + $0x20] sm:$0xff]  ;;  %v8293_v21 = vpack.c.bf16 %v93_v12, %v85_v11  ;;  %3708 = vmatprep.subr.bf16.mxu0 %v7048_v19 }
  0xa3   :  { %v97_v16 = vld [vmem:[#allocation2 + $0x60] sm:$0xff] }
  0xa4   :  { %v413_v17 = vld [vmem:[#allocation4 + $0x440] sm:$0xff]  ;;  %v8295_v26 = vpack.c.bf16 %v97_v16, %v89_v15  ;;  %3402 = vmatmul.mubr.bf16.vlgmr.msra.gmra.mrb[0].mxu1 %v8293_v21  ;;  %v142_v16 = vld [vmem:[#allocation2 + $0x1c8] sm:$0xff] }
  0xa5   :  { %v417_v18 = vld [vmem:[#allocation4 + $0x460] sm:$0xff]  ;;  %3483 = vmatpush1.bf16.msra.mxu1 %v6791_v25  ;;  %3411 = vmatprep.mubr.bf16.mxu1 %v8297_v31 }
  0xa6   :  { %9122 = vst [vmem:[#allocation15_spill] sm:$0xff] %v8295_v26  ;;  %v669_v27 = vld [vmem:[#allocation4 + $0xc40] sm:$0xff]  ;;  %v6800_v29 = vcombine.high %v413_v17, %v417_v18  ;;  %3628 = vmatmul.mubr.bf16.vlgmr.msra.gmra.mrb[0].mxu0 %v8295_v26  ;;  %v6799_v38 = vcombine.low %v413_v17, %v417_v18  ;;  %v138_v17 = vld [vmem:[#allocation2 + $0x1a8] sm:$0xff] }
  0xa7   :  { %v673_v28 = vld [vmem:[#allocation4 + $0xc60] sm:$0xff]  ;;  %3709 = vmatpush1.bf16.msra.mxu0 %v7047_v30  ;;  %3637 = vmatprep.mubr.bf16.mxu0 %v8299_v32  ;;  %v146_v18 = vld [vmem:[#allocation2 + $0x1e8] sm:$0xff]  ;;  %v207_v32 = vld [vmem:[#allocation2 + $0x3d0] sm:$0xff] }
  0xa8   :  { %v421_v33 = vld [vmem:[#allocation4 + $0x480] sm:$0xff]  ;;  %v7056_v35 = vcombine.high %v669_v27, %v673_v28  ;;  %3484 = vmatprep.subr.bf16.mxu1 %v6800_v29  ;;  %v7055_v44 = vcombine.low %v669_v27, %v673_v28  ;;  %v8321_v27 = vpack.c.bf16 %v142_v16, %v134_v14  ;;  %v8323_v28 = vpack.c.bf16 %v146_v18, %v138_v17  ;;  %v166_v17 = vld [vmem:[#allocation2 + $0x288] sm:$0xff] }
  0xa9   :  { %v425_v34 = vld [vmem:[#allocation4 + $0x4a0] sm:$0xff]  ;;  %3485 = vmatpush1.bf16.msra.mxu1 %v6799_v38 }
  0xaa   :  { %v677_v36 = vld [vmem:[#allocation4 + $0xc80] sm:$0xff]  ;;  %v6808_v41 = vcombine.high %v421_v33, %v425_v34  ;;  %3710 = vmatprep.subr.bf16.mxu0 %v7056_v35  ;;  %v6807_v53 = vcombine.low %v421_v33, %v425_v34  ;;  %9127 = vst [vmem:[#allocation20_spill] sm:$0xff] %v8323_v28 }
  0xab   :  { %v681_v37 = vld [vmem:[#allocation4 + $0xca0] sm:$0xff]  ;;  %3711 = vmatpush1.bf16.msra.mxu0 %v7055_v44 }
  0xac   :  { %v101_v39 = vld [vmem:[#allocation2 + $0x80] sm:$0xff]  ;;  %v7064_v47 = vcombine.high %v677_v36, %v681_v37  ;;  %3486 = vmatprep.subr.bf16.mxu1 %v6808_v41  ;;  %v7063_v59 = vcombine.low %v677_v36, %v681_v37 }
  0xad   :  { %v109_v40 = vld [vmem:[#allocation2 + $0xc0] sm:$0xff]  ;;  %3487 = vmatpush1.bf16.msra.mxu1 %v6807_v53 }
  0xae   :  { %v105_v42 = vld [vmem:[#allocation2 + $0xa0] sm:$0xff]  ;;  %v8305_v49 = vpack.c.bf16 %v109_v40, %v101_v39  ;;  %3712 = vmatprep.subr.bf16.mxu0 %v7064_v47 }
  0xaf   :  { %v113_v43 = vld [vmem:[#allocation2 + $0xe0] sm:$0xff]  ;;  %3713 = vmatpush1.bf16.msra.mxu0 %v7063_v59 }
  0xb0   :  { %v429_v45 = vld [vmem:[#allocation4 + $0x4c0] sm:$0xff]  ;;  %v8307_v54 = vpack.c.bf16 %v113_v43, %v105_v42  ;;  %3412 = vmatmul.mubr.bf16.gmra.mrb[4].mxu1 %v8305_v49 }
  0xb1   :  { %v433_v46 = vld [vmem:[#allocation4 + $0x4e0] sm:$0xff]  ;;  %3421 = vmatprep.mubr.bf16.mxu1 %v8309_v60 }
  0xb2   :  { %9124 = vst [vmem:[#allocation17_spill] sm:$0xff] %v8307_v54  ;;  %v685_v55 = vld [vmem:[#allocation4 + $0xcc0] sm:$0xff]  ;;  %v6816_v57 = vcombine.high %v429_v45, %v433_v46  ;;  %3638 = vmatmul.mubr.bf16.gmra.mrb[4].mxu0 %v8307_v54  ;;  %v6815_v4 = vcombine.low %v429_v45, %v433_v46  ;;  %v150_v46 = vld [vmem:[#allocation2 + $0x208] sm:$0xff]  ;;  %v199_v54 = vld [vmem:[#allocation2 + $0x390] sm:$0xff] }
  0xb3   :  { %v689_v56 = vld [vmem:[#allocation4 + $0xce0] sm:$0xff]  ;;  %3647 = vmatprep.mubr.bf16.mxu0 %v8311_v61  ;;  %v191_v61 = vld [vmem:[#allocation2 + $0x350] sm:$0xff] }
  0xb4   :  { %v437_v62 = vld [vmem:[#allocation4 + $0x500] sm:$0xff]  ;;  %v7072_v1 = vcombine.high %v685_v55, %v689_v56  ;;  %3488 = vmatprep.subr.bf16.mxu1 %v6816_v57  ;;  %v7071_v10 = vcombine.low %v685_v55, %v689_v56 }
  0xb5   :  { %v441_v0 = vld [vmem:[#allocation4 + $0x520] sm:$0xff]  ;;  %3489 = vmatpush1.bf16.msra.mxu1 %v6815_v4 }
  0xb6   :  { %v693_v2 = vld [vmem:[#allocation4 + $0xd00] sm:$0xff]  ;;  %v6824_v7 = vcombine.high %v437_v62, %v441_v0  ;;  %3714 = vmatprep.subr.bf16.mxu0 %v7072_v1  ;;  %v6823_v19 = vcombine.low %v437_v62, %v441_v0  ;;  %v8333_v62 = vpack.c.bf16 %v158_v48, %v150_v46  ;;  %v8335_v0 = vpack.c.bf16 %v162_v51, %v154_v50 }
  0xb7   :  { %v697_v3 = vld [vmem:[#allocation4 + $0xd20] sm:$0xff]  ;;  %3715 = vmatpush1.bf16.msra.mxu0 %v7071_v10 }
  0xb8   :  { %v117_v5 = vld [vmem:[#allocation2 + $0x100] sm:$0xff]  ;;  %v7080_v13 = vcombine.high %v693_v2, %v697_v3  ;;  %3490 = vmatprep.subr.bf16.mxu1 %v6824_v7  ;;  %v7079_v25 = vcombine.low %v693_v2, %v697_v3  ;;  %9129 = vst [vmem:[#allocation22_spill] sm:$0xff] %v8335_v0 }
  0xb9   :  { %v125_v6 = vld [vmem:[#allocation2 + $0x140] sm:$0xff]  ;;  %3491 = vmatpush1.bf16.msra.mxu1 %v6823_v19  ;;  %v174_v19 = vld [vmem:[#allocation2 + $0x2c8] sm:$0xff] }
  0xba   :  { %v121_v8 = vld [vmem:[#allocation2 + $0x120] sm:$0xff]  ;;  %v8317_v15 = vpack.c.bf16 %v125_v6, %v117_v5  ;;  %3716 = vmatprep.subr.bf16.mxu0 %v7080_v13 }
  0xbb   :  { %v129_v9 = vld [vmem:[#allocation2 + $0x160] sm:$0xff]  ;;  %3717 = vmatpush1.bf16.msra.mxu0 %v7079_v25 }
  0xbc   :  { %v445_v11 = vld [vmem:[#allocation4 + $0x540] sm:$0xff]  ;;  %v8319_v20 = vpack.c.bf16 %v129_v9, %v121_v8  ;;  %3422 = vmatmul.mubr.bf16.gmra.mrb[8].mxu1 %v8317_v15 }
  0xbd   :  { %v449_v12 = vld [vmem:[#allocation4 + $0x560] sm:$0xff]  ;;  %3431 = vmatprep.mubr.bf16.mxu1 %v8321_v27 }
  0xbe   :  { %9126 = vst [vmem:[#allocation19_spill] sm:$0xff] %v8319_v20  ;;  %v701_v22 = vld [vmem:[#allocation4 + $0xd40] sm:$0xff]  ;;  %v6832_v24 = vcombine.high %v445_v11, %v449_v12  ;;  %3648 = vmatmul.mubr.bf16.gmra.mrb[8].mxu0 %v8319_v20  ;;  %v6831_v36 = vcombine.low %v445_v11, %v449_v12  ;;  %v183_v20 = vld [vmem:[#allocation2 + $0x310] sm:$0xff] }
  0xbf   :  { %v705_v23 = vld [vmem:[#allocation4 + $0xd60] sm:$0xff]  ;;  %3657 = vmatprep.mubr.bf16.mxu0 %v8323_v28  ;;  %v175_v28 = vld [vmem:[#allocation2 + $0x2d0] sm:$0xff] }
  0xc0   :  { %v453_v29 = vld [vmem:[#allocation4 + $0x580] sm:$0xff]  ;;  %v7088_v33 = vcombine.high %v701_v22, %v705_v23  ;;  %3492 = vmatprep.subr.bf16.mxu1 %v6832_v24  ;;  %v7087_v42 = vcombine.low %v701_v22, %v705_v23  ;;  %v170_v22 = vld [vmem:[#allocation2 + $0x2a8] sm:$0xff] }
  0xc1   :  { %v457_v30 = vld [vmem:[#allocation4 + $0x5a0] sm:$0xff]  ;;  %3493 = vmatpush1.bf16.msra.mxu1 %v6831_v36  ;;  %v178_v23 = vld [vmem:[#allocation2 + $0x2e8] sm:$0xff] }
  0xc2   :  { %v709_v34 = vld [vmem:[#allocation4 + $0xd80] sm:$0xff]  ;;  %v6840_v39 = vcombine.high %v453_v29, %v457_v30  ;;  %3718 = vmatprep.subr.bf16.mxu0 %v7088_v33  ;;  %v6839_v52 = vcombine.low %v453_v29, %v457_v30  ;;  %v8347_v36 = vpack.c.bf16 %v178_v23, %v170_v22 }
  0xc3   :  { %v713_v35 = vld [vmem:[#allocation4 + $0xda0] sm:$0xff]  ;;  %3719 = vmatpush1.bf16.msra.mxu0 %v7087_v42 }
  0xc4   :  { %v133_v37 = vld [vmem:[#allocation2 + $0x180] sm:$0xff]  ;;  %v7096_v45 = vcombine.high %v709_v34, %v713_v35  ;;  %3494 = vmatprep.subr.bf16.mxu1 %v6840_v39  ;;  %v7095_v59 = vcombine.low %v709_v34, %v713_v35  ;;  %v8345_v35 = vpack.c.bf16 %v174_v19, %v166_v17  ;;  %9131 = vst [vmem:[#allocation24_spill] sm:$0xff] %v8347_v36 }
  0xc5   :  { %v141_v38 = vld [vmem:[#allocation2 + $0x1c0] sm:$0xff]  ;;  %3495 = vmatpush1.bf16.msra.mxu1 %v6839_v52 }
  0xc6   :  { %v137_v40 = vld [vmem:[#allocation2 + $0x1a0] sm:$0xff]  ;;  %v8329_v47 = vpack.c.bf16 %v141_v38, %v133_v37  ;;  %3720 = vmatprep.subr.bf16.mxu0 %v7096_v45 }
  0xc7   :  { %v145_v41 = vld [vmem:[#allocation2 + $0x1e0] sm:$0xff]  ;;  %3721 = vmatpush1.bf16.msra.mxu0 %v7095_v59  ;;  %v190_v59 = vld [vmem:[#allocation2 + $0x348] sm:$0xff] }
  0xc8   :  { %v461_v43 = vld [vmem:[#allocation4 + $0x5c0] sm:$0xff]  ;;  %v8331_v53 = vpack.c.bf16 %v145_v41, %v137_v40  ;;  %3432 = vmatmul.mubr.bf16.gmra.mrb[12].mxu1 %v8329_v47 }
  0xc9   :  { %v465_v44 = vld [vmem:[#allocation4 + $0x5e0] sm:$0xff]  ;;  %3441 = vmatprep.mubr.bf16.mxu1 %v8333_v62 }
  0xca   :  { %9128 = vst [vmem:[#allocation21_spill] sm:$0xff] %v8331_v53  ;;  %v717_v55 = vld [vmem:[#allocation4 + $0xdc0] sm:$0xff]  ;;  %v6848_v57 = vcombine.high %v461_v43, %v465_v44  ;;  %3658 = vmatmul.mubr.bf16.gmra.mrb[12].mxu0 %v8331_v53  ;;  %v6847_v6 = vcombine.low %v461_v43, %v465_v44  ;;  %v167_v53 = vld [vmem:[#allocation2 + $0x290] sm:$0xff] }
  0xcb   :  { %v721_v56 = vld [vmem:[#allocation4 + $0xde0] sm:$0xff]  ;;  %3667 = vmatprep.mubr.bf16.mxu0 %v8335_v0  ;;  %v159_v0 = vld [vmem:[#allocation2 + $0x250] sm:$0xff] }
  0xcc   :  { %v469_v1 = vld [vmem:[#allocation4 + $0x600] sm:$0xff]  ;;  %v7104_v3 = vcombine.high %v717_v55, %v721_v56  ;;  %3496 = vmatprep.subr.bf16.mxu1 %v6848_v57  ;;  %v7103_v12 = vcombine.low %v717_v55, %v721_v56  ;;  %v182_v56 = vld [vmem:[#allocation2 + $0x308] sm:$0xff] }
  0xcd   :  { %v473_v2 = vld [vmem:[#allocation4 + $0x620] sm:$0xff]  ;;  %3497 = vmatpush1.bf16.msra.mxu1 %v6847_v6 }
  0xce   :  { %v725_v4 = vld [vmem:[#allocation4 + $0xe00] sm:$0xff]  ;;  %v6856_v9 = vcombine.high %v469_v1, %v473_v2  ;;  %3722 = vmatprep.subr.bf16.mxu0 %v7104_v3  ;;  %v6855_v24 = vcombine.low %v469_v1, %v473_v2  ;;  %v186_v1 = vld [vmem:[#allocation2 + $0x328] sm:$0xff] }
  0xcf   :  { %v729_v5 = vld [vmem:[#allocation4 + $0xe20] sm:$0xff]  ;;  %3723 = vmatpush1.bf16.msra.mxu0 %v7103_v12  ;;  %v194_v2 = vld [vmem:[#allocation2 + $0x368] sm:$0xff] }
  0xd0   :  { %v149_v7 = vld [vmem:[#allocation2 + $0x200] sm:$0xff]  ;;  %v7112_v16 = vcombine.high %v725_v4, %v729_v5  ;;  %3498 = vmatprep.subr.bf16.mxu1 %v6856_v9  ;;  %v7111_v34 = vcombine.low %v725_v4, %v729_v5  ;;  %v8357_v9 = vpack.c.bf16 %v190_v59, %v182_v56 }
  0xd1   :  { %v157_v8 = vld [vmem:[#allocation2 + $0x240] sm:$0xff]  ;;  %3499 = vmatpush1.bf16.msra.mxu1 %v6855_v24 }
  0xd2   :  { %v153_v10 = vld [vmem:[#allocation2 + $0x220] sm:$0xff]  ;;  %v8341_v18 = vpack.c.bf16 %v157_v8, %v149_v7  ;;  %3724 = vmatprep.subr.bf16.mxu0 %v7112_v16 }
  0xd3   :  { %v161_v11 = vld [vmem:[#allocation2 + $0x260] sm:$0xff]  ;;  %3725 = vmatpush1.bf16.msra.mxu0 %v7111_v34 }
  0xd4   :  { %v477_v13 = vld [vmem:[#allocation4 + $0x640] sm:$0xff]  ;;  %v8343_v25 = vpack.c.bf16 %v161_v11, %v153_v10  ;;  %3442 = vmatmul.mubr.bf16.gmra.mrb[16].mxu1 %v8341_v18  ;;  %v8359_v10 = vpack.c.bf16 %v194_v2, %v186_v1 }
  0xd5   :  { %v481_v14 = vld [vmem:[#allocation4 + $0x660] sm:$0xff]  ;;  %3451 = vmatprep.mubr.bf16.mxu1 %v8345_v35 }
  0xd6   :  { %9130 = vst [vmem:[#allocation23_spill] sm:$0xff] %v8343_v25  ;;  %v733_v29 = vld [vmem:[#allocation4 + $0xe40] sm:$0xff]  ;;  %v6864_v33 = vcombine.high %v477_v13, %v481_v14  ;;  %3668 = vmatmul.mubr.bf16.gmra.mrb[16].mxu0 %v8343_v25  ;;  %v6863_v42 = vcombine.low %v477_v13, %v481_v14  ;;  %9133 = vst [vmem:[#allocation26_spill] sm:$0xff] %v8359_v10  ;;  %v151_v25 = vld [vmem:[#allocation2 + $0x210] sm:$0xff] }
  0xd7   :  { %v737_v30 = vld [vmem:[#allocation4 + $0xe60] sm:$0xff]  ;;  %3677 = vmatprep.mubr.bf16.mxu0 %v8347_v36  ;;  %v143_v36 = vld [vmem:[#allocation2 + $0x1d0] sm:$0xff] }
  0xd8   :  { %v485_v37 = vld [vmem:[#allocation4 + $0x680] sm:$0xff]  ;;  %v7120_v39 = vcombine.high %v733_v29, %v737_v30  ;;  %3500 = vmatprep.subr.bf16.mxu1 %v6864_v33  ;;  %v7119_v50 = vcombine.low %v733_v29, %v737_v30 }
  0xd9   :  { %v489_v38 = vld [vmem:[#allocation4 + $0x6a0] sm:$0xff]  ;;  %3501 = vmatpush1.bf16.msra.mxu1 %v6863_v42  ;;  %v210_v42 = vld [vmem:[#allocation2 + $0x3e8] sm:$0xff] }
  0xda   :  { %v741_v40 = vld [vmem:[#allocation4 + $0xe80] sm:$0xff]  ;;  %v6872_v45 = vcombine.high %v485_v37, %v489_v38  ;;  %3726 = vmatprep.subr.bf16.mxu0 %v7120_v39  ;;  %v6871_v3 = vcombine.low %v485_v37, %v489_v38  ;;  %v198_v38 = vld [vmem:[#allocation2 + $0x388] sm:$0xff] }
  0xdb   :  { %v745_v41 = vld [vmem:[#allocation4 + $0xea0] sm:$0xff]  ;;  %3727 = vmatpush1.bf16.msra.mxu0 %v7119_v50 }
  0xdc   :  { %v165_v43 = vld [vmem:[#allocation2 + $0x280] sm:$0xff]  ;;  %v7128_v55 = vcombine.high %v741_v40, %v745_v41  ;;  %3502 = vmatprep.subr.bf16.mxu1 %v6872_v45  ;;  %v7127_v8 = vcombine.low %v741_v40, %v745_v41  ;;  %v206_v40 = vld [vmem:[#allocation2 + $0x3c8] sm:$0xff] }
  0xdd   :  { %v173_v44 = vld [vmem:[#allocation2 + $0x2c0] sm:$0xff]  ;;  %3503 = vmatpush1.bf16.msra.mxu1 %v6871_v3  ;;  %v202_v41 = vld [vmem:[#allocation2 + $0x3a8] sm:$0xff] }
  0xde   :  { %v169_v46 = vld [vmem:[#allocation2 + $0x2a0] sm:$0xff]  ;;  %v8353_v57 = vpack.c.bf16 %v173_v44, %v165_v43  ;;  %3728 = vmatprep.subr.bf16.mxu0 %v7128_v55 }
  0xdf   :  { %v177_v48 = vld [vmem:[#allocation2 + $0x2e0] sm:$0xff]  ;;  %3729 = vmatpush1.bf16.msra.mxu0 %v7127_v8 }
  0xe0   :  { %v493_v51 = vld [vmem:[#allocation4 + $0x6c0] sm:$0xff]  ;;  %v8355_v4 = vpack.c.bf16 %v177_v48, %v169_v46  ;;  %3452 = vmatmul.mubr.bf16.gmra.mrb[20].mxu1 %v8353_v57 }
  0xe1   :  { %v497_v52 = vld [vmem:[#allocation4 + $0x6e0] sm:$0xff]  ;;  %3461 = vmatprep.mubr.bf16.mxu1 %v8357_v9 }
  0xe2   :  { %9132 = vst [vmem:[#allocation25_spill] sm:$0xff] %v8355_v4  ;;  %v749_v5 = vld [vmem:[#allocation4 + $0xec0] sm:$0xff]  ;;  %v6880_v7 = vcombine.high %v493_v51, %v497_v52  ;;  %3678 = vmatmul.mubr.bf16.gmra.mrb[20].mxu0 %v8355_v4  ;;  %v6879_v17 = vcombine.low %v493_v51, %v497_v52  ;;  %v8369_v51 = vpack.c.bf16 %v206_v40, %v198_v38  ;;  %v135_v4 = vld [vmem:[#allocation2 + $0x190] sm:$0xff] }
  0xe3   :  { %v753_v6 = vld [vmem:[#allocation4 + $0xee0] sm:$0xff]  ;;  %3687 = vmatprep.mubr.bf16.mxu0 %v8359_v10  ;;  %v8371_v52 = vpack.c.bf16 %v210_v42, %v202_v41  ;;  %v278_v42 = vld [vmem:[#allocation4 + $0x8] sm:$0xff]  ;;  %v127_v10 = vld [vmem:[#allocation2 + $0x150] sm:$0xff] }
  0xe4   :  { %v501_v11 = vld [vmem:[#allocation4 + $0x700] sm:$0xff]  ;;  %v7136_v13 = vcombine.high %v749_v5, %v753_v6  ;;  %3504 = vmatprep.subr.bf16.mxu1 %v6880_v7  ;;  %v7135_v30 = vcombine.low %v749_v5, %v753_v6 }
  0xe5   :  { %v505_v12 = vld [vmem:[#allocation4 + $0x720] sm:$0xff]  ;;  %3505 = vmatpush1.bf16.msra.mxu1 %v6879_v17  ;;  %9135 = vst [vmem:[#allocation28_spill] sm:$0xff] %v8371_v52  ;;  %v88_v17 = vld [vmem:[#allocation2 + $0x18] sm:$0xff] }
  0xe6   :  { %v757_v14 = vld [vmem:[#allocation4 + $0xf00] sm:$0xff]  ;;  %v6888_v23 = vcombine.high %v501_v11, %v505_v12  ;;  %3730 = vmatprep.subr.bf16.mxu0 %v7136_v13  ;;  %v6887_v43 = vcombine.low %v501_v11, %v505_v12 }
  0xe7   :  { %v761_v16 = vld [vmem:[#allocation4 + $0xf20] sm:$0xff]  ;;  %3731 = vmatpush1.bf16.msra.mxu0 %v7135_v30 }
  0xe8   :  { %v181_v19 = vld [vmem:[#allocation2 + $0x300] sm:$0xff]  ;;  %v7144_v37 = vcombine.high %v757_v14, %v761_v16  ;;  %3506 = vmatprep.subr.bf16.mxu1 %v6888_v23  ;;  %v7143_v50 = vcombine.low %v757_v14, %v761_v16  ;;  %v92_v23 = vld [vmem:[#allocation2 + $0x38] sm:$0xff] }
  0xe9   :  { %v189_v22 = vld [vmem:[#allocation2 + $0x340] sm:$0xff]  ;;  %3507 = vmatpush1.bf16.msra.mxu1 %v6887_v43  ;;  %v282_v43 = vld [vmem:[#allocation4 + $0x28] sm:$0xff] }
  0xea   :  { %v185_v24 = vld [vmem:[#allocation2 + $0x320] sm:$0xff]  ;;  %v8365_v39 = vpack.c.bf16 %v189_v22, %v181_v19  ;;  %3732 = vmatprep.subr.bf16.mxu0 %v7144_v37  ;;  %v96_v22 = vld [vmem:[#allocation2 + $0x58] sm:$0xff] }
  0xeb   :  { %v193_v29 = vld [vmem:[#allocation2 + $0x360] sm:$0xff]  ;;  %3733 = vmatpush1.bf16.msra.mxu0 %v7143_v50  ;;  %v8383_v40 = vpack.c.bf16 %v96_v22, %v88_v17  ;;  %v294_v22 = vld [vmem:[#allocation4 + $0x88] sm:$0xff] }
  0xec   :  { %v509_v33 = vld [vmem:[#allocation4 + $0x740] sm:$0xff]  ;;  %v8367_v44 = vpack.c.bf16 %v193_v29, %v185_v24  ;;  %3462 = vmatmul.mubr.bf16.gmra.mrb[24].mxu1 %v8365_v39  ;;  %v100_v24 = vld [vmem:[#allocation2 + $0x78] sm:$0xff] }
  0xed   :  { %v513_v34 = vld [vmem:[#allocation4 + $0x760] sm:$0xff]  ;;  %3471 = vmatprep.mubr.bf16.mxu1 %v8369_v51  ;;  %v8385_v41 = vpack.c.bf16 %v100_v24, %v92_v23  ;;  %v298_v23 = vld [vmem:[#allocation4 + $0xa8] sm:$0xff]  ;;  %v295_v24 = vld [vmem:[#allocation4 + $0x90] sm:$0xff] }
  0xee   :  { %9134 = vst [vmem:[#allocation27_spill] sm:$0xff] %v8367_v44  ;;  %v765_v45 = vld [vmem:[#allocation4 + $0xf40] sm:$0xff]  ;;  %v6896_v48 = vcombine.high %v509_v33, %v513_v34  ;;  %3688 = vmatmul.mubr.bf16.gmra.mrb[24].mxu0 %v8367_v44  ;;  %v6895_v2 = vcombine.low %v509_v33, %v513_v34  ;;  %v279_v33 = vld [vmem:[#allocation4 + $0x10] sm:$0xff] }
  0xef   :  { %v769_v46 = vld [vmem:[#allocation4 + $0xf60] sm:$0xff]  ;;  %3697 = vmatprep.mubr.bf16.mxu0 %v8371_v52  ;;  %v283_v34 = vld [vmem:[#allocation4 + $0x30] sm:$0xff]  ;;  %9137 = vst [vmem:[#allocation30_spill] sm:$0xff] %v8385_v41 }
  0xf0   :  { %v517_v55 = vld [vmem:[#allocation4 + $0x780] sm:$0xff]  ;;  %v7152_v59 = vcombine.high %v765_v45, %v769_v46  ;;  %3508 = vmatprep.subr.bf16.mxu1 %v6896_v48  ;;  %v7151_v11 = vcombine.low %v765_v45, %v769_v46  ;;  %v87_v45 = vld [vmem:[#allocation2 + $0x10] sm:$0xff]  ;;  %v6668_v50 = vcombine.high %v279_v33, %v283_v34 }
  0xf1   :  { %v521_v56 = vld [vmem:[#allocation4 + $0x7a0] sm:$0xff]  ;;  %3509 = vmatpush1.bf16.msra.mxu1 %v6895_v2  ;;  %v95_v46 = vld [vmem:[#allocation2 + $0x50] sm:$0xff]  ;;  %v6666_v2 = vcombine.high %v278_v42, %v282_v43 }
  0xf2   :  { %v773_v1 = vld [vmem:[#allocation4 + $0xf80] sm:$0xff]  ;;  %v6904_v6 = vcombine.high %v517_v55, %v521_v56  ;;  %3734 = vmatprep.subr.bf16.mxu0 %v7152_v59  ;;  %v6903_v29 = vcombine.low %v517_v55, %v521_v56  ;;  %v91_v48 = vld [vmem:[#allocation2 + $0x30] sm:$0xff]  ;;  %v286_v59 = vld [vmem:[#allocation4 + $0x48] sm:$0xff] }
  0xf3   :  { %v197_v3 = vld [vmem:[#allocation2 + $0x380] sm:$0xff]  ;;  %v7160_v14 = vcombine.high %v773_v1, %v773_v1  ;;  %v7159_v16 = vcombine.low %v773_v1, %v773_v1  ;;  %3735 = vmatpush1.bf16.msra.mxu0 %v7151_v11  ;;  %v99_v56 = vld [vmem:[#allocation2 + $0x70] sm:$0xff]  ;;  %v290_v1 = vld [vmem:[#allocation4 + $0x68] sm:$0xff] }
  0xf4   :  { %v205_v5 = vld [vmem:[#allocation2 + $0x3c0] sm:$0xff]  ;;  %3510 = vmatprep.subr.bf16.mxu1 %v6904_v6  ;;  %v104_v6 = vld [vmem:[#allocation2 + $0x98] sm:$0xff]  ;;  %v6674_v17 = vcombine.high %v286_v59, %v290_v1  ;;  %v119_v44 = vld [vmem:[#allocation2 + $0x110] sm:$0xff] }
  0xf5   :  { %v201_v7 = vld [vmem:[#allocation2 + $0x3a0] sm:$0xff]  ;;  %v8377_v19 = vpack.c.bf16 %v205_v5, %v197_v3  ;;  %7167 = vmatprep.subr.msk.bf16.mxu0 %vm3344_vm0, %v7160_v14  ;;  %v3346_v38 = vsel %vm3344_vm0, %v7159_v16, 0  ;;  %3511 = vmatpush1.bf16.msra.mxu1 %v6903_v29  ;;  %v287_v3 = vld [vmem:[#allocation4 + $0x50] sm:$0xff]  ;;  %v116_v11 = vld [vmem:[#allocation2 + $0xf8] sm:$0xff]  ;;  %v8392_v14 = vpack.c.bf16 %v95_v46, %v87_v45  ;;  %v6667_v16 = vcombine.low %v279_v33, %v283_v34 }
  0xf6   :  { %v209_v8 = vld [vmem:[#allocation2 + $0x3e0] sm:$0xff]  ;;  %v291_v5 = vld [vmem:[#allocation4 + $0x70] sm:$0xff]  ;;  %v6673_v33 = vcombine.low %v286_v59, %v290_v1  ;;  %v302_v34 = vld [vmem:[#allocation4 + $0xc8] sm:$0xff] }
  0xf7   :  { %v525_v12 = vld [vmem:[#allocation4 + $0x7c0] sm:$0xff]  ;;  %v8379_v30 = vpack.c.bf16 %v209_v8, %v201_v7  ;;  %3472 = vmatmul.mubr.bf16.gmra.mrb[28].mxu1 %v8377_v19  ;;  %3737 = vmatpush1.bf16.msra.mxu0 %v3346_v38  ;;  %v112_v7 = vld [vmem:[#allocation2 + $0xd8] sm:$0xff]  ;;  %v6676_v29 = vcombine.high %v287_v3, %v291_v5  ;;  %v103_v38 = vld [vmem:[#allocation2 + $0x90] sm:$0xff] }
  0xf8   :  { %v529_v13 = vld [vmem:[#allocation4 + $0x7e0] sm:$0xff]  ;;  %3514 = vmatprep.mubr.bf16.mxu1 %v8383_v40  ;;  %v108_v8 = vld [vmem:[#allocation2 + $0xb8] sm:$0xff]  ;;  %4273 = vmatprep.subr.bf16.mxu0 %v6668_v50  ;;  %v107_v46 = vld [vmem:[#allocation2 + $0xb0] sm:$0xff]  ;;  %v6682_v50 = vcombine.high %v294_v22, %v298_v23 }
  0xf9   :  { %9136 = vst [vmem:[#allocation29_spill] sm:$0xff] %v8379_v30  ;;  %v6912_v37 = vcombine.high %v525_v12, %v529_v13  ;;  %3698 = vmatmul.mubr.bf16.gmra.mrb[28].mxu0 %v8379_v30  ;;  %v6911_v55 = vcombine.low %v525_v12, %v529_v13  ;;  %v8394_v12 = vpack.c.bf16 %v99_v56, %v91_v48  ;;  %v299_v30 = vld [vmem:[#allocation4 + $0xb0] sm:$0xff] }
  0xfa   :  { %7168 = vmatprep.mubr.msk.bf16.mxu0 %vm3319_vm1, %v8385_v41  ;;  %v6665_v13 = vcombine.low %v278_v42, %v282_v43  ;;  %v111_v41 = vld [vmem:[#allocation2 + $0xd0] sm:$0xff]  ;;  %v8399_v45 = vpack.c.bf16 %v116_v11, %v108_v8  ;;  %v306_v42 = vld [vmem:[#allocation4 + $0xe8] sm:$0xff]  ;;  %v6675_v43 = vcombine.low %v287_v3, %v291_v5  ;;  %v124_v8 = vld [vmem:[#allocation2 + $0x138] sm:$0xff]  ;;  %v6681_v3 = vcombine.low %v294_v22, %v298_v23 }
  0xfb   :  { %3512 = vmatprep.subr.bf16.mxu1 %v6912_v37  ;;  %9138 = vst [vmem:[#allocation31_spill] sm:$0xff] %v8394_v12  ;;  %v8396_v37 = vpack.c.bf16 %v112_v7, %v104_v6  ;;  %v115_v48 = vld [vmem:[#allocation2 + $0xf0] sm:$0xff]  ;;  %v128_v6 = vld [vmem:[#allocation2 + $0x158] sm:$0xff]  ;;  %v6684_v7 = vcombine.high %v295_v24, %v299_v30  ;;  %v8405_v59 = vpack.c.bf16 %v111_v41, %v103_v38  ;;  %v318_v23 = vld [vmem:[#allocation4 + $0x148] sm:$0xff] }
  0xfc   :  { %3513 = vmatpush1.bf16.msra.mxu1 %v6911_v55  ;;  %9140 = vst [vmem:[#allocation33_spill] sm:$0xff] %v8399_v45  ;;  %v303_v55 = vld [vmem:[#allocation4 + $0xd0] sm:$0xff]  ;;  %v132_v11 = vld [vmem:[#allocation2 + $0x178] sm:$0xff]  ;;  %v8407_v1 = vpack.c.bf16 %v115_v48, %v107_v46  ;;  %v6683_v5 = vcombine.low %v295_v24, %v299_v30  ;;  %v6689_v30 = vcombine.low %v302_v34, %v306_v42  ;;  %v322_v24 = vld [vmem:[#allocation4 + $0x168] sm:$0xff] }
  0xfd   :  { %3821 = vmatprep.subr.bf16.mxu1 %v6666_v2  ;;  %9139 = vst [vmem:[#allocation32_spill] sm:$0xff] %v8396_v37  ;;  %v307_v56 = vld [vmem:[#allocation4 + $0xf0] sm:$0xff]  ;;  %v120_v2 = vld [vmem:[#allocation2 + $0x118] sm:$0xff]  ;;  %9141 = vst [vmem:[#allocation34_spill] sm:$0xff] %v8405_v59  ;;  %v8412_v41 = vpack.c.bf16 %v132_v11, %v124_v8  ;;  %v6706_v11 = vcombine.high %v318_v23, %v322_v24 }
  0xfe   :  { %9142 = vst [vmem:[#allocation35_spill] sm:$0xff] %v8407_v1  ;;  %v8409_v52 = vpack.c.bf16 %v128_v6, %v120_v2  ;;  %v123_v38 = vld [vmem:[#allocation2 + $0x130] sm:$0xff]  ;;  %v6691_v46 = vcombine.low %v303_v55, %v307_v56  ;;  %v144_v2 = vld [vmem:[#allocation2 + $0x1d8] sm:$0xff] }
  0xff   :  { %3515 = vmatmul.mubr.bf16.vlgmr.msra.gmra.mrb[0].mxu1 %v8392_v14  ;;  %9144 = vst [vmem:[#allocation37_spill] sm:$0xff] %v8412_v41  ;;  %v131_v22 = vld [vmem:[#allocation2 + $0x170] sm:$0xff]  ;;  %v148_v8 = vld [vmem:[#allocation2 + $0x1f8] sm:$0xff] }
 0x100   :  { %3822 = vmatpush1.bf16.msra.mxu1 %v6665_v13  ;;  %3524 = vmatprep.mubr.bf16.mxu1 %v8396_v37  ;;  %v6690_v13 = vcombine.high %v302_v34, %v306_v42  ;;  %9143 = vst [vmem:[#allocation36_spill] sm:$0xff] %v8409_v52  ;;  %v8418_v34 = vpack.c.bf16 %v127_v10, %v119_v44  ;;  %v139_v44 = vld [vmem:[#allocation2 + $0x1b0] sm:$0xff] }
 0x101   :  { %3741 = vmatmul.mubr.bf16.vlgmr.msra.gmra.mrb[0].mxu0 %v8394_v12  ;;  %3823 = vmatprep.subr.bf16.mxu1 %v6674_v17  ;;  %v314_v17 = vld [vmem:[#allocation4 + $0x128] sm:$0xff]  ;;  %v6692_v12 = vcombine.high %v303_v55, %v307_v56  ;;  %v8420_v42 = vpack.c.bf16 %v131_v22, %v123_v38 }
 0x102   :  { %4274 = vmatpush1.bf16.msra.mxu0 %v6667_v16  ;;  %7169 = vmatprep.mubr.msk.bf16.mxu0 %vm3319_vm1, %v8399_v45  ;;  %v310_v16 = vld [vmem:[#allocation4 + $0x108] sm:$0xff]  ;;  %v315_v45 = vld [vmem:[#allocation4 + $0x130] sm:$0xff]  ;;  %9145 = vst [vmem:[#allocation38_spill] sm:$0xff] %v8418_v34 }
 0x103   :  { %4275 = vmatprep.subr.bf16.mxu0 %v6676_v29  ;;  %v311_v29 = vld [vmem:[#allocation4 + $0x110] sm:$0xff]  ;;  %v6698_v48 = vcombine.high %v310_v16, %v314_v17  ;;  %9146 = vst [vmem:[#allocation39_spill] sm:$0xff] %v8420_v42  ;;  %v6697_v55 = vcombine.low %v310_v16, %v314_v17  ;;  %v334_v17 = vld [vmem:[#allocation4 + $0x1c8] sm:$0xff] }
 0x104   :  { %3824 = vmatpush1.bf16.msra.mxu1 %v6673_v33  ;;  %v319_v33 = vld [vmem:[#allocation4 + $0x150] sm:$0xff]  ;;  %v6700_v6 = vcombine.high %v311_v29, %v315_v45  ;;  %v6699_v56 = vcombine.low %v311_v29, %v315_v45  ;;  %v6705_v45 = vcombine.low %v318_v23, %v322_v24  ;;  %v338_v29 = vld [vmem:[#allocation4 + $0x1e8] sm:$0xff]  ;;  %v8431_v23 = vpack.c.bf16 %v143_v36, %v135_v4 }
 0x105   :  { %3825 = vmatprep.subr.bf16.mxu1 %v6682_v50  ;;  %v136_v50 = vld [vmem:[#allocation2 + $0x198] sm:$0xff]  ;;  %v147_v16 = vld [vmem:[#allocation2 + $0x1f0] sm:$0xff] }
 0x106   :  { %4276 = vmatpush1.bf16.msra.mxu0 %v6675_v43  ;;  %v323_v43 = vld [vmem:[#allocation4 + $0x170] sm:$0xff]  ;;  %9149 = vst [vmem:[#allocation42_spill] sm:$0xff] %v8431_v23  ;;  %v8433_v24 = vpack.c.bf16 %v147_v16, %v139_v44 }
 0x107   :  { %4277 = vmatprep.subr.bf16.mxu0 %v6684_v7  ;;  %3525 = vmatmul.mubr.bf16.gmra.mrb[4].mxu1 %v8405_v59  ;;  %v140_v7 = vld [vmem:[#allocation2 + $0x1b8] sm:$0xff]  ;;  %v6707_v38 = vcombine.low %v319_v33, %v323_v43  ;;  %v155_v4 = vld [vmem:[#allocation2 + $0x230] sm:$0xff] }
 0x108   :  { %3826 = vmatpush1.bf16.msra.mxu1 %v6681_v3  ;;  %3534 = vmatprep.mubr.bf16.mxu1 %v8409_v52  ;;  %v326_v3 = vld [vmem:[#allocation4 + $0x188] sm:$0xff]  ;;  %v8425_v10 = vpack.c.bf16 %v148_v8, %v140_v7  ;;  %v164_v7 = vld [vmem:[#allocation2 + $0x278] sm:$0xff]  ;;  %9150 = vst [vmem:[#allocation43_spill] sm:$0xff] %v8433_v24  ;;  %v6722_v8 = vcombine.high %v334_v17, %v338_v29 }
 0x109   :  { %3751 = vmatmul.mubr.bf16.gmra.mrb[4].mxu0 %v8407_v1  ;;  %3827 = vmatprep.subr.bf16.mxu1 %v6690_v13  ;;  %v6708_v13 = vcombine.high %v319_v33, %v323_v43  ;;  %v8422_v1 = vpack.c.bf16 %v144_v2, %v136_v50  ;;  %v160_v50 = vld [vmem:[#allocation2 + $0x258] sm:$0xff] }
 0x10a   :  { %4278 = vmatpush1.bf16.msra.mxu0 %v6683_v5  ;;  %7170 = vmatprep.mubr.msk.bf16.mxu0 %vm3319_vm1, %v8412_v41  ;;  %v327_v5 = vld [vmem:[#allocation4 + $0x190] sm:$0xff]  ;;  %9148 = vst [vmem:[#allocation41_spill] sm:$0xff] %v8425_v10 }
 0x10b   :  { %4279 = vmatprep.subr.bf16.mxu0 %v6692_v12  ;;  %v330_v12 = vld [vmem:[#allocation4 + $0x1a8] sm:$0xff]  ;;  %9147 = vst [vmem:[#allocation40_spill] sm:$0xff] %v8422_v1  ;;  %v331_v41 = vld [vmem:[#allocation4 + $0x1b0] sm:$0xff] }
 0x10c   :  { %3828 = vmatpush1.bf16.msra.mxu1 %v6689_v30  ;;  %v6714_v22 = vcombine.high %v326_v3, %v330_v12  ;;  %v335_v30 = vld [vmem:[#allocation4 + $0x1d0] sm:$0xff]  ;;  %v6716_v2 = vcombine.high %v327_v5, %v331_v41  ;;  %v6713_v33 = vcombine.low %v326_v3, %v330_v12  ;;  %v6715_v43 = vcombine.low %v327_v5, %v331_v41  ;;  %v350_v12 = vld [vmem:[#allocation4 + $0x248] sm:$0xff] }
 0x10d   :  { %3829 = vmatprep.subr.bf16.mxu1 %v6698_v48  ;;  %v152_v48 = vld [vmem:[#allocation2 + $0x218] sm:$0xff]  ;;  %v163_v3 = vld [vmem:[#allocation2 + $0x270] sm:$0xff]  ;;  %v6721_v41 = vcombine.low %v334_v17, %v338_v29  ;;  %v354_v5 = vld [vmem:[#allocation4 + $0x268] sm:$0xff]  ;;  %v8444_v17 = vpack.c.bf16 %v159_v0, %v151_v25 }
 0x10e   :  { %4280 = vmatpush1.bf16.msra.mxu0 %v6691_v46  ;;  %v339_v46 = vld [vmem:[#allocation4 + $0x1f0] sm:$0xff]  ;;  %v8446_v29 = vpack.c.bf16 %v163_v3, %v155_v4 }
 0x10f   :  { %4281 = vmatprep.subr.bf16.mxu0 %v6700_v6  ;;  %3535 = vmatmul.mubr.bf16.gmra.mrb[8].mxu1 %v8418_v34  ;;  %v156_v6 = vld [vmem:[#allocation2 + $0x238] sm:$0xff]  ;;  %v6723_v44 = vcombine.low %v335_v30, %v339_v46  ;;  %9153 = vst [vmem:[#allocation46_spill] sm:$0xff] %v8444_v17  ;;  %v171_v25 = vld [vmem:[#allocation2 + $0x2b0] sm:$0xff] }
 0x110   :  { %3830 = vmatpush1.bf16.msra.mxu1 %v6697_v55  ;;  %3544 = vmatprep.mubr.bf16.mxu1 %v8422_v1  ;;  %v342_v55 = vld [vmem:[#allocation4 + $0x208] sm:$0xff]  ;;  %v8438_v36 = vpack.c.bf16 %v164_v7, %v156_v6  ;;  %v180_v6 = vld [vmem:[#allocation2 + $0x2f8] sm:$0xff]  ;;  %9154 = vst [vmem:[#allocation47_spill] sm:$0xff] %v8446_v29  ;;  %v6738_v7 = vcombine.high %v350_v12, %v354_v5 }
 0x111   :  { %3761 = vmatmul.mubr.bf16.gmra.mrb[8].mxu0 %v8420_v42  ;;  %3831 = vmatprep.subr.bf16.mxu1 %v6706_v11  ;;  %v343_v11 = vld [vmem:[#allocation4 + $0x210] sm:$0xff]  ;;  %v8435_v42 = vpack.c.bf16 %v160_v50, %v152_v48  ;;  %v176_v48 = vld [vmem:[#allocation2 + $0x2d8] sm:$0xff] }
 0x112   :  { %4282 = vmatpush1.bf16.msra.mxu0 %v6699_v56  ;;  %7171 = vmatprep.mubr.msk.bf16.mxu0 %vm3319_vm1, %v8425_v10  ;;  %v346_v56 = vld [vmem:[#allocation4 + $0x228] sm:$0xff]  ;;  %v347_v10 = vld [vmem:[#allocation4 + $0x230] sm:$0xff]  ;;  %9152 = vst [vmem:[#allocation45_spill] sm:$0xff] %v8438_v36 }
 0x113   :  { %4283 = vmatprep.subr.bf16.mxu0 %v6708_v13  ;;  %v6724_v13 = vcombine.high %v335_v30, %v339_v46  ;;  %9151 = vst [vmem:[#allocation44_spill] sm:$0xff] %v8435_v42  ;;  %v6730_v16 = vcombine.high %v342_v55, %v346_v56  ;;  %v6732_v50 = vcombine.high %v343_v11, %v347_v10 }
 0x114   :  { %3832 = vmatpush1.bf16.msra.mxu1 %v6705_v45  ;;  %v351_v45 = vld [vmem:[#allocation4 + $0x250] sm:$0xff]  ;;  %v6729_v30 = vcombine.low %v342_v55, %v346_v56  ;;  %v6731_v46 = vcombine.low %v343_v11, %v347_v10  ;;  %v6737_v10 = vcombine.low %v350_v12, %v354_v5  ;;  %v366_v56 = vld [vmem:[#allocation4 + $0x2c8] sm:$0xff]  ;;  %v8457_v12 = vpack.c.bf16 %v175_v28, %v167_v53 }
 0x115   :  { %3833 = vmatprep.subr.bf16.mxu1 %v6714_v22  ;;  %v168_v22 = vld [vmem:[#allocation2 + $0x298] sm:$0xff]  ;;  %v179_v55 = vld [vmem:[#allocation2 + $0x2f0] sm:$0xff]  ;;  %v370_v11 = vld [vmem:[#allocation4 + $0x2e8] sm:$0xff] }
 0x116   :  { %4284 = vmatpush1.bf16.msra.mxu0 %v6707_v38  ;;  %v355_v38 = vld [vmem:[#allocation4 + $0x270] sm:$0xff]  ;;  %9157 = vst [vmem:[#allocation50_spill] sm:$0xff] %v8457_v12  ;;  %v8459_v5 = vpack.c.bf16 %v179_v55, %v171_v25 }
 0x117   :  { %4285 = vmatprep.subr.bf16.mxu0 %v6716_v2  ;;  %3545 = vmatmul.mubr.bf16.gmra.mrb[12].mxu1 %v8431_v23  ;;  %v172_v2 = vld [vmem:[#allocation2 + $0x2b8] sm:$0xff]  ;;  %v6739_v4 = vcombine.low %v351_v45, %v355_v38  ;;  %v187_v53 = vld [vmem:[#allocation2 + $0x330] sm:$0xff] }
 0x118   :  { %3834 = vmatpush1.bf16.msra.mxu1 %v6713_v33  ;;  %3554 = vmatprep.mubr.bf16.mxu1 %v8435_v42  ;;  %v358_v33 = vld [vmem:[#allocation4 + $0x288] sm:$0xff]  ;;  %v8451_v0 = vpack.c.bf16 %v180_v6, %v172_v2  ;;  %v196_v2 = vld [vmem:[#allocation2 + $0x378] sm:$0xff]  ;;  %9158 = vst [vmem:[#allocation51_spill] sm:$0xff] %v8459_v5  ;;  %v6754_v6 = vcombine.high %v366_v56, %v370_v11 }
 0x119   :  { %3771 = vmatmul.mubr.bf16.gmra.mrb[12].mxu0 %v8433_v24  ;;  %3835 = vmatprep.subr.bf16.mxu1 %v6722_v8  ;;  %v359_v8 = vld [vmem:[#allocation4 + $0x290] sm:$0xff]  ;;  %v8448_v24 = vpack.c.bf16 %v176_v48, %v168_v22  ;;  %v192_v22 = vld [vmem:[#allocation2 + $0x358] sm:$0xff] }
 0x11a   :  { %4286 = vmatpush1.bf16.msra.mxu0 %v6715_v43  ;;  %7172 = vmatprep.mubr.msk.bf16.mxu0 %vm3319_vm1, %v8438_v36  ;;  %v362_v43 = vld [vmem:[#allocation4 + $0x2a8] sm:$0xff]  ;;  %v363_v36 = vld [vmem:[#allocation4 + $0x2b0] sm:$0xff]  ;;  %9156 = vst [vmem:[#allocation49_spill] sm:$0xff] %v8451_v0 }
 0x11b   :  { %4287 = vmatprep.subr.bf16.mxu0 %v6724_v13  ;;  %v6740_v13 = vcombine.high %v351_v45, %v355_v38  ;;  %9155 = vst [vmem:[#allocation48_spill] sm:$0xff] %v8448_v24  ;;  %v6746_v3 = vcombine.high %v358_v33, %v362_v43  ;;  %v6748_v48 = vcombine.high %v359_v8, %v363_v36 }
 0x11c   :  { %3836 = vmatpush1.bf16.msra.mxu1 %v6721_v41  ;;  %v367_v41 = vld [vmem:[#allocation4 + $0x2d0] sm:$0xff]  ;;  %v6745_v45 = vcombine.low %v358_v33, %v362_v43  ;;  %v6747_v38 = vcombine.low %v359_v8, %v363_v36  ;;  %v6753_v36 = vcombine.low %v366_v56, %v370_v11  ;;  %v382_v43 = vld [vmem:[#allocation4 + $0x348] sm:$0xff]  ;;  %v8470_v56 = vpack.c.bf16 %v191_v61, %v183_v20 }
 0x11d   :  { %3837 = vmatprep.subr.bf16.mxu1 %v6730_v16  ;;  %v184_v16 = vld [vmem:[#allocation2 + $0x318] sm:$0xff]  ;;  %v195_v33 = vld [vmem:[#allocation2 + $0x370] sm:$0xff]  ;;  %v386_v8 = vld [vmem:[#allocation4 + $0x368] sm:$0xff] }
 0x11e   :  { %4288 = vmatpush1.bf16.msra.mxu0 %v6723_v44  ;;  %v371_v44 = vld [vmem:[#allocation4 + $0x2f0] sm:$0xff]  ;;  %9161 = vst [vmem:[#allocation54_spill] sm:$0xff] %v8470_v56  ;;  %v8472_v11 = vpack.c.bf16 %v195_v33, %v187_v53  ;;  %v398_v53 = vld [vmem:[#allocation4 + $0x3c8] sm:$0xff] }
 0x11f   :  { %4289 = vmatprep.subr.bf16.mxu0 %v6732_v50  ;;  %3555 = vmatmul.mubr.bf16.gmra.mrb[16].mxu1 %v8444_v17  ;;  %v188_v50 = vld [vmem:[#allocation2 + $0x338] sm:$0xff]  ;;  %v6755_v25 = vcombine.low %v367_v41, %v371_v44  ;;  %v203_v20 = vld [vmem:[#allocation2 + $0x3b0] sm:$0xff]  ;;  %v402_v33 = vld [vmem:[#allocation4 + $0x3e8] sm:$0xff] }
 0x120   :  { %3838 = vmatpush1.bf16.msra.mxu1 %v6729_v30  ;;  %3564 = vmatprep.mubr.bf16.mxu1 %v8448_v24  ;;  %v374_v30 = vld [vmem:[#allocation4 + $0x308] sm:$0xff]  ;;  %v8464_v28 = vpack.c.bf16 %v196_v2, %v188_v50  ;;  %v212_v50 = vld [vmem:[#allocation2 + $0x3f8] sm:$0xff]  ;;  %v6770_v2 = vcombine.high %v382_v43, %v386_v8 }
 0x121   :  { %3781 = vmatmul.mubr.bf16.gmra.mrb[16].mxu0 %v8446_v29  ;;  %3839 = vmatprep.subr.bf16.mxu1 %v6738_v7  ;;  %v375_v7 = vld [vmem:[#allocation4 + $0x310] sm:$0xff]  ;;  %v8461_v29 = vpack.c.bf16 %v192_v22, %v184_v16  ;;  %v208_v16 = vld [vmem:[#allocation2 + $0x3d8] sm:$0xff] }
 0x122   :  { %4290 = vmatpush1.bf16.msra.mxu0 %v6731_v46  ;;  %7173 = vmatprep.mubr.msk.bf16.mxu0 %vm3319_vm1, %v8451_v0  ;;  %v378_v46 = vld [vmem:[#allocation4 + $0x328] sm:$0xff]  ;;  %v379_v0 = vld [vmem:[#allocation4 + $0x330] sm:$0xff]  ;;  %9160 = vst [vmem:[#allocation53_spill] sm:$0xff] %v8464_v28 }
 0x123   :  { %4291 = vmatprep.subr.bf16.mxu0 %v6740_v13  ;;  %v6756_v13 = vcombine.high %v367_v41, %v371_v44  ;;  %9159 = vst [vmem:[#allocation52_spill] sm:$0xff] %v8461_v29  ;;  %v6762_v55 = vcombine.high %v374_v30, %v378_v46  ;;  %v6764_v22 = vcombine.high %v375_v7, %v379_v0 }
 0x124   :  { %3840 = vmatpush1.bf16.msra.mxu1 %v6737_v10  ;;  %v383_v10 = vld [vmem:[#allocation4 + $0x350] sm:$0xff]  ;;  %v6761_v41 = vcombine.low %v374_v30, %v378_v46  ;;  %v6763_v44 = vcombine.low %v375_v7, %v379_v0  ;;  %v6769_v0 = vcombine.low %v382_v43, %v386_v8 }
 0x125   :  { %3841 = vmatprep.subr.bf16.mxu1 %v6746_v3  ;;  %v200_v3 = vld [vmem:[#allocation2 + $0x398] sm:$0xff]  ;;  %v211_v30 = vld [vmem:[#allocation2 + $0x3f0] sm:$0xff] }
 0x126   :  { %4292 = vmatpush1.bf16.msra.mxu0 %v6739_v4  ;;  %v387_v4 = vld [vmem:[#allocation4 + $0x370] sm:$0xff] }
 0x127   :  { %4293 = vmatprep.subr.bf16.mxu0 %v6748_v48  ;;  %3565 = vmatmul.mubr.bf16.gmra.mrb[20].mxu1 %v8457_v12  ;;  %v204_v48 = vld [vmem:[#allocation2 + $0x3b8] sm:$0xff]  ;;  %v6771_v46 = vcombine.low %v383_v10, %v387_v4 }
 0x128   :  { %3842 = vmatpush1.bf16.msra.mxu1 %v6745_v45  ;;  %3574 = vmatprep.mubr.bf16.mxu1 %v8461_v29  ;;  %v390_v45 = vld [vmem:[#allocation4 + $0x388] sm:$0xff]  ;;  %v8477_v61 = vpack.c.bf16 %v212_v50, %v204_v48  ;;  %v407_v48 = vld [vmem:[#allocation4 + $0x410] sm:$0xff] }
 0x129   :  { %3791 = vmatmul.mubr.bf16.gmra.mrb[20].mxu0 %v8459_v5  ;;  %3843 = vmatprep.subr.bf16.mxu1 %v6754_v6  ;;  %v391_v6 = vld [vmem:[#allocation4 + $0x390] sm:$0xff]  ;;  %v8474_v5 = vpack.c.bf16 %v208_v16, %v200_v3  ;;  %v8483_v3 = vpack.c.bf16 %v207_v32, %v199_v54  ;;  %v8485_v16 = vpack.c.bf16 %v211_v30, %v203_v20 }
 0x12a   :  { %4294 = vmatpush1.bf16.msra.mxu0 %v6747_v38  ;;  %7174 = vmatprep.mubr.msk.bf16.mxu0 %vm3319_vm1, %v8464_v28  ;;  %v394_v38 = vld [vmem:[#allocation4 + $0x3a8] sm:$0xff]  ;;  %v395_v28 = vld [vmem:[#allocation4 + $0x3b0] sm:$0xff]  ;;  %v6785_v32 = vcombine.low %v398_v53, %v402_v33 }
 0x12b   :  { %4295 = vmatprep.subr.bf16.mxu0 %v6756_v13  ;;  %v6772_v13 = vcombine.high %v383_v10, %v387_v4  ;;  %9162 = vst [vmem:[#allocation55_spill] sm:$0xff] %v8474_v5  ;;  %v6778_v7 = vcombine.high %v390_v45, %v394_v38  ;;  %9163 = vst [vmem:[#allocation56_spill] sm:$0xff] %v8483_v3  ;;  %v6777_v43 = vcombine.low %v390_v45, %v394_v38  ;;  %v406_v4 = vld [vmem:[#allocation4 + $0x408] sm:$0xff]  ;;  %v415_v38 = vld [vmem:[#allocation4 + $0x450] sm:$0xff] }
 0x12c   :  { %3844 = vmatpush1.bf16.msra.mxu1 %v6753_v36  ;;  %v399_v36 = vld [vmem:[#allocation4 + $0x3d0] sm:$0xff]  ;;  %v6779_v8 = vcombine.low %v391_v6, %v395_v28  ;;  %v6786_v10 = vcombine.high %v398_v53, %v402_v33  ;;  %v418_v45 = vld [vmem:[#allocation4 + $0x468] sm:$0xff] }
 0x12d   :  { %3845 = vmatprep.subr.bf16.mxu1 %v6762_v55  ;;  %v403_v55 = vld [vmem:[#allocation4 + $0x3f0] sm:$0xff] }
 0x12e   :  { %4296 = vmatpush1.bf16.msra.mxu0 %v6755_v25  ;;  %v6780_v25 = vcombine.high %v391_v6, %v395_v28  ;;  %v6788_v50 = vcombine.high %v399_v36, %v403_v55  ;;  %v6787_v54 = vcombine.low %v399_v36, %v403_v55  ;;  %v419_v6 = vld [vmem:[#allocation4 + $0x470] sm:$0xff] }
 0x12f   :  { %4297 = vmatprep.subr.bf16.mxu0 %v6764_v22  ;;  %3575 = vmatmul.mubr.bf16.gmra.mrb[24].mxu1 %v8470_v56  ;;  %v410_v22 = vld [vmem:[#allocation4 + $0x428] sm:$0xff]  ;;  %v423_v53 = vld [vmem:[#allocation4 + $0x490] sm:$0xff] }
 0x130   :  { %3846 = vmatpush1.bf16.msra.mxu1 %v6761_v41  ;;  %3584 = vmatprep.mubr.bf16.mxu1 %v8474_v5  ;;  %v411_v41 = vld [vmem:[#allocation4 + $0x430] sm:$0xff] }
 0x131   :  { %3801 = vmatmul.mubr.bf16.gmra.mrb[24].mxu0 %v8472_v11  ;;  %3847 = vmatprep.subr.bf16.mxu1 %v6770_v2  ;;  %v414_v2 = vld [vmem:[#allocation4 + $0x448] sm:$0xff]  ;;  %v6796_v28 = vcombine.high %v407_v48, %v411_v41  ;;  %v6795_v20 = vcombine.low %v407_v48, %v411_v41  ;;  %v427_v33 = vld [vmem:[#allocation4 + $0x4b0] sm:$0xff] }
 0x132   :  { %4298 = vmatpush1.bf16.msra.mxu0 %v6763_v44  ;;  %7175 = vmatprep.mubr.msk.bf16.mxu0 %vm3319_vm1, %v8477_v61  ;;  %v6794_v44 = vcombine.high %v406_v4, %v410_v22  ;;  %v6802_v30 = vcombine.high %v414_v2, %v418_v45  ;;  %v6801_v36 = vcombine.low %v414_v2, %v418_v45  ;;  %v439_v2 = vld [vmem:[#allocation4 + $0x510] sm:$0xff] }
 0x133   :  { %4299 = vmatprep.subr.bf16.mxu0 %v6772_v13  ;;  %v6793_v13 = vcombine.low %v406_v4, %v410_v22  ;;  %v431_v4 = vld [vmem:[#allocation4 + $0x4d0] sm:$0xff] }
 0x134   :  { %3848 = vmatpush1.bf16.msra.mxu1 %v6769_v0  ;;  %v6804_v0 = vcombine.high %v415_v38, %v419_v6  ;;  %v435_v22 = vld [vmem:[#allocation4 + $0x4f0] sm:$0xff] }
 0x135   :  { %3849 = vmatprep.subr.bf16.mxu1 %v6778_v7  ;;  %v426_v7 = vld [vmem:[#allocation4 + $0x4a8] sm:$0xff] }
 0x136   :  { %4300 = vmatpush1.bf16.msra.mxu0 %v6771_v46  ;;  %v422_v46 = vld [vmem:[#allocation4 + $0x488] sm:$0xff] }
 0x137   :  { %4301 = vmatprep.subr.bf16.mxu0 %v6780_v25  ;;  %3585 = vmatmul.mubr.bf16.gmra.mrb[28].mxu1 %v8483_v3  ;;  %v6803_v25 = vcombine.low %v415_v38, %v419_v6  ;;  %v6810_v55 = vcombine.high %v422_v46, %v426_v7  ;;  %v6809_v48 = vcombine.low %v422_v46, %v426_v7  ;;  %v451_v46 = vld [vmem:[#allocation4 + $0x570] sm:$0xff] }
 0x138   :  { %3850 = vmatpush1.bf16.msra.mxu1 %v6777_v43  ;;  %3853 = vmatprep.mubr.bf16.mxu1 %v8287_v58  ;;  %v6812_v43 = vcombine.high %v423_v53, %v427_v33  ;;  %v6819_v38 = vcombine.low %v431_v4, %v435_v22 }
 0x139   :  { %3811 = vmatmul.mubr.bf16.gmra.mrb[28].mxu0 %v8485_v16  ;;  %3851 = vmatprep.subr.bf16.mxu1 %v6786_v10  ;;  %v434_v10 = vld [vmem:[#allocation4 + $0x4e8] sm:$0xff] }
 0x13a   :  { %4302 = vmatpush1.bf16.msra.mxu0 %v6779_v8  ;;  %4305 = vmatprep.mubr.bf16.mxu0 %v8287_v58  ;;  %v430_v8 = vld [vmem:[#allocation4 + $0x4c8] sm:$0xff] }
 0x13b   :  { %4303 = vmatprep.subr.bf16.mxu0 %v6788_v50  ;;  %v6811_v50 = vcombine.low %v423_v53, %v427_v33  ;;  %v6818_v41 = vcombine.high %v430_v8, %v434_v10  ;;  %v6817_v45 = vcombine.low %v430_v8, %v434_v10  ;;  %v459_v8 = vld [vmem:[#allocation4 + $0x5b0] sm:$0xff] }
 0x13c   :  { %3852 = vmatpush1.bf16.msra.mxu1 %v6785_v32  ;;  %v6820_v32 = vcombine.high %v431_v4, %v435_v22 }
 0x13d   :  { %3934 = vmatprep.subr.bf16.mxu1 %v6794_v44  ;;  %v442_v44 = vld [vmem:[#allocation4 + $0x528] sm:$0xff] }
 0x13e   :  { %4304 = vmatpush1.bf16.msra.mxu0 %v6787_v54  ;;  %v438_v54 = vld [vmem:[#allocation4 + $0x508] sm:$0xff] }
 0x13f   :  { %4386 = vmatprep.subr.bf16.mxu0 %v6796_v28  ;;  %3854 = vmatmul.mubr.bf16.vlgmr.msra.gmra.mrb[32].mxu1 %v8293_v21  ;;  %v443_v28 = vld [vmem:[#allocation4 + $0x530] sm:$0xff]  ;;  %v6826_v6 = vcombine.high %v438_v54, %v442_v44  ;;  %v6825_v7 = vcombine.low %v438_v54, %v442_v44 }
 0x140   :  { %3935 = vmatpush1.bf16.msra.mxu1 %v6793_v13  ;;  %3863 = vmatprep.mubr.bf16.mxu1 %v8297_v31  ;;  %v6828_v13 = vcombine.high %v439_v2, %v443_v28  ;;  %v6827_v53 = vcombine.low %v439_v2, %v443_v28  ;;  %v467_v54 = vld [vmem:[#allocation4 + $0x5f0] sm:$0xff] }
 0x141   :  { %4306 = vmatmul.mubr.bf16.vlgmr.msra.gmra.mrb[32].mxu0 %v8293_v21  ;;  %3936 = vmatprep.subr.bf16.mxu1 %v6802_v30  ;;  %v450_v30 = vld [vmem:[#allocation4 + $0x568] sm:$0xff] }
 0x142   :  { %4387 = vmatpush1.bf16.msra.mxu0 %v6795_v20  ;;  %4315 = vmatprep.mubr.bf16.mxu0 %v8297_v31  ;;  %v446_v20 = vld [vmem:[#allocation4 + $0x548] sm:$0xff] }
 0x143   :  { %4388 = vmatprep.subr.bf16.mxu0 %v6804_v0  ;;  %v447_v0 = vld [vmem:[#allocation4 + $0x550] sm:$0xff]  ;;  %v6834_v33 = vcombine.high %v446_v20, %v450_v30  ;;  %v6833_v10 = vcombine.low %v446_v20, %v450_v30 }
 0x144   :  { %3937 = vmatpush1.bf16.msra.mxu1 %v6801_v36  ;;  %v6836_v36 = vcombine.high %v447_v0, %v451_v46  ;;  %v6835_v4 = vcombine.low %v447_v0, %v451_v46  ;;  %v475_v20 = vld [vmem:[#allocation4 + $0x630] sm:$0xff] }
 0x145   :  { %3938 = vmatprep.subr.bf16.mxu1 %v6810_v55  ;;  %v458_v55 = vld [vmem:[#allocation4 + $0x5a8] sm:$0xff] }
 0x146   :  { %4389 = vmatpush1.bf16.msra.mxu0 %v6803_v25  ;;  %v454_v25 = vld [vmem:[#allocation4 + $0x588] sm:$0xff] }
 0x147   :  { %4390 = vmatprep.subr.bf16.mxu0 %v6812_v43  ;;  %3864 = vmatmul.mubr.bf16.gmra.mrb[36].mxu1 %v8305_v49  ;;  %v455_v43 = vld [vmem:[#allocation4 + $0x590] sm:$0xff]  ;;  %v6842_v22 = vcombine.high %v454_v25, %v458_v55  ;;  %v6841_v44 = vcombine.low %v454_v25, %v458_v55 }
 0x148   :  { %3939 = vmatpush1.bf16.msra.mxu1 %v6809_v48  ;;  %3873 = vmatprep.mubr.bf16.mxu1 %v8309_v60  ;;  %v6844_v48 = vcombine.high %v455_v43, %v459_v8  ;;  %v6843_v2 = vcombine.low %v455_v43, %v459_v8  ;;  %v483_v25 = vld [vmem:[#allocation4 + $0x670] sm:$0xff] }
 0x149   :  { %4316 = vmatmul.mubr.bf16.gmra.mrb[36].mxu0 %v8305_v49  ;;  %3940 = vmatprep.subr.bf16.mxu1 %v6818_v41  ;;  %v466_v41 = vld [vmem:[#allocation4 + $0x5e8] sm:$0xff] }
 0x14a   :  { %4391 = vmatpush1.bf16.msra.mxu0 %v6811_v50  ;;  %4325 = vmatprep.mubr.bf16.mxu0 %v8309_v60  ;;  %v462_v50 = vld [vmem:[#allocation4 + $0x5c8] sm:$0xff] }
 0x14b   :  { %4392 = vmatprep.subr.bf16.mxu0 %v6820_v32  ;;  %v463_v32 = vld [vmem:[#allocation4 + $0x5d0] sm:$0xff]  ;;  %v6850_v28 = vcombine.high %v462_v50, %v466_v41  ;;  %v6849_v30 = vcombine.low %v462_v50, %v466_v41 }
 0x14c   :  { %3941 = vmatpush1.bf16.msra.mxu1 %v6817_v45  ;;  %v6852_v45 = vcombine.high %v463_v32, %v467_v54  ;;  %v6851_v0 = vcombine.low %v463_v32, %v467_v54  ;;  %v491_v50 = vld [vmem:[#allocation4 + $0x6b0] sm:$0xff] }
 0x14d   :  { %3942 = vmatprep.subr.bf16.mxu1 %v6826_v6  ;;  %v474_v6 = vld [vmem:[#allocation4 + $0x628] sm:$0xff] }
 0x14e   :  { %4393 = vmatpush1.bf16.msra.mxu0 %v6819_v38  ;;  %v470_v38 = vld [vmem:[#allocation4 + $0x608] sm:$0xff] }
 0x14f   :  { %4394 = vmatprep.subr.bf16.mxu0 %v6828_v13  ;;  %3874 = vmatmul.mubr.bf16.gmra.mrb[40].mxu1 %v8317_v15  ;;  %v471_v13 = vld [vmem:[#allocation4 + $0x610] sm:$0xff]  ;;  %v6858_v46 = vcombine.high %v470_v38, %v474_v6  ;;  %v6857_v55 = vcombine.low %v470_v38, %v474_v6 }
 0x150   :  { %3943 = vmatpush1.bf16.msra.mxu1 %v6825_v7  ;;  %3883 = vmatprep.mubr.bf16.mxu1 %v8321_v27  ;;  %v6860_v7 = vcombine.high %v471_v13, %v475_v20  ;;  %v6859_v43 = vcombine.low %v471_v13, %v475_v20  ;;  %v499_v38 = vld [vmem:[#allocation4 + $0x6f0] sm:$0xff] }
 0x151   :  { %4326 = vmatmul.mubr.bf16.gmra.mrb[40].mxu0 %v8317_v15  ;;  %3944 = vmatprep.subr.bf16.mxu1 %v6834_v33  ;;  %v482_v33 = vld [vmem:[#allocation4 + $0x668] sm:$0xff] }
 0x152   :  { %4395 = vmatpush1.bf16.msra.mxu0 %v6827_v53  ;;  %4335 = vmatprep.mubr.bf16.mxu0 %v8321_v27  ;;  %v478_v53 = vld [vmem:[#allocation4 + $0x648] sm:$0xff] }
 0x153   :  { %4396 = vmatprep.subr.bf16.mxu0 %v6836_v36  ;;  %v479_v36 = vld [vmem:[#allocation4 + $0x650] sm:$0xff]  ;;  %v6866_v8 = vcombine.high %v478_v53, %v482_v33  ;;  %v6865_v41 = vcombine.low %v478_v53, %v482_v33 }
 0x154   :  { %3945 = vmatpush1.bf16.msra.mxu1 %v6833_v10  ;;  %v6868_v10 = vcombine.high %v479_v36, %v483_v25  ;;  %v6867_v32 = vcombine.low %v479_v36, %v483_v25  ;;  %v507_v53 = vld [vmem:[#allocation4 + $0x730] sm:$0xff] }
 0x155   :  { %3946 = vmatprep.subr.bf16.mxu1 %v6842_v22  ;;  %v490_v22 = vld [vmem:[#allocation4 + $0x6a8] sm:$0xff] }
 0x156   :  { %4397 = vmatpush1.bf16.msra.mxu0 %v6835_v4  ;;  %v486_v4 = vld [vmem:[#allocation4 + $0x688] sm:$0xff] }
 0x157   :  { %4398 = vmatprep.subr.bf16.mxu0 %v6844_v48  ;;  %3884 = vmatmul.mubr.bf16.gmra.mrb[44].mxu1 %v8329_v47  ;;  %v487_v48 = vld [vmem:[#allocation4 + $0x690] sm:$0xff]  ;;  %v6874_v54 = vcombine.high %v486_v4, %v490_v22  ;;  %v6873_v6 = vcombine.low %v486_v4, %v490_v22 }
 0x158   :  { %3947 = vmatpush1.bf16.msra.mxu1 %v6841_v44  ;;  %3893 = vmatprep.mubr.bf16.mxu1 %v8333_v62  ;;  %v6876_v44 = vcombine.high %v487_v48, %v491_v50  ;;  %v6875_v13 = vcombine.low %v487_v48, %v491_v50  ;;  %v515_v4 = vld [vmem:[#allocation4 + $0x770] sm:$0xff] }
 0x159   :  { %4336 = vmatmul.mubr.bf16.gmra.mrb[44].mxu0 %v8329_v47  ;;  %3948 = vmatprep.subr.bf16.mxu1 %v6850_v28  ;;  %v498_v28 = vld [vmem:[#allocation4 + $0x6e8] sm:$0xff] }
 0x15a   :  { %4399 = vmatpush1.bf16.msra.mxu0 %v6843_v2  ;;  %4345 = vmatprep.mubr.bf16.mxu0 %v8333_v62  ;;  %v494_v2 = vld [vmem:[#allocation4 + $0x6c8] sm:$0xff] }
 0x15b   :  { %4400 = vmatprep.subr.bf16.mxu0 %v6852_v45  ;;  %v495_v45 = vld [vmem:[#allocation4 + $0x6d0] sm:$0xff]  ;;  %v6882_v20 = vcombine.high %v494_v2, %v498_v28  ;;  %v6881_v33 = vcombine.low %v494_v2, %v498_v28 }
 0x15c   :  { %3949 = vmatpush1.bf16.msra.mxu1 %v6849_v30  ;;  %v6884_v30 = vcombine.high %v495_v45, %v499_v38  ;;  %v6883_v36 = vcombine.low %v495_v45, %v499_v38  ;;  %v523_v2 = vld [vmem:[#allocation4 + $0x7b0] sm:$0xff] }
 0x15d   :  { %3950 = vmatprep.subr.bf16.mxu1 %v6858_v46  ;;  %v506_v46 = vld [vmem:[#allocation4 + $0x728] sm:$0xff] }
 0x15e   :  { %4401 = vmatpush1.bf16.msra.mxu0 %v6851_v0  ;;  %v502_v0 = vld [vmem:[#allocation4 + $0x708] sm:$0xff] }
 0x15f   :  { %4402 = vmatprep.subr.bf16.mxu0 %v6860_v7  ;;  %3894 = vmatmul.mubr.bf16.gmra.mrb[48].mxu1 %v8341_v18  ;;  %v503_v7 = vld [vmem:[#allocation4 + $0x710] sm:$0xff]  ;;  %v6890_v25 = vcombine.high %v502_v0, %v506_v46  ;;  %v6889_v22 = vcombine.low %v502_v0, %v506_v46 }
 0x160   :  { %3951 = vmatpush1.bf16.msra.mxu1 %v6857_v55  ;;  %3903 = vmatprep.mubr.bf16.mxu1 %v8345_v35  ;;  %v6892_v55 = vcombine.high %v503_v7, %v507_v53  ;;  %v6891_v48 = vcombine.low %v503_v7, %v507_v53  ;;  %v531_v0 = vld [vmem:[#allocation4 + $0x7f0] sm:$0xff] }
 0x161   :  { %4346 = vmatmul.mubr.bf16.gmra.mrb[48].mxu0 %v8341_v18  ;;  %3952 = vmatprep.subr.bf16.mxu1 %v6866_v8  ;;  %v514_v8 = vld [vmem:[#allocation4 + $0x768] sm:$0xff] }
 0x162   :  { %4403 = vmatpush1.bf16.msra.mxu0 %v6859_v43  ;;  %4355 = vmatprep.mubr.bf16.mxu0 %v8345_v35  ;;  %v510_v43 = vld [vmem:[#allocation4 + $0x748] sm:$0xff] }
 0x163   :  { %4404 = vmatprep.subr.bf16.mxu0 %v6868_v10  ;;  %v511_v10 = vld [vmem:[#allocation4 + $0x750] sm:$0xff]  ;;  %v6898_v50 = vcombine.high %v510_v43, %v514_v8  ;;  %v6897_v28 = vcombine.low %v510_v43, %v514_v8 }
 0x164   :  { %3953 = vmatpush1.bf16.msra.mxu1 %v6865_v41  ;;  %v6900_v41 = vcombine.high %v511_v10, %v515_v4  ;;  %v6899_v45 = vcombine.low %v511_v10, %v515_v4  ;;  %v539_v43 = vld [vmem:[#allocation4 + $0x830] sm:$0xff] }
 0x165   :  { %3954 = vmatprep.subr.bf16.mxu1 %v6874_v54  ;;  %v522_v54 = vld [vmem:[#allocation4 + $0x7a8] sm:$0xff] }
 0x166   :  { %4405 = vmatpush1.bf16.msra.mxu0 %v6867_v32  ;;  %v518_v32 = vld [vmem:[#allocation4 + $0x788] sm:$0xff] }
 0x167   :  { %4406 = vmatprep.subr.bf16.mxu0 %v6876_v44  ;;  %3904 = vmatmul.mubr.bf16.gmra.mrb[52].mxu1 %v8353_v57  ;;  %v519_v44 = vld [vmem:[#allocation4 + $0x790] sm:$0xff]  ;;  %v6906_v38 = vcombine.high %v518_v32, %v522_v54  ;;  %v6905_v46 = vcombine.low %v518_v32, %v522_v54 }
 0x168   :  { %3955 = vmatpush1.bf16.msra.mxu1 %v6873_v6  ;;  %3913 = vmatprep.mubr.bf16.mxu1 %v8357_v9  ;;  %v6908_v6 = vcombine.high %v519_v44, %v523_v2  ;;  %v6907_v7 = vcombine.low %v519_v44, %v523_v2  ;;  %v547_v32 = vld [vmem:[#allocation4 + $0x870] sm:$0xff] }
 0x169   :  { %4356 = vmatmul.mubr.bf16.gmra.mrb[52].mxu0 %v8353_v57  ;;  %3956 = vmatprep.subr.bf16.mxu1 %v6882_v20  ;;  %v530_v20 = vld [vmem:[#allocation4 + $0x7e8] sm:$0xff] }
 0x16a   :  { %4407 = vmatpush1.bf16.msra.mxu0 %v6875_v13  ;;  %4365 = vmatprep.mubr.bf16.mxu0 %v8357_v9  ;;  %v526_v13 = vld [vmem:[#allocation4 + $0x7c8] sm:$0xff] }
 0x16b   :  { %4408 = vmatprep.subr.bf16.mxu0 %v6884_v30  ;;  %v527_v30 = vld [vmem:[#allocation4 + $0x7d0] sm:$0xff]  ;;  %v6914_v53 = vcombine.high %v526_v13, %v530_v20  ;;  %v6913_v8 = vcombine.low %v526_v13, %v530_v20 }
 0x16c   :  { %3957 = vmatpush1.bf16.msra.mxu1 %v6881_v33  ;;  %v6916_v33 = vcombine.high %v527_v30, %v531_v0  ;;  %v6915_v10 = vcombine.low %v527_v30, %v531_v0  ;;  %v555_v13 = vld [vmem:[#allocation4 + $0x8b0] sm:$0xff] }
 0x16d   :  { %3958 = vmatprep.subr.bf16.mxu1 %v6890_v25  ;;  %v538_v25 = vld [vmem:[#allocation4 + $0x828] sm:$0xff] }
 0x16e   :  { %4409 = vmatpush1.bf16.msra.mxu0 %v6883_v36  ;;  %v534_v36 = vld [vmem:[#allocation4 + $0x808] sm:$0xff] }
 0x16f   :  { %4410 = vmatprep.subr.bf16.mxu0 %v6892_v55  ;;  %3914 = vmatmul.mubr.bf16.gmra.mrb[56].mxu1 %v8365_v39  ;;  %v535_v55 = vld [vmem:[#allocation4 + $0x810] sm:$0xff]  ;;  %v6922_v4 = vcombine.high %v534_v36, %v538_v25  ;;  %v6921_v54 = vcombine.low %v534_v36, %v538_v25 }
 0x170   :  { %3959 = vmatpush1.bf16.msra.mxu1 %v6889_v22  ;;  %3923 = vmatprep.mubr.bf16.mxu1 %v8369_v51  ;;  %v6924_v22 = vcombine.high %v535_v55, %v539_v43  ;;  %v6923_v44 = vcombine.low %v535_v55, %v539_v43  ;;  %v563_v36 = vld [vmem:[#allocation4 + $0x8f0] sm:$0xff] }
 0x171   :  { %4366 = vmatmul.mubr.bf16.gmra.mrb[56].mxu0 %v8365_v39  ;;  %3960 = vmatprep.subr.bf16.mxu1 %v6898_v50  ;;  %v546_v50 = vld [vmem:[#allocation4 + $0x868] sm:$0xff] }
 0x172   :  { %4411 = vmatpush1.bf16.msra.mxu0 %v6891_v48  ;;  %4375 = vmatprep.mubr.bf16.mxu0 %v8369_v51  ;;  %v542_v48 = vld [vmem:[#allocation4 + $0x848] sm:$0xff] }
 0x173   :  { %4412 = vmatprep.subr.bf16.mxu0 %v6900_v41  ;;  %v543_v41 = vld [vmem:[#allocation4 + $0x850] sm:$0xff]  ;;  %v6930_v2 = vcombine.high %v542_v48, %v546_v50  ;;  %v6929_v20 = vcombine.low %v542_v48, %v546_v50 }
 0x174   :  { %3961 = vmatpush1.bf16.msra.mxu1 %v6897_v28  ;;  %v6932_v28 = vcombine.high %v543_v41, %v547_v32  ;;  %v6931_v30 = vcombine.low %v543_v41, %v547_v32  ;;  %v571_v48 = vld [vmem:[#allocation4 + $0x930] sm:$0xff] }
 0x175   :  { %3962 = vmatprep.subr.bf16.mxu1 %v6906_v38  ;;  %v554_v38 = vld [vmem:[#allocation4 + $0x8a8] sm:$0xff] }
 0x176   :  { %4413 = vmatpush1.bf16.msra.mxu0 %v6899_v45  ;;  %v550_v45 = vld [vmem:[#allocation4 + $0x888] sm:$0xff] }
 0x177   :  { %4414 = vmatprep.subr.bf16.mxu0 %v6908_v6  ;;  %3924 = vmatmul.mubr.bf16.gmra.mrb[60].mxu1 %v8377_v19  ;;  %v551_v6 = vld [vmem:[#allocation4 + $0x890] sm:$0xff]  ;;  %v6938_v0 = vcombine.high %v550_v45, %v554_v38  ;;  %v6937_v25 = vcombine.low %v550_v45, %v554_v38 }
 0x178   :  { %3963 = vmatpush1.bf16.msra.mxu1 %v6905_v46  ;;  %3966 = vmatprep.mubr.bf16.mxu1 %v8383_v40  ;;  %v6940_v46 = vcombine.high %v551_v6, %v555_v13  ;;  %v6939_v55 = vcombine.low %v551_v6, %v555_v13  ;;  %v579_v45 = vld [vmem:[#allocation4 + $0x970] sm:$0xff] }
 0x179   :  { %4376 = vmatmul.mubr.bf16.gmra.mrb[60].mxu0 %v8377_v19  ;;  %3964 = vmatprep.subr.bf16.mxu1 %v6914_v53  ;;  %v562_v53 = vld [vmem:[#allocation4 + $0x8e8] sm:$0xff] }
 0x17a   :  { %4415 = vmatpush1.bf16.msra.mxu0 %v6907_v7  ;;  %4418 = vmatprep.mubr.bf16.mxu0 %v8383_v40  ;;  %v558_v7 = vld [vmem:[#allocation4 + $0x8c8] sm:$0xff] }
 0x17b   :  { %4416 = vmatprep.subr.bf16.mxu0 %v6916_v33  ;;  %v559_v33 = vld [vmem:[#allocation4 + $0x8d0] sm:$0xff]  ;;  %v6946_v43 = vcombine.high %v558_v7, %v562_v53  ;;  %v6945_v50 = vcombine.low %v558_v7, %v562_v53 }
 0x17c   :  { %3965 = vmatpush1.bf16.msra.mxu1 %v6913_v8  ;;  %v6948_v8 = vcombine.high %v559_v33, %v563_v36  ;;  %v6947_v41 = vcombine.low %v559_v33, %v563_v36  ;;  %v587_v7 = vld [vmem:[#allocation4 + $0x9b0] sm:$0xff] }
 0x17d   :  { %4047 = vmatprep.subr.bf16.mxu1 %v6922_v4  ;;  %v570_v4 = vld [vmem:[#allocation4 + $0x928] sm:$0xff] }
 0x17e   :  { %4417 = vmatpush1.bf16.msra.mxu0 %v6915_v10  ;;  %v566_v10 = vld [vmem:[#allocation4 + $0x908] sm:$0xff] }
 0x17f   :  { %4499 = vmatprep.subr.bf16.mxu0 %v6924_v22  ;;  %3967 = vmatmul.mubr.bf16.vlgmr.msra.gmra.mrb[32].mxu1 %v8392_v14  ;;  %v567_v22 = vld [vmem:[#allocation4 + $0x910] sm:$0xff]  ;;  %v6954_v32 = vcombine.high %v566_v10, %v570_v4  ;;  %v6953_v38 = vcombine.low %v566_v10, %v570_v4 }
 0x180   :  { %4048 = vmatpush1.bf16.msra.mxu1 %v6921_v54  ;;  %3976 = vmatprep.mubr.bf16.mxu1 %v8396_v37  ;;  %v6956_v54 = vcombine.high %v567_v22, %v571_v48  ;;  %v6955_v6 = vcombine.low %v567_v22, %v571_v48  ;;  %v595_v10 = vld [vmem:[#allocation4 + $0x9f0] sm:$0xff] }
 0x181   :  { %4419 = vmatmul.mubr.bf16.vlgmr.msra.gmra.mrb[32].mxu0 %v8392_v14  ;;  %4049 = vmatprep.subr.bf16.mxu1 %v6930_v2  ;;  %v578_v2 = vld [vmem:[#allocation4 + $0x968] sm:$0xff] }
 0x182   :  { %4500 = vmatpush1.bf16.msra.mxu0 %v6923_v44  ;;  %4428 = vmatprep.mubr.bf16.mxu0 %v8396_v37  ;;  %v574_v44 = vld [vmem:[#allocation4 + $0x948] sm:$0xff]  ;;  %v9184_v37 = vld [vmem:[#allocation39_spill] sm:$0xff] }
 0x183   :  { %4501 = vmatprep.subr.bf16.mxu0 %v6932_v28  ;;  %v575_v28 = vld [vmem:[#allocation4 + $0x950] sm:$0xff]  ;;  %v6962_v13 = vcombine.high %v574_v44, %v578_v2  ;;  %v6961_v53 = vcombine.low %v574_v44, %v578_v2 }
 0x184   :  { %4050 = vmatpush1.bf16.msra.mxu1 %v6929_v20  ;;  %v6964_v20 = vcombine.high %v575_v28, %v579_v45  ;;  %v6963_v33 = vcombine.low %v575_v28, %v579_v45  ;;  %v603_v44 = vld [vmem:[#allocation4 + $0xa30] sm:$0xff] }
 0x185   :  { %4051 = vmatprep.subr.bf16.mxu1 %v6938_v0  ;;  %v586_v0 = vld [vmem:[#allocation4 + $0x9a8] sm:$0xff] }
 0x186   :  { %4502 = vmatpush1.bf16.msra.mxu0 %v6931_v30  ;;  %v582_v30 = vld [vmem:[#allocation4 + $0x988] sm:$0xff] }
 0x187   :  { %4503 = vmatprep.subr.bf16.mxu0 %v6940_v46  ;;  %3977 = vmatmul.mubr.bf16.gmra.mrb[36].mxu1 %v8405_v59  ;;  %v583_v46 = vld [vmem:[#allocation4 + $0x990] sm:$0xff]  ;;  %v6970_v36 = vcombine.high %v582_v30, %v586_v0  ;;  %v6969_v4 = vcombine.low %v582_v30, %v586_v0 }
 0x188   :  { %4052 = vmatpush1.bf16.msra.mxu1 %v6937_v25  ;;  %3986 = vmatprep.mubr.bf16.mxu1 %v8409_v52  ;;  %v6972_v25 = vcombine.high %v583_v46, %v587_v7  ;;  %v6971_v22 = vcombine.low %v583_v46, %v587_v7  ;;  %v611_v30 = vld [vmem:[#allocation4 + $0xa70] sm:$0xff] }
 0x189   :  { %4429 = vmatmul.mubr.bf16.gmra.mrb[36].mxu0 %v8405_v59  ;;  %4053 = vmatprep.subr.bf16.mxu1 %v6946_v43  ;;  %v594_v43 = vld [vmem:[#allocation4 + $0x9e8] sm:$0xff]  ;;  %v332_v59 = vld [vmem:[#allocation4 + $0x1b8] sm:$0xff] }
 0x18a   :  { %4504 = vmatpush1.bf16.msra.mxu0 %v6939_v55  ;;  %4438 = vmatprep.mubr.bf16.mxu0 %v8409_v52  ;;  %v590_v55 = vld [vmem:[#allocation4 + $0x9c8] sm:$0xff]  ;;  %v9182_v52 = vld [vmem:[#allocation35_spill] sm:$0xff] }
 0x18b   :  { %4505 = vmatprep.subr.bf16.mxu0 %v6948_v8  ;;  %v591_v8 = vld [vmem:[#allocation4 + $0x9d0] sm:$0xff]  ;;  %v6978_v48 = vcombine.high %v590_v55, %v594_v43  ;;  %v6977_v2 = vcombine.low %v590_v55, %v594_v43 }
 0x18c   :  { %4054 = vmatpush1.bf16.msra.mxu1 %v6945_v50  ;;  %v6980_v50 = vcombine.high %v591_v8, %v595_v10  ;;  %v6979_v28 = vcombine.low %v591_v8, %v595_v10  ;;  %v619_v55 = vld [vmem:[#allocation4 + $0xab0] sm:$0xff] }
 0x18d   :  { %4055 = vmatprep.subr.bf16.mxu1 %v6954_v32  ;;  %v602_v32 = vld [vmem:[#allocation4 + $0xa28] sm:$0xff] }
 0x18e   :  { %4506 = vmatpush1.bf16.msra.mxu0 %v6947_v41  ;;  %v598_v41 = vld [vmem:[#allocation4 + $0xa08] sm:$0xff] }
 0x18f   :  { %4507 = vmatprep.subr.bf16.mxu0 %v6956_v54  ;;  %3987 = vmatmul.mubr.bf16.gmra.mrb[40].mxu1 %v8418_v34  ;;  %v599_v54 = vld [vmem:[#allocation4 + $0xa10] sm:$0xff]  ;;  %v6986_v45 = vcombine.high %v598_v41, %v602_v32  ;;  %v6985_v0 = vcombine.low %v598_v41, %v602_v32 }
 0x190   :  { %4056 = vmatpush1.bf16.msra.mxu1 %v6953_v38  ;;  %3996 = vmatprep.mubr.bf16.mxu1 %v8422_v1  ;;  %v6988_v38 = vcombine.high %v599_v54, %v603_v44  ;;  %v6987_v46 = vcombine.low %v599_v54, %v603_v44  ;;  %v627_v41 = vld [vmem:[#allocation4 + $0xaf0] sm:$0xff] }
 0x191   :  { %4439 = vmatmul.mubr.bf16.gmra.mrb[40].mxu0 %v8418_v34  ;;  %4057 = vmatprep.subr.bf16.mxu1 %v6962_v13  ;;  %v610_v13 = vld [vmem:[#allocation4 + $0xa68] sm:$0xff]  ;;  %v316_v34 = vld [vmem:[#allocation4 + $0x138] sm:$0xff] }
 0x192   :  { %4508 = vmatpush1.bf16.msra.mxu0 %v6955_v6  ;;  %4448 = vmatprep.mubr.bf16.mxu0 %v8422_v1  ;;  %v606_v6 = vld [vmem:[#allocation4 + $0xa48] sm:$0xff] }
 0x193   :  { %4509 = vmatprep.subr.bf16.mxu0 %v6964_v20  ;;  %v607_v20 = vld [vmem:[#allocation4 + $0xa50] sm:$0xff]  ;;  %v6994_v7 = vcombine.high %v606_v6, %v610_v13  ;;  %v6993_v43 = vcombine.low %v606_v6, %v610_v13  ;;  %v9181_v1 = vld [vmem:[#allocation33_spill] sm:$0xff] }
 0x194   :  { %4058 = vmatpush1.bf16.msra.mxu1 %v6961_v53  ;;  %v6996_v53 = vcombine.high %v607_v20, %v611_v30  ;;  %v6995_v8 = vcombine.low %v607_v20, %v611_v30  ;;  %v635_v6 = vld [vmem:[#allocation4 + $0xb30] sm:$0xff] }
 0x195   :  { %4059 = vmatprep.subr.bf16.mxu1 %v6970_v36  ;;  %v618_v36 = vld [vmem:[#allocation4 + $0xaa8] sm:$0xff] }
 0x196   :  { %4510 = vmatpush1.bf16.msra.mxu0 %v6963_v33  ;;  %v614_v33 = vld [vmem:[#allocation4 + $0xa88] sm:$0xff] }
 0x197   :  { %4511 = vmatprep.subr.bf16.mxu0 %v6972_v25  ;;  %3997 = vmatmul.mubr.bf16.gmra.mrb[44].mxu1 %v8431_v23  ;;  %v615_v25 = vld [vmem:[#allocation4 + $0xa90] sm:$0xff]  ;;  %v7002_v10 = vcombine.high %v614_v33, %v618_v36  ;;  %v7001_v32 = vcombine.low %v614_v33, %v618_v36 }
 0x198   :  { %4060 = vmatpush1.bf16.msra.mxu1 %v6969_v4  ;;  %4006 = vmatprep.mubr.bf16.mxu1 %v8435_v42  ;;  %v7004_v4 = vcombine.high %v615_v25, %v619_v55  ;;  %v7003_v54 = vcombine.low %v615_v25, %v619_v55  ;;  %v643_v33 = vld [vmem:[#allocation4 + $0xb70] sm:$0xff] }
 0x199   :  { %4449 = vmatmul.mubr.bf16.gmra.mrb[44].mxu0 %v8431_v23  ;;  %4061 = vmatprep.subr.bf16.mxu1 %v6978_v48  ;;  %v626_v48 = vld [vmem:[#allocation4 + $0xae8] sm:$0xff] }
 0x19a   :  { %4512 = vmatpush1.bf16.msra.mxu0 %v6971_v22  ;;  %4458 = vmatprep.mubr.bf16.mxu0 %v8435_v42  ;;  %v622_v22 = vld [vmem:[#allocation4 + $0xac8] sm:$0xff] }
 0x19b   :  { %4513 = vmatprep.subr.bf16.mxu0 %v6980_v50  ;;  %v623_v50 = vld [vmem:[#allocation4 + $0xad0] sm:$0xff]  ;;  %v7010_v44 = vcombine.high %v622_v22, %v626_v48  ;;  %v7009_v13 = vcombine.low %v622_v22, %v626_v48 }
 0x19c   :  { %4062 = vmatpush1.bf16.msra.mxu1 %v6977_v2  ;;  %v7012_v2 = vcombine.high %v623_v50, %v627_v41  ;;  %v7011_v20 = vcombine.low %v623_v50, %v627_v41  ;;  %v651_v22 = vld [vmem:[#allocation4 + $0xbb0] sm:$0xff] }
 0x19d   :  { %4063 = vmatprep.subr.bf16.mxu1 %v6986_v45  ;;  %v634_v45 = vld [vmem:[#allocation4 + $0xb28] sm:$0xff] }
 0x19e   :  { %4514 = vmatpush1.bf16.msra.mxu0 %v6979_v28  ;;  %v630_v28 = vld [vmem:[#allocation4 + $0xb08] sm:$0xff] }
 0x19f   :  { %4515 = vmatprep.subr.bf16.mxu0 %v6988_v38  ;;  %4007 = vmatmul.mubr.bf16.gmra.mrb[48].mxu1 %v8444_v17  ;;  %v631_v38 = vld [vmem:[#allocation4 + $0xb10] sm:$0xff]  ;;  %v7018_v30 = vcombine.high %v630_v28, %v634_v45  ;;  %v7017_v36 = vcombine.low %v630_v28, %v634_v45 }
 0x1a0   :  { %4064 = vmatpush1.bf16.msra.mxu1 %v6985_v0  ;;  %4016 = vmatprep.mubr.bf16.mxu1 %v8448_v24  ;;  %v7020_v0 = vcombine.high %v631_v38, %v635_v6  ;;  %v7019_v25 = vcombine.low %v631_v38, %v635_v6  ;;  %v659_v28 = vld [vmem:[#allocation4 + $0xbf0] sm:$0xff] }
 0x1a1   :  { %4459 = vmatmul.mubr.bf16.gmra.mrb[48].mxu0 %v8444_v17  ;;  %4065 = vmatprep.subr.bf16.mxu1 %v6994_v7  ;;  %v642_v7 = vld [vmem:[#allocation4 + $0xb68] sm:$0xff]  ;;  %v759_v17 = vld [vmem:[#allocation4 + $0xf10] sm:$0xff] }
 0x1a2   :  { %4516 = vmatpush1.bf16.msra.mxu0 %v6987_v46  ;;  %4468 = vmatprep.mubr.bf16.mxu0 %v8448_v24  ;;  %v638_v46 = vld [vmem:[#allocation4 + $0xb48] sm:$0xff] }
 0x1a3   :  { %4517 = vmatprep.subr.bf16.mxu0 %v6996_v53  ;;  %v639_v53 = vld [vmem:[#allocation4 + $0xb50] sm:$0xff]  ;;  %v7026_v55 = vcombine.high %v638_v46, %v642_v7  ;;  %v7025_v48 = vcombine.low %v638_v46, %v642_v7  ;;  %v762_v24 = vld [vmem:[#allocation4 + $0xf28] sm:$0xff] }
 0x1a4   :  { %4066 = vmatpush1.bf16.msra.mxu1 %v6993_v43  ;;  %v7028_v43 = vcombine.high %v639_v53, %v643_v33  ;;  %v7027_v50 = vcombine.low %v639_v53, %v643_v33  ;;  %v667_v46 = vld [vmem:[#allocation4 + $0xc30] sm:$0xff] }
 0x1a5   :  { %4067 = vmatprep.subr.bf16.mxu1 %v7002_v10  ;;  %v650_v10 = vld [vmem:[#allocation4 + $0xba8] sm:$0xff] }
 0x1a6   :  { %4518 = vmatpush1.bf16.msra.mxu0 %v6995_v8  ;;  %v646_v8 = vld [vmem:[#allocation4 + $0xb88] sm:$0xff] }
 0x1a7   :  { %4519 = vmatprep.subr.bf16.mxu0 %v7004_v4  ;;  %4017 = vmatmul.mubr.bf16.gmra.mrb[52].mxu1 %v8457_v12  ;;  %v647_v4 = vld [vmem:[#allocation4 + $0xb90] sm:$0xff]  ;;  %v7034_v41 = vcombine.high %v646_v8, %v650_v10  ;;  %v7033_v45 = vcombine.low %v646_v8, %v650_v10 }
 0x1a8   :  { %4068 = vmatpush1.bf16.msra.mxu1 %v7001_v32  ;;  %4026 = vmatprep.mubr.bf16.mxu1 %v8461_v29  ;;  %v7036_v32 = vcombine.high %v647_v4, %v651_v22  ;;  %v7035_v38 = vcombine.low %v647_v4, %v651_v22  ;;  %v671_v8 = vld [vmem:[#allocation4 + $0xc50] sm:$0xff] }
 0x1a9   :  { %4469 = vmatmul.mubr.bf16.gmra.mrb[52].mxu0 %v8457_v12  ;;  %4069 = vmatprep.subr.bf16.mxu1 %v7010_v44  ;;  %v658_v44 = vld [vmem:[#allocation4 + $0xbe8] sm:$0xff]  ;;  %v675_v10 = vld [vmem:[#allocation4 + $0xc70] sm:$0xff] }
 0x1aa   :  { %4520 = vmatpush1.bf16.msra.mxu0 %v7003_v54  ;;  %4478 = vmatprep.mubr.bf16.mxu0 %v8461_v29  ;;  %v654_v54 = vld [vmem:[#allocation4 + $0xbc8] sm:$0xff]  ;;  %v743_v12 = vld [vmem:[#allocation4 + $0xe90] sm:$0xff] }
 0x1ab   :  { %4521 = vmatprep.subr.bf16.mxu0 %v7012_v2  ;;  %v655_v2 = vld [vmem:[#allocation4 + $0xbd0] sm:$0xff]  ;;  %v7042_v6 = vcombine.high %v654_v54, %v658_v44  ;;  %v7041_v7 = vcombine.low %v654_v54, %v658_v44  ;;  %v746_v29 = vld [vmem:[#allocation4 + $0xea8] sm:$0xff] }
 0x1ac   :  { %4070 = vmatpush1.bf16.msra.mxu1 %v7009_v13  ;;  %v7044_v13 = vcombine.high %v655_v2, %v659_v28  ;;  %v7043_v53 = vcombine.low %v655_v2, %v659_v28  ;;  %v683_v54 = vld [vmem:[#allocation4 + $0xcb0] sm:$0xff]  ;;  %v7059_v2 = vcombine.low %v671_v8, %v675_v10 }
 0x1ad   :  { %4071 = vmatprep.subr.bf16.mxu1 %v7018_v30  ;;  %v666_v30 = vld [vmem:[#allocation4 + $0xc28] sm:$0xff] }
 0x1ae   :  { %4522 = vmatpush1.bf16.msra.mxu0 %v7011_v20  ;;  %v662_v20 = vld [vmem:[#allocation4 + $0xc08] sm:$0xff] }
 0x1af   :  { %4523 = vmatprep.subr.bf16.mxu0 %v7020_v0  ;;  %4027 = vmatmul.mubr.bf16.gmra.mrb[56].mxu1 %v8470_v56  ;;  %v663_v0 = vld [vmem:[#allocation4 + $0xc10] sm:$0xff]  ;;  %v7050_v33 = vcombine.high %v662_v20, %v666_v30 }
 0x1b0   :  { %4072 = vmatpush1.bf16.msra.mxu1 %v7017_v36  ;;  %4036 = vmatprep.mubr.bf16.mxu1 %v8474_v5  ;;  %v7052_v36 = vcombine.high %v663_v0, %v667_v46  ;;  %v7051_v4 = vcombine.low %v663_v0, %v667_v46  ;;  %v687_v0 = vld [vmem:[#allocation4 + $0xcd0] sm:$0xff] }
 0x1b1   :  { %4479 = vmatmul.mubr.bf16.gmra.mrb[56].mxu0 %v8470_v56  ;;  %4073 = vmatprep.subr.bf16.mxu1 %v7026_v55  ;;  %v674_v55 = vld [vmem:[#allocation4 + $0xc68] sm:$0xff]  ;;  %v691_v46 = vld [vmem:[#allocation4 + $0xcf0] sm:$0xff] }
 0x1b2   :  { %4524 = vmatpush1.bf16.msra.mxu0 %v7019_v25  ;;  %4488 = vmatprep.mubr.bf16.mxu0 %v8474_v5  ;;  %v670_v25 = vld [vmem:[#allocation4 + $0xc48] sm:$0xff] }
 0x1b3   :  { %4525 = vmatprep.subr.bf16.mxu0 %v7028_v43  ;;  %v7049_v43 = vcombine.low %v662_v20, %v666_v30  ;;  %v7058_v22 = vcombine.high %v670_v25, %v674_v55  ;;  %v7057_v44 = vcombine.low %v670_v25, %v674_v55  ;;  %v779_v20 = vlaneseq  ;;  %v9165_v25 = vld [vmem:[#allocation17_spill] sm:$0xff] }
 0x1b4   :  { %4074 = vmatpush1.bf16.msra.mxu1 %v7025_v48  ;;  %v678_v48 = vld [vmem:[#allocation4 + $0xc88] sm:$0xff]  ;;  %v7076_v55 = vcombine.high %v687_v0, %v691_v46 }
 0x1b5   :  { %4075 = vmatprep.subr.bf16.mxu1 %v7034_v41  ;;  %v7060_v41 = vcombine.high %v671_v8, %v675_v10  ;;  %v695_v8 = vld [vmem:[#allocation4 + $0xd10] sm:$0xff]  ;;  %v730_v5 = vld [vmem:[#allocation4 + $0xe28] sm:$0xff] }
 0x1b6   :  { %4526 = vmatpush1.bf16.msra.mxu0 %v7027_v50  ;;  %v682_v50 = vld [vmem:[#allocation4 + $0xca8] sm:$0xff]  ;;  %v699_v10 = vld [vmem:[#allocation4 + $0xd30] sm:$0xff] }
 0x1b7   :  { %4527 = vmatprep.subr.bf16.mxu0 %v7036_v32  ;;  %4037 = vmatmul.mubr.bf16.gmra.mrb[60].mxu1 %v8483_v3  ;;  %v679_v32 = vld [vmem:[#allocation4 + $0xc90] sm:$0xff]  ;;  %v7066_v28 = vcombine.high %v678_v48, %v682_v50  ;;  %v7065_v30 = vcombine.low %v678_v48, %v682_v50 }
 0x1b8   :  { %4076 = vmatpush1.bf16.msra.mxu1 %v7033_v45  ;;  %4079 = vmatprep.mubr.bf16.mxu1 %v8289_v63  ;;  %v9164_v45 = vld [vmem:[#allocation16_spill] sm:$0xff]  ;;  %v9167_v50 = vld [vmem:[#allocation18_spill] sm:$0xff] }
 0x1b9   :  { %4489 = vmatmul.mubr.bf16.gmra.mrb[60].mxu0 %v8483_v3  ;;  %4077 = vmatprep.subr.bf16.mxu1 %v7042_v6  ;;  %v686_v6 = vld [vmem:[#allocation4 + $0xcc8] sm:$0xff] }
 0x1ba   :  { %4528 = vmatpush1.bf16.msra.mxu0 %v7035_v38  ;;  %4531 = vmatprep.mubr.bf16.mxu0 %v8289_v63  ;;  %v7068_v38 = vcombine.high %v679_v32, %v683_v54 }
 0x1bb   :  { %4529 = vmatprep.subr.bf16.mxu0 %v7044_v13  ;;  %v690_v13 = vld [vmem:[#allocation4 + $0xce8] sm:$0xff] }
 0x1bc   :  { %4078 = vmatpush1.bf16.msra.mxu1 %v7041_v7  ;;  %v7067_v7 = vcombine.low %v679_v32, %v683_v54  ;;  %v702_v32 = vld [vmem:[#allocation4 + $0xd48] sm:$0xff] }
 0x1bd   :  { %4160 = vmatprep.subr.bf16.mxu1 %v7050_v33  ;;  %v694_v33 = vld [vmem:[#allocation4 + $0xd08] sm:$0xff] }
 0x1be   :  { %4530 = vmatpush1.bf16.msra.mxu0 %v7043_v53  ;;  %v7074_v53 = vcombine.high %v686_v6, %v690_v13  ;;  %v706_v54 = vld [vmem:[#allocation4 + $0xd68] sm:$0xff] }
 0x1bf   :  { %4612 = vmatprep.subr.bf16.mxu0 %v7052_v36  ;;  %4080 = vmatmul.mubr.bf16.vlgmr.msra.gmra.mrb[32].mxu1 %v8295_v26  ;;  %v698_v36 = vld [vmem:[#allocation4 + $0xd28] sm:$0xff] }
 0x1c0   :  { %4161 = vmatpush1.bf16.msra.mxu1 %v7049_v43  ;;  %4089 = vmatprep.mubr.bf16.mxu1 %v9164_v45  ;;  %v8560_v43 = vshrl.u32 %v779_v20, 7  ;;  %v7082_v48 = vcombine.high %v694_v33, %v698_v36  ;;  %v7083_v20 = vcombine.low %v695_v8, %v699_v10 }
 0x1c1   :  { %4532 = vmatmul.mubr.bf16.vlgmr.msra.gmra.mrb[32].mxu0 %v8295_v26  ;;  %4162 = vmatprep.subr.bf16.mxu1 %v7058_v22  ;;  %v7075_v22 = vcombine.low %v687_v0, %v691_v46  ;;  %v710_v0 = vld [vmem:[#allocation4 + $0xd88] sm:$0xff] }
 0x1c2   :  { %4613 = vmatpush1.bf16.msra.mxu0 %v7051_v4  ;;  %4541 = vmatprep.mubr.bf16.mxu0 %v9164_v45  ;;  %9166 = vst [vmem:[#allocation57_spill] sm:$0xff] %v8560_v43  ;;  %v7073_v4 = vcombine.low %v686_v6, %v690_v13  ;;  %v703_v6 = vld [vmem:[#allocation4 + $0xd50] sm:$0xff]  ;;  %v714_v46 = vld [vmem:[#allocation4 + $0xda8] sm:$0xff] }
 0x1c3   :  { %4614 = vmatprep.subr.bf16.mxu0 %v7060_v41  ;;  %v7084_v41 = vcombine.high %v695_v8, %v699_v10  ;;  %v707_v13 = vld [vmem:[#allocation4 + $0xd70] sm:$0xff]  ;;  %v7089_v8 = vcombine.low %v702_v32, %v706_v54 }
 0x1c4   :  { %4163 = vmatpush1.bf16.msra.mxu1 %v7057_v44  ;;  %v9082_v44 = vsub.s32 0, %v8560_v43  ;;  %v7091_v10 = vcombine.low %v703_v6, %v707_v13 }
 0x1c5   :  { %4164 = vmatprep.subr.bf16.mxu1 %v7066_v28  ;;  %v777_v28 = vld [vmem:[#allocation6] sm:$0xff] }
 0x1c6   :  { %4615 = vmatpush1.bf16.msra.mxu0 %v7059_v2  ;;  %v7081_v2 = vcombine.low %v694_v33, %v698_v36  ;;  %v711_v33 = vld [vmem:[#allocation4 + $0xd90] sm:$0xff] }
 0x1c7   :  { %4616 = vmatprep.subr.bf16.mxu0 %v7068_v38  ;;  %4090 = vmatmul.mubr.bf16.gmra.mrb[36].mxu1 %v9165_v25  ;;  %v9087_v38 = vsub.s32 1, %v8560_v43  ;;  %v715_v36 = vld [vmem:[#allocation4 + $0xdb0] sm:$0xff] }
 0x1c8   :  { %4165 = vmatpush1.bf16.msra.mxu1 %v7065_v30  ;;  %4099 = vmatprep.mubr.bf16.mxu1 %v9167_v50  ;;  %v7090_v30 = vcombine.high %v702_v32, %v706_v54 }
 0x1c9   :  { %4542 = vmatmul.mubr.bf16.gmra.mrb[36].mxu0 %v9165_v25  ;;  %4166 = vmatprep.subr.bf16.mxu1 %v7074_v53  ;;  %v8570_v53 = vrot.slane %v777_v28, %v9082_v44  ;;  %v7100_v44 = vcombine.high %v711_v33, %v715_v36  ;;  %v722_v25 = vld [vmem:[#allocation4 + $0xde8] sm:$0xff] }
 0x1ca   :  { %4617 = vmatpush1.bf16.msra.mxu0 %v7067_v7  ;;  %4551 = vmatprep.mubr.bf16.mxu0 %v9167_v50  ;;  %v9168_v7 = vld [vmem:[#allocation19_spill] sm:$0xff]  ;;  %v718_v50 = vld [vmem:[#allocation4 + $0xdc8] sm:$0xff] }
 0x1cb   :  { %4618 = vmatprep.subr.bf16.mxu0 %v7076_v55  ;;  %v7092_v55 = vcombine.high %v703_v6, %v707_v13  ;;  %v7097_v6 = vcombine.low %v710_v0, %v714_v46  ;;  %v7099_v13 = vcombine.low %v711_v33, %v715_v36  ;;  %v727_v33 = vld [vmem:[#allocation4 + $0xe10] sm:$0xff] }
 0x1cc   :  { %4167 = vmatpush1.bf16.msra.mxu1 %v7073_v4  ;;  %v8575_v4 = vrot.slane %v777_v28, %v9087_v38  ;;  %v731_v36 = vld [vmem:[#allocation4 + $0xe30] sm:$0xff] }
 0x1cd   :  { %4168 = vmatprep.subr.bf16.mxu1 %v7082_v48 }
 0x1ce   :  { %4619 = vmatpush1.bf16.msra.mxu0 %v7075_v22  ;;  %v7098_v22 = vcombine.high %v710_v0, %v714_v46  ;;  %v9170_v0 = vld [vmem:[#allocation21_spill] sm:$0xff] }
 0x1cf   :  { %4620 = vmatprep.subr.bf16.mxu0 %v7084_v41  ;;  %4100 = vmatmul.mubr.bf16.gmra.mrb[40].mxu1 %v9168_v7  ;;  %v9169_v41 = vld [vmem:[#allocation20_spill] sm:$0xff] }
 0x1d0   :  { %4169 = vmatpush1.bf16.msra.mxu1 %v7081_v2  ;;  %4109 = vmatprep.mubr.bf16.mxu1 %v9169_v41 }
 0x1d1   :  { %4552 = vmatmul.mubr.bf16.gmra.mrb[40].mxu0 %v9168_v7  ;;  %4170 = vmatprep.subr.bf16.mxu1 %v7090_v30  ;;  %v723_v30 = vld [vmem:[#allocation4 + $0xdf0] sm:$0xff] }
 0x1d2   :  { %4621 = vmatpush1.bf16.msra.mxu0 %v7083_v20  ;;  %v3516_v48 = vpop.f32.mrb[0].mxu1  ;;  %4561 = vmatprep.mubr.bf16.mxu0 %v9169_v41  ;;  %v719_v20 = vld [vmem:[#allocation4 + $0xdd0] sm:$0xff] }
 0x1d3   :  { %v7331_v7 = vadd.f32 %v3516_v48, %v8570_v53  ;;  %v3518_v2 = vpop.f32.mrb[1].mxu1  ;;  %4622 = vmatprep.subr.bf16.mxu0 %v7092_v55  ;;  %v7106_v48 = vcombine.high %v718_v50, %v722_v25  ;;  %v7108_v46 = vcombine.high %v719_v20, %v723_v30 }
 0x1d4   :  { %v3742_v45 = vpop.f32.mrb[0].mxu0  ;;  %v7333_v28 = vadd.f32 %v3518_v2, %v8575_v4  ;;  %v3520_v32 = vpop.f32.mrb[2].mxu1  ;;  %4171 = vmatpush1.bf16.msra.mxu1 %v7089_v8  ;;  %v726_v2 = vld [vmem:[#allocation4 + $0xe08] sm:$0xff] }
 0x1d5   :  { %v3744_v54 = vpop.f32.mrb[1].mxu0  ;;  %v7335_v38 = vadd.f32 %v3520_v32, %v8570_v53  ;;  %v7332_v41 = vadd.f32 %v7331_v7, %v3742_v45  ;;  %v3522_v43 = vpop.f32.mrb[3].mxu1  ;;  %4172 = vmatprep.subr.bf16.mxu1 %v7098_v22  ;;  %v7105_v45 = vcombine.low %v718_v50, %v722_v25  ;;  %v7114_v22 = vcombine.high %v726_v2, %v730_v5  ;;  %v734_v50 = vld [vmem:[#allocation4 + $0xe48] sm:$0xff] }
 0x1d6   :  { %v3746_v26 = vpop.f32.mrb[2].mxu0  ;;  %4623 = vmatpush1.bf16.msra.mxu0 %v7091_v10  ;;  %v7337_v63 = vadd.f32 %v3522_v43, %v8575_v4  ;;  %v7334_v55 = vadd.f32 %v7333_v28, %v3744_v54  ;;  %v7107_v43 = vcombine.low %v719_v20, %v723_v30 }
 0x1d7   :  { %v3748_v3 = vpop.f32.mrb[3].mxu0  ;;  %4624 = vmatprep.subr.bf16.mxu0 %v7100_v44  ;;  %v7336_v8 = vadd.f32 %v7335_v38, %v3746_v26  ;;  %4110 = vmatmul.mubr.bf16.gmra.mrb[44].mxu1 %v9170_v0  ;;  %v5177_v7 = vmax.f32 %v7332_v41, 0.0  ;;  %v9171_v26 = vld [vmem:[#allocation22_spill] sm:$0xff]  ;;  %v7116_v38 = vcombine.high %v727_v33, %v731_v36 }
 0x1d8   :  { %v7338_v32 = vadd.f32 %v7337_v63, %v3748_v3  ;;  %4173 = vmatpush1.bf16.msra.mxu1 %v7097_v6  ;;  %v5178_v44 = vmax.f32 %v7334_v55, 0.0  ;;  %4119 = vmatprep.mubr.bf16.mxu1 %v9171_v26  ;;  %v738_v41 = vld [vmem:[#allocation4 + $0xe68] sm:$0xff]  ;;  %v735_v55 = vld [vmem:[#allocation4 + $0xe50] sm:$0xff] }
 0x1d9   :  { %4562 = vmatmul.mubr.bf16.gmra.mrb[44].mxu0 %v9170_v0  ;;  %v5185_v10 = vmax.f32 %v7336_v8, 0.0  ;;  %4174 = vmatprep.subr.bf16.mxu1 %v7106_v48  ;;  %v7113_v48 = vcombine.low %v726_v2, %v730_v5  ;;  %v739_v8 = vld [vmem:[#allocation4 + $0xe70] sm:$0xff]  ;;  %v742_v0 = vld [vmem:[#allocation4 + $0xe88] sm:$0xff] }
 0x1da   :  { %4625 = vmatpush1.bf16.msra.mxu0 %v7099_v13  ;;  %v5186_v28 = vmax.f32 %v7338_v32, 0.0  ;;  %v3526_v54 = vpop.f32.mrb[4].mxu1  ;;  %4571 = vmatprep.mubr.bf16.mxu0 %v9171_v26  ;;  %v9172_v5 = vld [vmem:[#allocation23_spill] sm:$0xff]  ;;  %v7124_v2 = vcombine.high %v735_v55, %v739_v8 }
 0x1db   :  { %v8587_v56 = vpack.c.bf16 %v5185_v10, %v5177_v7  ;;  %v7339_v63 = vadd.f32 %v3526_v54, %v8570_v53  ;;  %v3528_v3 = vpop.f32.mrb[5].mxu1  ;;  %4626 = vmatprep.subr.bf16.mxu0 %v7108_v46  ;;  %v7115_v46 = vcombine.low %v727_v33, %v731_v36 }
 0x1dc   :  { %v3752_v25 = vpop.f32.mrb[4].mxu0  ;;  %v8590_v6 = vpack.c.bf16 %v5186_v28, %v5178_v44  ;;  %v7341_v13 = vadd.f32 %v3528_v3, %v8575_v4  ;;  %v3530_v20 = vpop.f32.mrb[6].mxu1  ;;  %4175 = vmatpush1.bf16.msra.mxu1 %v7105_v45  ;;  %v7122_v3 = vcombine.high %v734_v50, %v738_v41 }
 0x1dd   :  { %v3754_v30 = vpop.f32.mrb[5].mxu0  ;;  %v7343_v32 = vadd.f32 %v3530_v20, %v8570_v53  ;;  %v7340_v7 = vadd.f32 %v7339_v63, %v3752_v25  ;;  %v3532_v10 = vpop.f32.mrb[7].mxu1  ;;  %4176 = vmatprep.subr.bf16.mxu1 %v7114_v22  ;;  %v747_v20 = vld [vmem:[#allocation4 + $0xeb0] sm:$0xff]  ;;  %v9173_v22 = vld [vmem:[#allocation24_spill] sm:$0xff]  ;;  %v7130_v25 = vcombine.high %v742_v0, %v746_v29 }
 0x1de   :  { %v3756_v54 = vpop.f32.mrb[6].mxu0  ;;  %4627 = vmatpush1.bf16.msra.mxu0 %v7107_v43  ;;  %v7345_v26 = vadd.f32 %v3532_v10, %v8575_v4  ;;  %v7342_v44 = vadd.f32 %v7341_v13, %v3754_v30  ;;  %v7121_v43 = vcombine.low %v734_v50, %v738_v41  ;;  %v7132_v10 = vcombine.high %v743_v12, %v747_v20  ;;  %v750_v41 = vld [vmem:[#allocation4 + $0xec8] sm:$0xff] }
 0x1df   :  { %v3758_v28 = vpop.f32.mrb[7].mxu0  ;;  %4628 = vmatprep.subr.bf16.mxu0 %v7116_v38  ;;  %v7344_v45 = vadd.f32 %v7343_v32, %v3756_v54  ;;  %4120 = vmatmul.mubr.bf16.gmra.mrb[48].mxu1 %v9172_v5  ;;  %v5193_v33 = vmax.f32 %v7340_v7, 0.0  ;;  %v7123_v38 = vcombine.low %v735_v55, %v739_v8  ;;  %v754_v7 = vld [vmem:[#allocation4 + $0xee8] sm:$0xff] }
 0x1e0   :  { %v7346_v63 = vadd.f32 %v7345_v26, %v3758_v28  ;;  %4177 = vmatpush1.bf16.msra.mxu1 %v7113_v48  ;;  %4129 = vmatprep.mubr.bf16.mxu1 %v9173_v22  ;;  %v5194_v13 = vmax.f32 %v7342_v44, 0.0  ;;  %v7129_v28 = vcombine.low %v742_v0, %v746_v29  ;;  %v9174_v29 = vld [vmem:[#allocation25_spill] sm:$0xff] }
 0x1e1   :  { %4572 = vmatmul.mubr.bf16.gmra.mrb[48].mxu0 %v9172_v5  ;;  %v5201_v36 = vmax.f32 %v7344_v45, 0.0  ;;  %4178 = vmatprep.subr.bf16.mxu1 %v7122_v3  ;;  %v751_v3 = vld [vmem:[#allocation4 + $0xed0] sm:$0xff]  ;;  %v758_v5 = vld [vmem:[#allocation4 + $0xf08] sm:$0xff] }
 0x1e2   :  { %4629 = vmatpush1.bf16.msra.mxu0 %v7115_v46  ;;  %v5202_v30 = vmax.f32 %v7346_v63, 0.0  ;;  %v3536_v32 = vpop.f32.mrb[8].mxu1  ;;  %4581 = vmatprep.mubr.bf16.mxu0 %v9173_v22  ;;  %v755_v45 = vld [vmem:[#allocation4 + $0xef0] sm:$0xff] }
 0x1e3   :  { %v8599_v54 = vpack.c.bf16 %v5201_v36, %v5193_v33  ;;  %v7347_v26 = vadd.f32 %v3536_v32, %v8570_v53  ;;  %v3538_v48 = vpop.f32.mrb[9].mxu1  ;;  %4630 = vmatprep.subr.bf16.mxu0 %v7124_v2  ;;  %v7131_v2 = vcombine.low %v743_v12, %v747_v20  ;;  %v7140_v0 = vcombine.high %v751_v3, %v755_v45 }
 0x1e4   :  { %v3762_v50 = vpop.f32.mrb[8].mxu0  ;;  %v8602_v46 = vpack.c.bf16 %v5202_v30, %v5194_v13  ;;  %v7349_v55 = vadd.f32 %v3538_v48, %v8575_v4  ;;  %v3540_v8 = vpop.f32.mrb[10].mxu1  ;;  %4179 = vmatpush1.bf16.msra.mxu1 %v7121_v43  ;;  %v7138_v48 = vcombine.high %v750_v41, %v754_v7 }
 0x1e5   :  { %v3764_v44 = vpop.f32.mrb[9].mxu0  ;;  %v7351_v63 = vadd.f32 %v3540_v8, %v8570_v53  ;;  %v7348_v33 = vadd.f32 %v7347_v26, %v3762_v50  ;;  %v3542_v36 = vpop.f32.mrb[11].mxu1  ;;  %4180 = vmatprep.subr.bf16.mxu1 %v7130_v25  ;;  %v763_v8 = vld [vmem:[#allocation4 + $0xf30] sm:$0xff]  ;;  %v7146_v50 = vcombine.high %v758_v5, %v762_v24 }
 0x1e6   :  { %v3766_v32 = vpop.f32.mrb[10].mxu0  ;;  %4631 = vmatpush1.bf16.msra.mxu0 %v7123_v38  ;;  %v7353_v22 = vadd.f32 %v3542_v36, %v8575_v4  ;;  %v7350_v13 = vadd.f32 %v7349_v55, %v3764_v44  ;;  %v7137_v38 = vcombine.low %v750_v41, %v754_v7  ;;  %v9175_v25 = vld [vmem:[#allocation26_spill] sm:$0xff]  ;;  %v7148_v36 = vcombine.high %v759_v17, %v763_v8 }
 0x1e7   :  { %v3768_v30 = vpop.f32.mrb[11].mxu0  ;;  %4632 = vmatprep.subr.bf16.mxu0 %v7132_v10  ;;  %v7352_v43 = vadd.f32 %v7351_v63, %v3766_v32  ;;  %4130 = vmatmul.mubr.bf16.gmra.mrb[52].mxu1 %v9174_v29  ;;  %v5209_v12 = vmax.f32 %v7348_v33, 0.0  ;;  %v7139_v10 = vcombine.low %v751_v3, %v755_v45  ;;  %v766_v7 = vld [vmem:[#allocation4 + $0xf48] sm:$0xff] }
 0x1e8   :  { %v7354_v26 = vadd.f32 %v7353_v22, %v3768_v30  ;;  %4181 = vmatpush1.bf16.msra.mxu1 %v7129_v28  ;;  %4139 = vmatprep.mubr.bf16.mxu1 %v9175_v25  ;;  %v5210_v55 = vmax.f32 %v7350_v13, 0.0  ;;  %v770_v33 = vld [vmem:[#allocation4 + $0xf68] sm:$0xff]  ;;  %v7145_v30 = vcombine.low %v758_v5, %v762_v24  ;;  %v775_v5 = vld [vmem:[#allocation4 + $0xf90] sm:$0xff] }
 0x1e9   :  { %4582 = vmatmul.mubr.bf16.gmra.mrb[52].mxu0 %v9174_v29  ;;  %v5217_v20 = vmax.f32 %v7352_v43, 0.0  ;;  %4182 = vmatprep.subr.bf16.mxu1 %v7138_v48  ;;  %v767_v48 = vld [vmem:[#allocation4 + $0xf50] sm:$0xff]  ;;  %v774_v29 = vld [vmem:[#allocation4 + $0xf88] sm:$0xff] }
 0x1ea   :  { %4633 = vmatpush1.bf16.msra.mxu0 %v7131_v2  ;;  %v5218_v44 = vmax.f32 %v7354_v26, 0.0  ;;  %v3546_v63 = vpop.f32.mrb[12].mxu1  ;;  %4591 = vmatprep.mubr.bf16.mxu0 %v9175_v25  ;;  %v771_v43 = vld [vmem:[#allocation4 + $0xf70] sm:$0xff] }
 0x1eb   :  { %v8611_v32 = vpack.c.bf16 %v5217_v20, %v5209_v12  ;;  %v7355_v22 = vadd.f32 %v3546_v63, %v8570_v53  ;;  %v3548_v28 = vpop.f32.mrb[13].mxu1  ;;  %4634 = vmatprep.subr.bf16.mxu0 %v7140_v0  ;;  %v7147_v0 = vcombine.low %v759_v17, %v763_v8  ;;  %v7156_v24 = vcombine.high %v767_v48, %v771_v43  ;;  %v9177_v8 = vld [vmem:[#allocation28_spill] sm:$0xff] }
 0x1ec   :  { %v3772_v41 = vpop.f32.mrb[12].mxu0  ;;  %v8614_v2 = vpack.c.bf16 %v5218_v44, %v5210_v55  ;;  %v7357_v3 = vadd.f32 %v3548_v28, %v8575_v4  ;;  %v3550_v45 = vpop.f32.mrb[14].mxu1  ;;  %4183 = vmatpush1.bf16.msra.mxu1 %v7137_v38  ;;  %v7154_v28 = vcombine.high %v766_v7, %v770_v33  ;;  %v9176_v38 = vld [vmem:[#allocation27_spill] sm:$0xff] }
 0x1ed   :  { %v3774_v13 = vpop.f32.mrb[13].mxu0  ;;  %v7359_v26 = vadd.f32 %v3550_v45, %v8570_v53  ;;  %v7356_v12 = vadd.f32 %v7355_v22, %v3772_v41  ;;  %v3552_v20 = vpop.f32.mrb[15].mxu1  ;;  %4184 = vmatprep.subr.bf16.mxu1 %v7146_v50  ;;  %v7153_v22 = vcombine.low %v766_v7, %v770_v33  ;;  %v7162_v41 = vcombine.high %v774_v29, %v774_v29 }
 0x1ee   :  { %v3776_v63 = vpop.f32.mrb[14].mxu0  ;;  %4635 = vmatpush1.bf16.msra.mxu0 %v7139_v10  ;;  %v7361_v25 = vadd.f32 %v3552_v20, %v8575_v4  ;;  %v7358_v55 = vadd.f32 %v7357_v3, %v3774_v13  ;;  %v7155_v10 = vcombine.low %v767_v48, %v771_v43  ;;  %v284_v48 = vld [vmem:[#allocation4 + $0x38] sm:$0xff] }
 0x1ef   :  { %v3778_v44 = vpop.f32.mrb[15].mxu0  ;;  %4636 = vmatprep.subr.bf16.mxu0 %v7148_v36  ;;  %v7360_v42 = vadd.f32 %v7359_v26, %v3776_v63  ;;  %4140 = vmatmul.mubr.bf16.gmra.mrb[56].mxu1 %v9176_v38  ;;  %v5225_v50 = vmax.f32 %v7356_v12, 0.0  ;;  %v7161_v36 = vcombine.low %v774_v29, %v774_v29  ;;  %v7164_v26 = vcombine.high %v775_v5, %v775_v5 }
 0x1f0   :  { %v7362_v23 = vadd.f32 %v7361_v25, %v3778_v44  ;;  %4185 = vmatpush1.bf16.msra.mxu1 %v7145_v30  ;;  %4149 = vmatprep.mubr.bf16.mxu1 %v9177_v8  ;;  %v5226_v3 = vmax.f32 %v7358_v55, 0.0  ;;  %v7163_v25 = vcombine.low %v775_v5, %v775_v5 }
 0x1f1   :  { %4592 = vmatmul.mubr.bf16.gmra.mrb[56].mxu0 %v9176_v38  ;;  %v5233_v17 = vmax.f32 %v7360_v42, 0.0  ;;  %4186 = vmatprep.subr.bf16.mxu1 %v7154_v28  ;;  %v8626_v42 = vld [vmem:[#allocation4 + $0x18] sm:$0xff]  ;;  %v3352_v28 = vsel %vm3344_vm0, %v7161_v36, 0  ;;  %v9179_v36 = vld [vmem:[#allocation30_spill] sm:$0xff] }
 0x1f2   :  { %4637 = vmatpush1.bf16.msra.mxu0 %v7147_v0  ;;  %v5234_v45 = vmax.f32 %v7362_v23, 0.0  ;;  %v3556_v13 = vpop.f32.mrb[16].mxu1  ;;  %4601 = vmatprep.mubr.bf16.mxu0 %v9177_v8 }
 0x1f3   :  { %v8623_v20 = vpack.c.bf16 %v5233_v17, %v5225_v50  ;;  %v7363_v7 = vadd.f32 %v3556_v13, %v8570_v53  ;;  %v3558_v33 = vpop.f32.mrb[17].mxu1  ;;  %4638 = vmatprep.subr.bf16.mxu0 %v7156_v24  ;;  %v3358_v17 = vsel %vm3344_vm0, %v7163_v25, 0  ;;  %v7876_v13 = vld [vmem:[#allocation7 + $0x4] ss:$8 sps:$4 sm:$0xff]   ;;  %v288_v25 = vld [vmem:[#allocation4 + $0x58] sm:$0xff] }
 0x1f4   :  { %v3782_v30 = vpop.f32.mrb[16].mxu0  ;;  %v8628_v43 = vpack.c.bf16 %v5234_v45, %v5226_v3  ;;  %v7365_v23 = vadd.f32 %v3558_v33, %v8575_v4  ;;  %v3560_v29 = vpop.f32.mrb[18].mxu1  ;;  %4187 = vmatpush1.bf16.msra.mxu1 %v7153_v22  ;;  %v6670_v22 = vcombine.high %v8626_v42, %v284_v48  ;;  %v9178_v45 = vld [vmem:[#allocation29_spill] sm:$0xff] }
 0x1f5   :  { %v3784_v12 = vpop.f32.mrb[17].mxu0  ;;  %v7367_v63 = vadd.f32 %v3560_v29, %v8570_v53  ;;  %v7364_v0 = vadd.f32 %v7363_v7, %v3782_v30  ;;  %v3562_v55 = vpop.f32.mrb[19].mxu1  ;;  %7176 = vmatprep.subr.msk.bf16.mxu1 %vm3344_vm0, %v7162_v41 }
 0x1f6   :  { %v3786_v44 = vpop.f32.mrb[18].mxu0  ;;  %4639 = vmatpush1.bf16.msra.mxu0 %v7155_v10  ;;  %v7369_v24 = vadd.f32 %v3562_v55, %v8575_v4  ;;  %v7366_v5 = vadd.f32 %v7365_v23, %v3784_v12  ;;  %v292_v23 = vld [vmem:[#allocation4 + $0x78] sm:$0xff] }
 0x1f7   :  { %v3788_v50 = vpop.f32.mrb[19].mxu0  ;;  %7185 = vmatprep.subr.msk.bf16.mxu0 %vm3344_vm0, %v7164_v26  ;;  %v7368_v3 = vadd.f32 %v7367_v63, %v3786_v44  ;;  %4150 = vmatmul.mubr.bf16.gmra.mrb[60].mxu1 %v9178_v45  ;;  %v5241_v10 = vmax.f32 %v7364_v0, 0.0 }
 0x1f8   :  { %v7370_v7 = vadd.f32 %v7369_v24, %v3788_v50  ;;  %4189 = vmatpush1.bf16.msra.mxu1 %v3352_v28  ;;  %7177 = vmatprep.mubr.msk.bf16.mxu1 %vm3319_vm1, %v9179_v36  ;;  %v5242_v33 = vmax.f32 %v7366_v5, 0.0  ;;  %v6669_v5 = vcombine.low %v8626_v42, %v284_v48  ;;  %v6677_v42 = vcombine.low %v288_v25, %v292_v23 }
 0x1f9   :  { %4602 = vmatmul.mubr.bf16.gmra.mrb[60].mxu0 %v9178_v45  ;;  %v5249_v41 = vmax.f32 %v7368_v3, 0.0  ;;  %4725 = vmatprep.subr.bf16.mxu1 %v6670_v22 }
 0x1fa   :  { %4641 = vmatpush1.bf16.msra.mxu0 %v3358_v17  ;;  %v5250_v26 = vmax.f32 %v7370_v7, 0.0  ;;  %v3566_v30 = vpop.f32.mrb[20].mxu1  ;;  %7186 = vmatprep.mubr.msk.bf16.mxu0 %vm3319_vm1, %v9179_v36  ;;  %v7874_v7 = vld [vmem:[#allocation7] ss:$8 sps:$4 sm:$0xff]  }
 0x1fb   :  { %v8644_v29 = vpack.c.bf16 %v5249_v41, %v5241_v10  ;;  %v7371_v12 = vadd.f32 %v3566_v30, %v8570_v53  ;;  %v3568_v63 = vpop.f32.mrb[21].mxu1  ;;  %6149 = vmatprep.subr.bf16.mxu0 %v7876_v13  ;;  %v6678_v10 = vcombine.high %v288_v25, %v292_v23  ;;  %v7879_v13 = vld [vmem:[#allocation7 + $0x14] ss:$8 sps:$4 sm:$0xff]  }
 0x1fc   :  { %v3792_v0 = vpop.f32.mrb[20].mxu0  ;;  %v8647_v55 = vpack.c.bf16 %v5250_v26, %v5242_v33  ;;  %v7373_v44 = vadd.f32 %v3568_v63, %v8575_v4  ;;  %v3570_v28 = vpop.f32.mrb[22].mxu1  ;;  %v296_v33 = vld [vmem:[#allocation4 + $0x98] sm:$0xff] }
 0x1fd   :  { %v3794_v24 = vpop.f32.mrb[21].mxu0  ;;  %v7375_v50 = vadd.f32 %v3570_v28, %v8570_v53  ;;  %v7372_v17 = vadd.f32 %v7371_v12, %v3792_v0  ;;  %v3572_v22 = vpop.f32.mrb[23].mxu1  ;;  %v300_v26 = vld [vmem:[#allocation4 + $0xb8] sm:$0xff] }
 0x1fe   :  { %v3796_v3 = vpop.f32.mrb[22].mxu0  ;;  %v7377_v41 = vadd.f32 %v3572_v22, %v8575_v4  ;;  %v7374_v30 = vadd.f32 %v7373_v44, %v3794_v24  ;;  %v9180_v63 = vld [vmem:[#allocation31_spill] sm:$0xff]  ;;  %v6686_v28 = vcombine.high %v296_v33, %v300_v26 }
 0x1ff   :  { %v3798_v36 = vpop.f32.mrb[23].mxu0  ;;  %v7376_v45 = vadd.f32 %v7375_v50, %v3796_v3  ;;  %4193 = vmatmul.mubr.bf16.vlgmr.msra.gmra.mrb[32].mxu1 %v9180_v63  ;;  %v5257_v48 = vmax.f32 %v7372_v17, 0.0  ;;  %v7877_v0 = vld [vmem:[#allocation7 + $0x10] ss:$8 sps:$4 sm:$0xff]   ;;  %v7882_v22 = vld [vmem:[#allocation7 + $0x24] ss:$8 sps:$4 sm:$0xff]  }
 0x200   :  { %v7378_v8 = vadd.f32 %v7377_v41, %v3798_v36  ;;  %4726 = vmatpush1.bf16.msra.mxu1 %v6669_v5  ;;  %v5258_v44 = vmax.f32 %v7374_v30, 0.0  ;;  %7178 = vmatprep.mubr.msk.bf16.mxu1 %vm3319_vm1, %v9181_v1  ;;  %v304_v50 = vld [vmem:[#allocation4 + $0xd8] sm:$0xff] }
 0x201   :  { %4645 = vmatmul.mubr.bf16.vlgmr.msra.gmra.mrb[32].mxu0 %v9180_v63  ;;  %v5265_v12 = vmax.f32 %v7376_v45, 0.0  ;;  %4727 = vmatprep.subr.bf16.mxu1 %v6678_v10  ;;  %v308_v36 = vld [vmem:[#allocation4 + $0xf8] sm:$0xff]  ;;  %v6685_v10 = vcombine.low %v296_v33, %v300_v26 }
 0x202   :  { %6150 = vmatpush1.bf16.msra.mxu0 %v7874_v7  ;;  %v5266_v24 = vmax.f32 %v7378_v8, 0.0  ;;  %v3576_v38 = vpop.f32.mrb[24].mxu1  ;;  %7187 = vmatprep.mubr.msk.bf16.mxu0 %vm3319_vm1, %v9181_v1  ;;  %v6693_v26 = vcombine.low %v304_v50, %v308_v36 }
 0x203   :  { %6151 = vmatprep.subr.bf16.mxu0 %v7879_v13  ;;  %v8657_v3 = vpack.c.bf16 %v5265_v12, %v5257_v48  ;;  %v7379_v25 = vadd.f32 %v3576_v38, %v8570_v53  ;;  %v3578_v23 = vpop.f32.mrb[25].mxu1  ;;  %v7880_v38 = vld [vmem:[#allocation7 + $0x20] ss:$8 sps:$4 sm:$0xff]   ;;  %v6694_v12 = vcombine.high %v304_v50, %v308_v36 }
 0x204   :  { %v3802_v45 = vpop.f32.mrb[24].mxu0  ;;  %v8662_v5 = vpack.c.bf16 %v5266_v24, %v5258_v44  ;;  %v7381_v8 = vadd.f32 %v3578_v23, %v8575_v4  ;;  %v3580_v17 = vpop.f32.mrb[26].mxu1  ;;  %4728 = vmatpush1.bf16.msra.mxu1 %v6677_v42  ;;  %v7885_v24 = vld [vmem:[#allocation7 + $0x34] ss:$8 sps:$4 sm:$0xff]  }
 0x205   :  { %v3804_v7 = vpop.f32.mrb[25].mxu0  ;;  %v7383_v41 = vadd.f32 %v3580_v17, %v8570_v53  ;;  %v7380_v30 = vadd.f32 %v7379_v25, %v3802_v45  ;;  %v3582_v13 = vpop.f32.mrb[27].mxu1  ;;  %4729 = vmatprep.subr.bf16.mxu1 %v6686_v28  ;;  %v312_v23 = vld [vmem:[#allocation4 + $0x118] sm:$0xff] }
 0x206   :  { %6152 = vmatpush1.bf16.msra.mxu0 %v7877_v0  ;;  %v3806_v48 = vpop.f32.mrb[26].mxu0  ;;  %v7385_v63 = vadd.f32 %v3582_v13, %v8575_v4  ;;  %v7382_v1 = vadd.f32 %v7381_v8, %v3804_v7  ;;  %v7883_v25 = vld [vmem:[#allocation7 + $0x30] ss:$8 sps:$4 sm:$0xff]   ;;  %v6702_v45 = vcombine.high %v312_v23, %v316_v34  ;;  %v7888_v8 = vld [vmem:[#allocation7 + $0x44] ss:$8 sps:$4 sm:$0xff]  }
 0x207   :  { %v3808_v44 = vpop.f32.mrb[27].mxu0  ;;  %6153 = vmatprep.subr.bf16.mxu0 %v7882_v22  ;;  %v7384_v42 = vadd.f32 %v7383_v41, %v3806_v48  ;;  %4203 = vmatmul.mubr.bf16.gmra.mrb[36].mxu1 %v9182_v52  ;;  %v5273_v0 = vmax.f32 %v7380_v30, 0.0  ;;  %v9183_v13 = vld [vmem:[#allocation37_spill] sm:$0xff]  ;;  %v320_v41 = vld [vmem:[#allocation4 + $0x158] sm:$0xff] }
 0x208   :  { %v7386_v33 = vadd.f32 %v7385_v63, %v3808_v44  ;;  %4730 = vmatpush1.bf16.msra.mxu1 %v6685_v10  ;;  %v5274_v17 = vmax.f32 %v7382_v1, 0.0  ;;  %7179 = vmatprep.mubr.msk.bf16.mxu1 %vm3319_vm1, %v9183_v13  ;;  %v324_v63 = vld [vmem:[#allocation4 + $0x178] sm:$0xff]  ;;  %v6701_v44 = vcombine.low %v312_v23, %v316_v34 }
 0x209   :  { %4655 = vmatmul.mubr.bf16.gmra.mrb[36].mxu0 %v9182_v52  ;;  %v5281_v28 = vmax.f32 %v7384_v42, 0.0  ;;  %4731 = vmatprep.subr.bf16.mxu1 %v6694_v12 }
 0x20a   :  { %6154 = vmatpush1.bf16.msra.mxu0 %v7880_v38  ;;  %v5282_v22 = vmax.f32 %v7386_v33, 0.0  ;;  %v3586_v7 = vpop.f32.mrb[28].mxu1  ;;  %7188 = vmatprep.mubr.msk.bf16.mxu0 %vm3319_vm1, %v9183_v13 }
 0x20b   :  { %6155 = vmatprep.subr.bf16.mxu0 %v7885_v24  ;;  %v8671_v48 = vpack.c.bf16 %v5281_v28, %v5273_v0  ;;  %v7387_v50 = vadd.f32 %v3586_v7, %v8570_v53  ;;  %v3588_v36 = vpop.f32.mrb[29].mxu1  ;;  %v7886_v28 = vld [vmem:[#allocation7 + $0x40] ss:$8 sps:$4 sm:$0xff]   ;;  %v6710_v7 = vcombine.high %v320_v41, %v324_v63 }
 0x20c   :  { %v3812_v10 = vpop.f32.mrb[28].mxu0  ;;  %v8676_v30 = vpack.c.bf16 %v5282_v22, %v5274_v17  ;;  %v7389_v1 = vadd.f32 %v3588_v36, %v8575_v4  ;;  %v3590_v38 = vpop.f32.mrb[30].mxu1  ;;  %4732 = vmatpush1.bf16.msra.mxu1 %v6693_v26  ;;  %v7891_v22 = vld [vmem:[#allocation7 + $0x54] ss:$8 sps:$4 sm:$0xff]  }
 0x20d   :  { %v3814_v12 = vpop.f32.mrb[29].mxu0  ;;  %v7391_v24 = vadd.f32 %v3590_v38, %v8570_v53  ;;  %v7388_v42 = vadd.f32 %v7387_v50, %v3812_v10  ;;  %v3592_v33 = vpop.f32.mrb[31].mxu1  ;;  %4733 = vmatprep.subr.bf16.mxu1 %v6702_v45  ;;  %v328_v36 = vld [vmem:[#allocation4 + $0x198] sm:$0xff]  ;;  %v6709_v53 = vcombine.low %v320_v41, %v324_v63 }
 0x20e   :  { %6156 = vmatpush1.bf16.msra.mxu0 %v7883_v25  ;;  %v3816_v0 = vpop.f32.mrb[30].mxu0  ;;  %v7393_v52 = vadd.f32 %v3592_v33, %v8575_v4  ;;  %v7390_v13 = vadd.f32 %v7389_v1, %v3814_v12  ;;  %v7889_v45 = vld [vmem:[#allocation7 + $0x50] ss:$8 sps:$4 sm:$0xff]   ;;  %v6718_v4 = vcombine.high %v328_v36, %v332_v59  ;;  %v7894_v1 = vld [vmem:[#allocation7 + $0x64] ss:$8 sps:$4 sm:$0xff]   ;;  %v6717_v63 = vcombine.low %v328_v36, %v332_v59 }
 0x20f   :  { %v3818_v17 = vpop.f32.mrb[31].mxu0  ;;  %6157 = vmatprep.subr.bf16.mxu0 %v7888_v8  ;;  %v7392_v26 = vadd.f32 %v7391_v24, %v3816_v0  ;;  %4213 = vmatmul.mubr.bf16.gmra.mrb[40].mxu1 %v9184_v37  ;;  %v5289_v23 = vmax.f32 %v7388_v42, 0.0  ;;  %v9185_v8 = vld [vmem:[#allocation41_spill] sm:$0xff]  ;;  %v336_v38 = vld [vmem:[#allocation4 + $0x1d8] sm:$0xff] }
 0x210   :  { %v7394_v34 = vadd.f32 %v7393_v52, %v3818_v17  ;;  %4734 = vmatpush1.bf16.msra.mxu1 %v6701_v44  ;;  %v5290_v50 = vmax.f32 %v7390_v13, 0.0  ;;  %7180 = vmatprep.mubr.msk.bf16.mxu1 %vm3319_vm1, %v9185_v8  ;;  %v340_v12 = vld [vmem:[#allocation4 + $0x1f8] sm:$0xff]  ;;  %v7892_v13 = vld [vmem:[#allocation7 + $0x60] ss:$8 sps:$4 sm:$0xff]  }
 0x211   :  { %4665 = vmatmul.mubr.bf16.gmra.mrb[40].mxu0 %v9184_v37  ;;  %v5297_v25 = vmax.f32 %v7392_v26, 0.0  ;;  %4735 = vmatprep.subr.bf16.mxu1 %v6710_v7  ;;  %v6726_v44 = vcombine.high %v336_v38, %v340_v12  ;;  %v7897_v24 = vld [vmem:[#allocation7 + $0x74] ss:$8 sps:$4 sm:$0xff]   ;;  %v9186_v0 = vld [vmem:[#allocation43_spill] sm:$0xff] }
 0x212   :  { %6158 = vmatpush1.bf16.msra.mxu0 %v7886_v28  ;;  %v5298_v10 = vmax.f32 %v7394_v34, 0.0  ;;  %7189 = vmatprep.mubr.msk.bf16.mxu0 %vm3319_vm1, %v9185_v8  ;;  %v344_v42 = vld [vmem:[#allocation4 + $0x218] sm:$0xff]  ;;  %v6725_v28 = vcombine.low %v336_v38, %v340_v12  ;;  %v9187_v59 = vld [vmem:[#allocation45_spill] sm:$0xff] }
 0x213   :  { %6159 = vmatprep.subr.bf16.mxu0 %v7891_v22  ;;  %v8685_v52 = vpack.c.bf16 %v5297_v25, %v5289_v23  ;;  %v348_v33 = vld [vmem:[#allocation4 + $0x238] sm:$0xff]  ;;  %v7900_v22 = vld [vmem:[#allocation7 + $0x84] ss:$8 sps:$4 sm:$0xff]   ;;  %v9189_v12 = vld [vmem:[#allocation49_spill] sm:$0xff] }
 0x214   :  { %v8689_v41 = vpack.c.bf16 %v5298_v10, %v5290_v50  ;;  %4736 = vmatpush1.bf16.msra.mxu1 %v6709_v53  ;;  %v7895_v7 = vld [vmem:[#allocation7 + $0x70] ss:$8 sps:$4 sm:$0xff]   ;;  %v6734_v17 = vcombine.high %v344_v42, %v348_v33  ;;  %v6733_v34 = vcombine.low %v344_v42, %v348_v33  ;;  %v7898_v53 = vld [vmem:[#allocation7 + $0x80] ss:$8 sps:$4 sm:$0xff]   ;;  %v7903_v25 = vld [vmem:[#allocation7 + $0x94] ss:$8 sps:$4 sm:$0xff]  }
 0x215   :  { %4737 = vmatprep.subr.bf16.mxu1 %v6718_v4  ;;  %v352_v36 = vld [vmem:[#allocation4 + $0x258] sm:$0xff]  ;;  %v7904_v42 = vld [vmem:[#allocation7 + $0xa0] ss:$8 sps:$4 sm:$0xff]  }
 0x216   :  { %6160 = vmatpush1.bf16.msra.mxu0 %v7889_v45  ;;  %v356_v26 = vld [vmem:[#allocation4 + $0x278] sm:$0xff] }
 0x217   :  { %6161 = vmatprep.subr.bf16.mxu0 %v7894_v1  ;;  %4223 = vmatmul.mubr.bf16.gmra.mrb[44].mxu1 %v9186_v0  ;;  %v6742_v23 = vcombine.high %v352_v36, %v356_v26  ;;  %v360_v45 = vld [vmem:[#allocation4 + $0x298] sm:$0xff]  ;;  %v6741_v10 = vcombine.low %v352_v36, %v356_v26 }
 0x218   :  { %4738 = vmatpush1.bf16.msra.mxu1 %v6717_v63  ;;  %7181 = vmatprep.mubr.msk.bf16.mxu1 %vm3319_vm1, %v9187_v59  ;;  %v364_v4 = vld [vmem:[#allocation4 + $0x2b8] sm:$0xff]  ;;  %v7906_v63 = vld [vmem:[#allocation7 + $0xa4] ss:$8 sps:$4 sm:$0xff]  }
 0x219   :  { %4675 = vmatmul.mubr.bf16.gmra.mrb[44].mxu0 %v9186_v0  ;;  %4739 = vmatprep.subr.bf16.mxu1 %v6726_v44  ;;  %v9188_v50 = vld [vmem:[#allocation47_spill] sm:$0xff]  ;;  %v6750_v38 = vcombine.high %v360_v45, %v364_v4 }
 0x21a   :  { %6162 = vmatpush1.bf16.msra.mxu0 %v7892_v13  ;;  %7190 = vmatprep.mubr.msk.bf16.mxu0 %vm3319_vm1, %v9187_v59  ;;  %v7901_v1 = vld [vmem:[#allocation7 + $0x90] ss:$8 sps:$4 sm:$0xff]  }
 0x21b   :  { %6163 = vmatprep.subr.bf16.mxu0 %v7897_v24  ;;  %v368_v13 = vld [vmem:[#allocation4 + $0x2d8] sm:$0xff]  ;;  %v6749_v24 = vcombine.low %v360_v45, %v364_v4 }
 0x21c   :  { %4740 = vmatpush1.bf16.msra.mxu1 %v6725_v28  ;;  %v372_v44 = vld [vmem:[#allocation4 + $0x2f8] sm:$0xff] }
 0x21d   :  { %4741 = vmatprep.subr.bf16.mxu1 %v6734_v17  ;;  %v6758_v33 = vcombine.high %v368_v13, %v372_v44  ;;  %v7909_v28 = vld [vmem:[#allocation7 + $0xb4] ss:$8 sps:$4 sm:$0xff]   ;;  %v6757_v36 = vcombine.low %v368_v13, %v372_v44  ;;  %v7907_v26 = vld [vmem:[#allocation7 + $0xb0] ss:$8 sps:$4 sm:$0xff]  }
 0x21e   :  { %6164 = vmatpush1.bf16.msra.mxu0 %v7895_v7  ;;  %v376_v7 = vld [vmem:[#allocation4 + $0x318] sm:$0xff] }
 0x21f   :  { %6165 = vmatprep.subr.bf16.mxu0 %v7900_v22  ;;  %4233 = vmatmul.mubr.bf16.gmra.mrb[48].mxu1 %v9188_v50  ;;  %v380_v17 = vld [vmem:[#allocation4 + $0x338] sm:$0xff] }
 0x220   :  { %4742 = vmatpush1.bf16.msra.mxu1 %v6733_v34  ;;  %7182 = vmatprep.mubr.msk.bf16.mxu1 %vm3319_vm1, %v9189_v12  ;;  %v9190_v22 = vld [vmem:[#allocation51_spill] sm:$0xff]  ;;  %v6766_v34 = vcombine.high %v376_v7, %v380_v17  ;;  %v6765_v4 = vcombine.low %v376_v7, %v380_v17 }
 0x221   :  { %4685 = vmatmul.mubr.bf16.gmra.mrb[48].mxu0 %v9188_v50  ;;  %4743 = vmatprep.subr.bf16.mxu1 %v6742_v23  ;;  %v7912_v23 = vld [vmem:[#allocation7 + $0xc4] ss:$8 sps:$4 sm:$0xff]   ;;  %v388_v45 = vld [vmem:[#allocation4 + $0x378] sm:$0xff] }
 0x222   :  { %6166 = vmatpush1.bf16.msra.mxu0 %v7898_v53  ;;  %7191 = vmatprep.mubr.msk.bf16.mxu0 %vm3319_vm1, %v9189_v12  ;;  %v9191_v53 = vld [vmem:[#allocation53_spill] sm:$0xff]  ;;  %v396_v13 = vld [vmem:[#allocation4 + $0x3b8] sm:$0xff] }
 0x223   :  { %6167 = vmatprep.subr.bf16.mxu0 %v7903_v25  ;;  %v384_v25 = vld [vmem:[#allocation4 + $0x358] sm:$0xff] }
 0x224   :  { %4744 = vmatpush1.bf16.msra.mxu1 %v6741_v10  ;;  %v7910_v10 = vld [vmem:[#allocation7 + $0xc0] ss:$8 sps:$4 sm:$0xff]   ;;  %v6773_v44 = vcombine.low %v384_v25, %v388_v45  ;;  %v404_v7 = vld [vmem:[#allocation4 + $0x3f8] sm:$0xff] }
 0x225   :  { %4745 = vmatprep.subr.bf16.mxu1 %v6750_v38  ;;  %v7915_v38 = vld [vmem:[#allocation7 + $0xd4] ss:$8 sps:$4 sm:$0xff]  }
 0x226   :  { %6168 = vmatpush1.bf16.msra.mxu0 %v7901_v1  ;;  %v6774_v1 = vcombine.high %v384_v25, %v388_v45  ;;  %v412_v25 = vld [vmem:[#allocation4 + $0x438] sm:$0xff] }
 0x227   :  { %6169 = vmatprep.subr.bf16.mxu0 %v7906_v63  ;;  %4243 = vmatmul.mubr.bf16.gmra.mrb[52].mxu1 %v9190_v22  ;;  %v392_v63 = vld [vmem:[#allocation4 + $0x398] sm:$0xff] }
 0x228   :  { %4746 = vmatpush1.bf16.msra.mxu1 %v6749_v24  ;;  %7183 = vmatprep.mubr.msk.bf16.mxu1 %vm3319_vm1, %v9191_v53  ;;  %v7913_v24 = vld [vmem:[#allocation7 + $0xd0] ss:$8 sps:$4 sm:$0xff]   ;;  %v6781_v17 = vcombine.low %v392_v63, %v396_v13 }
 0x229   :  { %4695 = vmatmul.mubr.bf16.gmra.mrb[52].mxu0 %v9190_v22  ;;  %4747 = vmatprep.subr.bf16.mxu1 %v6758_v33  ;;  %v7918_v33 = vld [vmem:[#allocation7 + $0xe4] ss:$8 sps:$4 sm:$0xff]  }
 0x22a   :  { %6170 = vmatpush1.bf16.msra.mxu0 %v7904_v42  ;;  %7192 = vmatprep.mubr.msk.bf16.mxu0 %vm3319_vm1, %v9191_v53  ;;  %v6782_v42 = vcombine.high %v392_v63, %v396_v13  ;;  %v7924_v63 = vld [vmem:[#allocation7 + $0x104] ss:$8 sps:$4 sm:$0xff]  }
 0x22b   :  { %6171 = vmatprep.subr.bf16.mxu0 %v7909_v28  ;;  %v400_v28 = vld [vmem:[#allocation4 + $0x3d8] sm:$0xff] }
 0x22c   :  { %4748 = vmatpush1.bf16.msra.mxu1 %v6757_v36  ;;  %v7916_v36 = vld [vmem:[#allocation7 + $0xe0] ss:$8 sps:$4 sm:$0xff]   ;;  %v6789_v45 = vcombine.low %v400_v28, %v404_v7 }
 0x22d   :  { %4749 = vmatprep.subr.bf16.mxu1 %v6766_v34  ;;  %v7921_v34 = vld [vmem:[#allocation7 + $0xf4] ss:$8 sps:$4 sm:$0xff]  }
 0x22e   :  { %6172 = vmatpush1.bf16.msra.mxu0 %v7907_v26  ;;  %v6790_v26 = vcombine.high %v400_v28, %v404_v7  ;;  %v432_v7 = vld [vmem:[#allocation4 + $0x4d8] sm:$0xff] }
 0x22f   :  { %6173 = vmatprep.subr.bf16.mxu0 %v7912_v23  ;;  %4253 = vmatmul.mubr.bf16.gmra.mrb[56].mxu1 %v8472_v11  ;;  %v408_v23 = vld [vmem:[#allocation4 + $0x418] sm:$0xff] }
 0x230   :  { %4750 = vmatpush1.bf16.msra.mxu1 %v6765_v4  ;;  %7184 = vmatprep.mubr.msk.bf16.mxu1 %vm3319_vm1, %v8477_v61  ;;  %v7919_v4 = vld [vmem:[#allocation7 + $0xf0] ss:$8 sps:$4 sm:$0xff]   ;;  %v6797_v13 = vcombine.low %v408_v23, %v412_v25 }
 0x231   :  { %4705 = vmatmul.mubr.bf16.gmra.mrb[56].mxu0 %v8472_v11  ;;  %4751 = vmatprep.subr.bf16.mxu1 %v6774_v1  ;;  %v416_v1 = vld [vmem:[#allocation4 + $0x458] sm:$0xff] }
 0x232   :  { %6174 = vmatpush1.bf16.msra.mxu0 %v7910_v10  ;;  %7193 = vmatprep.mubr.msk.bf16.mxu0 %vm3319_vm1, %v8477_v61  ;;  %v6798_v10 = vcombine.high %v408_v23, %v412_v25  ;;  %v440_v23 = vld [vmem:[#allocation4 + $0x518] sm:$0xff]  ;;  %v7928_v25 = vld [vmem:[#allocation7 + $0x120] ss:$8 sps:$4 sm:$0xff]  }
 0x233   :  { %6175 = vmatprep.subr.bf16.mxu0 %v7915_v38  ;;  %v420_v38 = vld [vmem:[#allocation4 + $0x478] sm:$0xff] }
 0x234   :  { %4752 = vmatpush1.bf16.msra.mxu1 %v6773_v44  ;;  %v6806_v44 = vcombine.high %v416_v1, %v420_v38  ;;  %v6805_v28 = vcombine.low %v416_v1, %v420_v38  ;;  %v7931_v1 = vld [vmem:[#allocation7 + $0x130] ss:$8 sps:$4 sm:$0xff]   ;;  %v7936_v38 = vld [vmem:[#allocation7 + $0x144] ss:$8 sps:$4 sm:$0xff]  }
 0x235   :  { %4753 = vmatprep.subr.bf16.mxu1 %v6782_v42  ;;  %v428_v42 = vld [vmem:[#allocation4 + $0x4b8] sm:$0xff] }
 0x236   :  { %6176 = vmatpush1.bf16.msra.mxu0 %v7913_v24  ;;  %v424_v24 = vld [vmem:[#allocation4 + $0x498] sm:$0xff] }
 0x237   :  { %6177 = vmatprep.subr.bf16.mxu0 %v7918_v33  ;;  %4263 = vmatmul.mubr.bf16.gmra.mrb[60].mxu1 %v8485_v16  ;;  %v7922_v33 = vld [vmem:[#allocation7 + $0x100] ss:$8 sps:$4 sm:$0xff]  }
 0x238   :  { %4754 = vmatpush1.bf16.msra.mxu1 %v6781_v17  ;;  %4757 = vmatprep.mubr.bf16.mxu1 %v8287_v58  ;;  %v6814_v58 = vcombine.high %v424_v24, %v428_v42  ;;  %v436_v17 = vld [vmem:[#allocation4 + $0x4f8] sm:$0xff] }
 0x239   :  { %4715 = vmatmul.mubr.bf16.gmra.mrb[60].mxu0 %v8485_v16  ;;  %4755 = vmatprep.subr.bf16.mxu1 %v6790_v26  ;;  %v7930_v26 = vld [vmem:[#allocation7 + $0x124] ss:$8 sps:$4 sm:$0xff]  }
 0x23a   :  { %6178 = vmatpush1.bf16.msra.mxu0 %v7916_v36  ;;  %6181 = vmatprep.mubr.bf16.mxu0 %v8590_v6  ;;  %v7927_v6 = vld [vmem:[#allocation7 + $0x114] ss:$8 sps:$4 sm:$0xff]   ;;  %v7925_v36 = vld [vmem:[#allocation7 + $0x110] ss:$8 sps:$4 sm:$0xff]  }
 0x23b   :  { %6179 = vmatprep.subr.bf16.mxu0 %v7921_v34  ;;  %v6813_v34 = vcombine.low %v424_v24, %v428_v42  ;;  %v464_v42 = vld [vmem:[#allocation4 + $0x5d8] sm:$0xff] }
 0x23c   :  { %4756 = vmatpush1.bf16.msra.mxu1 %v6789_v45 }
 0x23d   :  { %4838 = vmatprep.subr.bf16.mxu1 %v6798_v10  ;;  %v452_v10 = vld [vmem:[#allocation4 + $0x578] sm:$0xff] }
 0x23e   :  { %6180 = vmatpush1.bf16.msra.mxu0 %v7919_v4  ;;  %v448_v4 = vld [vmem:[#allocation4 + $0x558] sm:$0xff] }
 0x23f   :  { %6262 = vmatprep.subr.bf16.mxu0 %v7924_v63  ;;  %4758 = vmatmul.mubr.bf16.vlgmr.msra.gmra.mrb[64].mxu1 %v8293_v21  ;;  %v6822_v21 = vcombine.high %v432_v7, %v436_v17  ;;  %v6838_v63 = vcombine.high %v448_v4, %v452_v10 }
 0x240   :  { %4839 = vmatpush1.bf16.msra.mxu1 %v6797_v13  ;;  %4767 = vmatprep.mubr.bf16.mxu1 %v8297_v31  ;;  %v6821_v31 = vcombine.low %v432_v7, %v436_v17  ;;  %v456_v13 = vld [vmem:[#allocation4 + $0x598] sm:$0xff]  ;;  %v7940_v17 = vld [vmem:[#allocation7 + $0x160] ss:$8 sps:$4 sm:$0xff]  }
 0x241   :  { %6182 = vmatmul.mubr.bf16.vlgmr.msra.gmra.mrb[64].mxu0 %v8587_v56  ;;  %4840 = vmatprep.subr.bf16.mxu1 %v6806_v44  ;;  %v444_v56 = vld [vmem:[#allocation4 + $0x538] sm:$0xff]  ;;  %v7934_v44 = vld [vmem:[#allocation7 + $0x140] ss:$8 sps:$4 sm:$0xff]  }
 0x242   :  { %6191 = vmatprep.mubr.bf16.mxu0 %v8602_v46  ;;  %6263 = vmatpush1.bf16.msra.mxu0 %v7922_v33  ;;  %v7933_v46 = vld [vmem:[#allocation7 + $0x134] ss:$8 sps:$4 sm:$0xff]   ;;  %v6830_v45 = vcombine.high %v440_v23, %v444_v56 }
 0x243   :  { %6264 = vmatprep.subr.bf16.mxu0 %v7927_v6  ;;  %v468_v33 = vld [vmem:[#allocation4 + $0x5f8] sm:$0xff] }
 0x244   :  { %4841 = vmatpush1.bf16.msra.mxu1 %v6805_v28  ;;  %v7937_v6 = vld [vmem:[#allocation7 + $0x150] ss:$8 sps:$4 sm:$0xff]   ;;  %v7942_v28 = vld [vmem:[#allocation7 + $0x164] ss:$8 sps:$4 sm:$0xff]  }
 0x245   :  { %4842 = vmatprep.subr.bf16.mxu1 %v6814_v58  ;;  %v6854_v58 = vcombine.high %v464_v42, %v468_v33  ;;  %v472_v7 = vld [vmem:[#allocation4 + $0x618] sm:$0xff] }
 0x246   :  { %6265 = vmatpush1.bf16.msra.mxu0 %v7925_v36 }
 0x247   :  { %4768 = vmatmul.mubr.bf16.gmra.mrb[68].mxu1 %v8305_v49  ;;  %6266 = vmatprep.subr.bf16.mxu0 %v7930_v26  ;;  %v6829_v49 = vcombine.low %v440_v23, %v444_v56  ;;  %v480_v26 = vld [vmem:[#allocation4 + $0x658] sm:$0xff]  ;;  %v7948_v23 = vld [vmem:[#allocation7 + $0x184] ss:$8 sps:$4 sm:$0xff]  }
 0x248   :  { %4843 = vmatpush1.bf16.msra.mxu1 %v6813_v34  ;;  %4777 = vmatprep.mubr.bf16.mxu1 %v8309_v60  ;;  %v6837_v60 = vcombine.low %v448_v4, %v452_v10  ;;  %v484_v34 = vld [vmem:[#allocation4 + $0x678] sm:$0xff] }
 0x249   :  { %6192 = vmatmul.mubr.bf16.gmra.mrb[68].mxu0 %v8599_v54  ;;  %4844 = vmatprep.subr.bf16.mxu1 %v6822_v21  ;;  %v460_v54 = vld [vmem:[#allocation4 + $0x5b8] sm:$0xff]  ;;  %v6870_v56 = vcombine.high %v480_v26, %v484_v34 }
 0x24a   :  { %6201 = vmatprep.mubr.bf16.mxu0 %v8614_v2  ;;  %6267 = vmatpush1.bf16.msra.mxu0 %v7928_v25  ;;  %v7939_v2 = vld [vmem:[#allocation7 + $0x154] ss:$8 sps:$4 sm:$0xff]   ;;  %v6846_v24 = vcombine.high %v456_v13, %v460_v54  ;;  %v7943_v21 = vld [vmem:[#allocation7 + $0x170] ss:$8 sps:$4 sm:$0xff]  }
 0x24b   :  { %6268 = vmatprep.subr.bf16.mxu0 %v7933_v46  ;;  %v488_v25 = vld [vmem:[#allocation4 + $0x698] sm:$0xff]  ;;  %v7946_v46 = vld [vmem:[#allocation7 + $0x180] ss:$8 sps:$4 sm:$0xff]  }
 0x24c   :  { %4845 = vmatpush1.bf16.msra.mxu1 %v6821_v31  ;;  %v500_v4 = vld [vmem:[#allocation4 + $0x6f8] sm:$0xff] }
 0x24d   :  { %4846 = vmatprep.subr.bf16.mxu1 %v6830_v45  ;;  %v496_v45 = vld [vmem:[#allocation4 + $0x6d8] sm:$0xff] }
 0x24e   :  { %6269 = vmatpush1.bf16.msra.mxu0 %v7931_v1  ;;  %v7949_v10 = vld [vmem:[#allocation7 + $0x190] ss:$8 sps:$4 sm:$0xff]   ;;  %v7954_v1 = vld [vmem:[#allocation7 + $0x1a4] ss:$8 sps:$4 sm:$0xff]  }
 0x24f   :  { %4778 = vmatmul.mubr.bf16.gmra.mrb[72].mxu1 %v8317_v15  ;;  %6270 = vmatprep.subr.bf16.mxu0 %v7936_v38  ;;  %v6845_v15 = vcombine.low %v456_v13, %v460_v54  ;;  %v6886_v38 = vcombine.high %v496_v45, %v500_v4  ;;  %v512_v54 = vld [vmem:[#allocation4 + $0x758] sm:$0xff] }
 0x250   :  { %4847 = vmatpush1.bf16.msra.mxu1 %v6829_v49  ;;  %4787 = vmatprep.mubr.bf16.mxu1 %v8321_v27  ;;  %v6853_v27 = vcombine.low %v464_v42, %v468_v33  ;;  %v504_v49 = vld [vmem:[#allocation4 + $0x718] sm:$0xff]  ;;  %v7958_v33 = vld [vmem:[#allocation7 + $0x1c0] ss:$8 sps:$4 sm:$0xff]  }
 0x251   :  { %6202 = vmatmul.mubr.bf16.gmra.mrb[72].mxu0 %v8611_v32  ;;  %4848 = vmatprep.subr.bf16.mxu1 %v6838_v63  ;;  %v476_v32 = vld [vmem:[#allocation4 + $0x638] sm:$0xff]  ;;  %v7952_v63 = vld [vmem:[#allocation7 + $0x1a0] ss:$8 sps:$4 sm:$0xff]  }
 0x252   :  { %6211 = vmatprep.mubr.bf16.mxu0 %v8628_v43  ;;  %6271 = vmatpush1.bf16.msra.mxu0 %v7934_v44  ;;  %v7945_v43 = vld [vmem:[#allocation7 + $0x174] ss:$8 sps:$4 sm:$0xff]   ;;  %v6862_v36 = vcombine.high %v472_v7, %v476_v32 }
 0x253   :  { %6272 = vmatprep.subr.bf16.mxu0 %v7939_v2  ;;  %v516_v44 = vld [vmem:[#allocation4 + $0x778] sm:$0xff] }
 0x254   :  { %4849 = vmatpush1.bf16.msra.mxu1 %v6837_v60  ;;  %v7955_v2 = vld [vmem:[#allocation7 + $0x1b0] ss:$8 sps:$4 sm:$0xff]   ;;  %v7960_v60 = vld [vmem:[#allocation7 + $0x1c4] ss:$8 sps:$4 sm:$0xff]  }
 0x255   :  { %4850 = vmatprep.subr.bf16.mxu1 %v6846_v24  ;;  %v6902_v24 = vcombine.high %v512_v54, %v516_v44  ;;  %v520_v42 = vld [vmem:[#allocation4 + $0x798] sm:$0xff] }
 0x256   :  { %6273 = vmatpush1.bf16.msra.mxu0 %v7937_v6 }
 0x257   :  { %4788 = vmatmul.mubr.bf16.gmra.mrb[76].mxu1 %v8329_v47  ;;  %6274 = vmatprep.subr.bf16.mxu0 %v7942_v28  ;;  %v6861_v47 = vcombine.low %v472_v7, %v476_v32  ;;  %v528_v28 = vld [vmem:[#allocation4 + $0x7d8] sm:$0xff]  ;;  %v7966_v7 = vld [vmem:[#allocation7 + $0x1e4] ss:$8 sps:$4 sm:$0xff]  }
 0x258   :  { %4851 = vmatpush1.bf16.msra.mxu1 %v6845_v15  ;;  %4797 = vmatprep.mubr.bf16.mxu1 %v8333_v62  ;;  %v6869_v62 = vcombine.low %v480_v26, %v484_v34  ;;  %v532_v15 = vld [vmem:[#allocation4 + $0x7f8] sm:$0xff] }
 0x259   :  { %6212 = vmatmul.mubr.bf16.gmra.mrb[76].mxu0 %v8623_v20  ;;  %4852 = vmatprep.subr.bf16.mxu1 %v6854_v58  ;;  %v492_v20 = vld [vmem:[#allocation4 + $0x6b8] sm:$0xff]  ;;  %v6918_v32 = vcombine.high %v528_v28, %v532_v15 }
 0x25a   :  { %6221 = vmatprep.mubr.bf16.mxu0 %v8647_v55  ;;  %6275 = vmatpush1.bf16.msra.mxu0 %v7940_v17  ;;  %v7951_v55 = vld [vmem:[#allocation7 + $0x194] ss:$8 sps:$4 sm:$0xff]   ;;  %v6878_v31 = vcombine.high %v488_v25, %v492_v20  ;;  %v7961_v58 = vld [vmem:[#allocation7 + $0x1d0] ss:$8 sps:$4 sm:$0xff]  }
 0x25b   :  { %6276 = vmatprep.subr.bf16.mxu0 %v7945_v43  ;;  %v536_v17 = vld [vmem:[#allocation4 + $0x818] sm:$0xff]  ;;  %v7964_v43 = vld [vmem:[#allocation7 + $0x1e0] ss:$8 sps:$4 sm:$0xff]  }
 0x25c   :  { %4853 = vmatpush1.bf16.msra.mxu1 %v6853_v27  ;;  %v548_v26 = vld [vmem:[#allocation4 + $0x878] sm:$0xff] }
 0x25d   :  { %4854 = vmatprep.subr.bf16.mxu1 %v6862_v36  ;;  %v544_v36 = vld [vmem:[#allocation4 + $0x858] sm:$0xff] }
 0x25e   :  { %6277 = vmatpush1.bf16.msra.mxu0 %v7943_v21  ;;  %v7967_v34 = vld [vmem:[#allocation7 + $0x1f0] ss:$8 sps:$4 sm:$0xff]   ;;  %v7972_v21 = vld [vmem:[#allocation7 + $0x204] ss:$8 sps:$4 sm:$0xff]  }
 0x25f   :  { %4798 = vmatmul.mubr.bf16.gmra.mrb[80].mxu1 %v8341_v18  ;;  %6278 = vmatprep.subr.bf16.mxu0 %v7948_v23  ;;  %v6877_v18 = vcombine.low %v488_v25, %v492_v20  ;;  %v560_v20 = vld [vmem:[#allocation4 + $0x8d8] sm:$0xff] }
 0x260   :  { %4855 = vmatpush1.bf16.msra.mxu1 %v6861_v47  ;;  %4807 = vmatprep.mubr.bf16.mxu1 %v8345_v35  ;;  %v6885_v35 = vcombine.low %v496_v45, %v500_v4  ;;  %v552_v47 = vld [vmem:[#allocation4 + $0x898] sm:$0xff]  ;;  %v9193_v4 = vld [vmem:[#allocation34_spill] sm:$0xff] }
 0x261   :  { %6222 = vmatmul.mubr.bf16.gmra.mrb[80].mxu0 %v8644_v29  ;;  %4856 = vmatprep.subr.bf16.mxu1 %v6870_v56  ;;  %v508_v29 = vld [vmem:[#allocation4 + $0x738] sm:$0xff] }
 0x262   :  { %6231 = vmatprep.mubr.bf16.mxu0 %v8662_v5  ;;  %6279 = vmatpush1.bf16.msra.mxu0 %v7946_v46  ;;  %v7957_v5 = vld [vmem:[#allocation7 + $0x1b4] ss:$8 sps:$4 sm:$0xff]   ;;  %v6894_v13 = vcombine.high %v504_v49, %v508_v29 }
 0x263   :  { %6280 = vmatprep.subr.bf16.mxu0 %v7951_v55  ;;  %v556_v56 = vld [vmem:[#allocation4 + $0x8b8] sm:$0xff] }
 0x264   :  { %4857 = vmatpush1.bf16.msra.mxu1 %v6869_v62  ;;  %v6942_v25 = vcombine.high %v552_v47, %v556_v56  ;;  %v564_v46 = vld [vmem:[#allocation4 + $0x8f8] sm:$0xff]  ;;  %v6941_v55 = vcombine.low %v552_v47, %v556_v56 }
 0x265   :  { %4858 = vmatprep.subr.bf16.mxu1 %v6878_v31  ;;  %v6950_v62 = vcombine.high %v560_v20, %v564_v46  ;;  %v568_v31 = vld [vmem:[#allocation4 + $0x918] sm:$0xff] }
 0x266   :  { %6281 = vmatpush1.bf16.msra.mxu0 %v7949_v10  ;;  %v572_v45 = vld [vmem:[#allocation4 + $0x938] sm:$0xff]  ;;  %v6949_v10 = vcombine.low %v560_v20, %v564_v46 }
 0x267   :  { %4808 = vmatmul.mubr.bf16.gmra.mrb[84].mxu1 %v8353_v57  ;;  %6282 = vmatprep.subr.bf16.mxu0 %v7954_v1  ;;  %v6893_v57 = vcombine.low %v504_v49, %v508_v29  ;;  %v6958_v1 = vcombine.high %v568_v31, %v572_v45  ;;  %v6957_v49 = vcombine.low %v568_v31, %v572_v45  ;;  %v9202_v47 = vld [vmem:[#allocation52_spill] sm:$0xff]  ;;  %v9204_v45 = vld [vmem:[#allocation55_spill] sm:$0xff] }
 0x268   :  { %4859 = vmatpush1.bf16.msra.mxu1 %v6877_v18  ;;  %4817 = vmatprep.mubr.bf16.mxu1 %v8357_v9  ;;  %v6901_v9 = vcombine.low %v512_v54, %v516_v44  ;;  %v576_v18 = vld [vmem:[#allocation4 + $0x958] sm:$0xff] }
 0x269   :  { %6232 = vmatmul.mubr.bf16.gmra.mrb[84].mxu0 %v8657_v3  ;;  %4860 = vmatprep.subr.bf16.mxu1 %v6886_v38  ;;  %v524_v3 = vld [vmem:[#allocation4 + $0x7b8] sm:$0xff] }
 0x26a   :  { %6241 = vmatprep.mubr.bf16.mxu0 %v8676_v30  ;;  %6283 = vmatpush1.bf16.msra.mxu0 %v7952_v63  ;;  %v7963_v30 = vld [vmem:[#allocation7 + $0x1d4] ss:$8 sps:$4 sm:$0xff]   ;;  %v6910_v6 = vcombine.high %v520_v42, %v524_v3 }
 0x26b   :  { %6284 = vmatprep.subr.bf16.mxu0 %v7957_v5  ;;  %v580_v38 = vld [vmem:[#allocation4 + $0x978] sm:$0xff] }
 0x26c   :  { %4861 = vmatpush1.bf16.msra.mxu1 %v6885_v35  ;;  %v6966_v29 = vcombine.high %v576_v18, %v580_v38  ;;  %v584_v63 = vld [vmem:[#allocation4 + $0x998] sm:$0xff]  ;;  %v9195_v35 = vld [vmem:[#allocation38_spill] sm:$0xff] }
 0x26d   :  { %4862 = vmatprep.subr.bf16.mxu1 %v6894_v13  ;;  %v588_v5 = vld [vmem:[#allocation4 + $0x9b8] sm:$0xff]  ;;  %v6965_v13 = vcombine.low %v576_v18, %v580_v38 }
 0x26e   :  { %6285 = vmatpush1.bf16.msra.mxu0 %v7955_v2  ;;  %v9196_v54 = vld [vmem:[#allocation40_spill] sm:$0xff]  ;;  %v6974_v44 = vcombine.high %v584_v63, %v588_v5 }
 0x26f   :  { %4818 = vmatmul.mubr.bf16.gmra.mrb[88].mxu1 %v8365_v39  ;;  %6286 = vmatprep.subr.bf16.mxu0 %v7960_v60  ;;  %v6909_v39 = vcombine.low %v520_v42, %v524_v3  ;;  %v592_v2 = vld [vmem:[#allocation4 + $0x9d8] sm:$0xff] }
 0x270   :  { %4863 = vmatpush1.bf16.msra.mxu1 %v6893_v57  ;;  %4827 = vmatprep.mubr.bf16.mxu1 %v8369_v51  ;;  %v6917_v51 = vcombine.low %v528_v28, %v532_v15  ;;  %v596_v60 = vld [vmem:[#allocation4 + $0x9f8] sm:$0xff]  ;;  %v6973_v57 = vcombine.low %v584_v63, %v588_v5  ;;  %v9206_v5 = vld [vmem:[#allocation14_spill] sm:$0xff] }
 0x271   :  { %6242 = vmatmul.mubr.bf16.gmra.mrb[88].mxu0 %v8671_v48  ;;  %4864 = vmatprep.subr.bf16.mxu1 %v6902_v24  ;;  %v540_v48 = vld [vmem:[#allocation4 + $0x838] sm:$0xff]  ;;  %v6982_v24 = vcombine.high %v592_v2, %v596_v60 }
 0x272   :  { %6251 = vmatprep.mubr.bf16.mxu0 %v8689_v41  ;;  %6287 = vmatpush1.bf16.msra.mxu0 %v7958_v33  ;;  %v7969_v41 = vld [vmem:[#allocation7 + $0x1f4] ss:$8 sps:$4 sm:$0xff]   ;;  %v6926_v27 = vcombine.high %v536_v17, %v540_v48  ;;  %v6925_v23 = vcombine.low %v536_v17, %v540_v48  ;;  %v9197_v33 = vld [vmem:[#allocation42_spill] sm:$0xff] }
 0x273   :  { %6288 = vmatprep.subr.bf16.mxu0 %v7963_v30  ;;  %v600_v42 = vld [vmem:[#allocation4 + $0xa18] sm:$0xff]  ;;  %v6981_v30 = vcombine.low %v592_v2, %v596_v60  ;;  %v9199_v17 = vld [vmem:[#allocation46_spill] sm:$0xff] }
 0x274   :  { %4865 = vmatpush1.bf16.msra.mxu1 %v6901_v9  ;;  %v604_v3 = vld [vmem:[#allocation4 + $0xa38] sm:$0xff] }
 0x275   :  { %4866 = vmatprep.subr.bf16.mxu1 %v6910_v6  ;;  %v9198_v9 = vld [vmem:[#allocation44_spill] sm:$0xff]  ;;  %v6990_v6 = vcombine.high %v600_v42, %v604_v3 }
 0x276   :  { %6289 = vmatpush1.bf16.msra.mxu0 %v7961_v58  ;;  %v608_v28 = vld [vmem:[#allocation4 + $0xa58] sm:$0xff]  ;;  %v6989_v58 = vcombine.low %v600_v42, %v604_v3 }
 0x277   :  { %4828 = vmatmul.mubr.bf16.gmra.mrb[92].mxu1 %v8377_v19  ;;  %6290 = vmatprep.subr.bf16.mxu0 %v7966_v7  ;;  %v6934_v19 = vcombine.high %v544_v36, %v548_v26  ;;  %v612_v15 = vld [vmem:[#allocation4 + $0xa78] sm:$0xff] }
 0x278   :  { %4867 = vmatpush1.bf16.msra.mxu1 %v6909_v39  ;;  %4870 = vmatprep.mubr.bf16.mxu1 %v8383_v40  ;;  %v9192_v40 = vld [vmem:[#allocation32_spill] sm:$0xff]  ;;  %v6998_v7 = vcombine.high %v608_v28, %v612_v15  ;;  %v6997_v48 = vcombine.low %v608_v28, %v612_v15 }
 0x279   :  { %6252 = vmatmul.mubr.bf16.gmra.mrb[92].mxu0 %v8685_v52  ;;  %4868 = vmatprep.subr.bf16.mxu1 %v6918_v32  ;;  %v6933_v52 = vcombine.low %v544_v36, %v548_v26  ;;  %v616_v39 = vld [vmem:[#allocation4 + $0xa98] sm:$0xff] }
 0x27a   :  { %6291 = vmatpush1.bf16.msra.mxu0 %v7964_v43  ;;  %v620_v32 = vld [vmem:[#allocation4 + $0xab8] sm:$0xff] }
 0x27b   :  { %6292 = vmatprep.subr.bf16.mxu0 %v7969_v41  ;;  %v9200_v43 = vld [vmem:[#allocation48_spill] sm:$0xff]  ;;  %v7006_v41 = vcombine.high %v616_v39, %v620_v32  ;;  %v7005_v36 = vcombine.low %v616_v39, %v620_v32  ;;  %v9210_v32 = vld [vmem:[#allocation18_spill] sm:$0xff] }
 0x27c   :  { %4869 = vmatpush1.bf16.msra.mxu1 %v6917_v51  ;;  %v624_v51 = vld [vmem:[#allocation4 + $0xad8] sm:$0xff] }
 0x27d   :  { %4951 = vmatprep.subr.bf16.mxu1 %v6926_v27  ;;  %v628_v27 = vld [vmem:[#allocation4 + $0xaf8] sm:$0xff] }
 0x27e   :  { %6293 = vmatpush1.bf16.msra.mxu0 %v7967_v34  ;;  %v7014_v26 = vcombine.high %v624_v51, %v628_v27  ;;  %v632_v34 = vld [vmem:[#allocation4 + $0xb18] sm:$0xff] }
 0x27f   :  { %4871 = vmatmul.mubr.bf16.vlgmr.msra.gmra.mrb[64].mxu1 %v8392_v14  ;;  %6375 = vmatprep.subr.bf16.mxu0 %v7972_v21  ;;  %v9194_v14 = vld [vmem:[#allocation36_spill] sm:$0xff] }
 0x280   :  { %4952 = vmatpush1.bf16.msra.mxu1 %v6925_v23  ;;  %4880 = vmatprep.mubr.bf16.mxu1 %v9192_v40  ;;  %v636_v21 = vld [vmem:[#allocation4 + $0xb38] sm:$0xff]  ;;  %v9201_v23 = vld [vmem:[#allocation50_spill] sm:$0xff] }
 0x281   :  { %4953 = vmatprep.subr.bf16.mxu1 %v6934_v19  ;;  %v7013_v19 = vcombine.low %v624_v51, %v628_v27  ;;  %v7022_v56 = vcombine.high %v632_v34, %v636_v21  ;;  %v644_v40 = vld [vmem:[#allocation4 + $0xb78] sm:$0xff] }
 0x282   :  { %v648_v46 = vld [vmem:[#allocation4 + $0xb98] sm:$0xff] }
 0x283   :  { %v664_v38 = vld [vmem:[#allocation4 + $0xc18] sm:$0xff] }
 0x284   :  { %4954 = vmatpush1.bf16.msra.mxu1 %v6933_v52  ;;  %v640_v52 = vld [vmem:[#allocation4 + $0xb58] sm:$0xff] }
 0x285   :  { %4955 = vmatprep.subr.bf16.mxu1 %v6942_v25  ;;  %v7021_v25 = vcombine.low %v632_v34, %v636_v21  ;;  %v7030_v20 = vcombine.high %v640_v52, %v644_v40  ;;  %v7029_v31 = vcombine.low %v640_v52, %v644_v40  ;;  %v680_v60 = vld [vmem:[#allocation4 + $0xc98] sm:$0xff] }
 0x286   :  { %v9208_v3 = vld [vmem:[#allocation16_spill] sm:$0xff] }
 0x287   :  { %4881 = vmatmul.mubr.bf16.gmra.mrb[68].mxu1 %v9193_v4  ;;  %v696_v15 = vld [vmem:[#allocation4 + $0xd18] sm:$0xff] }
 0x288   :  { %4956 = vmatpush1.bf16.msra.mxu1 %v6941_v55  ;;  %4890 = vmatprep.mubr.bf16.mxu1 %v9194_v14  ;;  %v652_v55 = vld [vmem:[#allocation4 + $0xbb8] sm:$0xff] }
 0x289   :  { %4957 = vmatprep.subr.bf16.mxu1 %v6950_v62  ;;  %v9203_v62 = vld [vmem:[#allocation54_spill] sm:$0xff]  ;;  %v7038_v4 = vcombine.high %v648_v46, %v652_v55  ;;  %v660_v14 = vld [vmem:[#allocation4 + $0xbf8] sm:$0xff] }
 0x28c   :  { %4958 = vmatpush1.bf16.msra.mxu1 %v6949_v10  ;;  %v656_v10 = vld [vmem:[#allocation4 + $0xbd8] sm:$0xff] }
 0x28d   :  { %4959 = vmatprep.subr.bf16.mxu1 %v6958_v1  ;;  %v7037_v1 = vcombine.low %v648_v46, %v652_v55  ;;  %v7046_v18 = vcombine.high %v656_v10, %v660_v14  ;;  %v7045_v63 = vcombine.low %v656_v10, %v660_v14  ;;  %v9213_v46 = vld [vmem:[#allocation20_spill] sm:$0xff] }
 0x28f   :  { %4891 = vmatmul.mubr.bf16.gmra.mrb[72].mxu1 %v9195_v35 }
 0x290   :  { %4960 = vmatpush1.bf16.msra.mxu1 %v6957_v49  ;;  %4900 = vmatprep.mubr.bf16.mxu1 %v9196_v54  ;;  %v668_v49 = vld [vmem:[#allocation4 + $0xc38] sm:$0xff] }
 0x291   :  { %4961 = vmatprep.subr.bf16.mxu1 %v6966_v29  ;;  %v9205_v29 = vld [vmem:[#allocation56_spill] sm:$0xff]  ;;  %v7054_v35 = vcombine.high %v664_v38, %v668_v49 }
 0x292   :  { %v676_v54 = vld [vmem:[#allocation4 + $0xc78] sm:$0xff] }
 0x294   :  { %4962 = vmatpush1.bf16.msra.mxu1 %v6965_v13  ;;  %v672_v13 = vld [vmem:[#allocation4 + $0xc58] sm:$0xff] }
 0x295   :  { %4963 = vmatprep.subr.bf16.mxu1 %v6974_v44  ;;  %v7053_v44 = vcombine.low %v664_v38, %v668_v49  ;;  %v7062_v2 = vcombine.high %v672_v13, %v676_v54  ;;  %v7061_v42 = vcombine.low %v672_v13, %v676_v54 }
 0x297   :  { %4901 = vmatmul.mubr.bf16.gmra.mrb[76].mxu1 %v9197_v33 }
 0x298   :  { %4964 = vmatpush1.bf16.msra.mxu1 %v6973_v57  ;;  %4910 = vmatprep.mubr.bf16.mxu1 %v9198_v9  ;;  %v684_v57 = vld [vmem:[#allocation4 + $0xcb8] sm:$0xff] }
 0x299   :  { %4965 = vmatprep.subr.bf16.mxu1 %v6982_v24  ;;  %v9207_v24 = vld [vmem:[#allocation15_spill] sm:$0xff]  ;;  %v7070_v33 = vcombine.high %v680_v60, %v684_v57 }
 0x29a   :  { %v692_v9 = vld [vmem:[#allocation4 + $0xcf8] sm:$0xff] }
 0x29c   :  { %4966 = vmatpush1.bf16.msra.mxu1 %v6981_v30  ;;  %v688_v30 = vld [vmem:[#allocation4 + $0xcd8] sm:$0xff] }
 0x29d   :  { %4967 = vmatprep.subr.bf16.mxu1 %v6990_v6  ;;  %v7069_v6 = vcombine.low %v680_v60, %v684_v57  ;;  %v7078_v28 = vcombine.high %v688_v30, %v692_v9  ;;  %v7077_v39 = vcombine.low %v688_v30, %v692_v9  ;;  %v9214_v9 = vld [vmem:[#allocation21_spill] sm:$0xff] }
 0x29f   :  { %4911 = vmatmul.mubr.bf16.gmra.mrb[80].mxu1 %v9199_v17 }
 0x2a0   :  { %4968 = vmatpush1.bf16.msra.mxu1 %v6989_v58  ;;  %4920 = vmatprep.mubr.bf16.mxu1 %v9200_v43  ;;  %v700_v58 = vld [vmem:[#allocation4 + $0xd38] sm:$0xff] }
 0x2a1   :  { %4969 = vmatprep.subr.bf16.mxu1 %v6998_v7  ;;  %v9209_v7 = vld [vmem:[#allocation17_spill] sm:$0xff]  ;;  %v7086_v17 = vcombine.high %v696_v15, %v700_v58  ;;  %v708_v43 = vld [vmem:[#allocation4 + $0xd78] sm:$0xff]  ;;  %v7085_v27 = vcombine.low %v696_v15, %v700_v58 }
 0x2a4   :  { %4970 = vmatpush1.bf16.msra.mxu1 %v6997_v48  ;;  %v704_v48 = vld [vmem:[#allocation4 + $0xd58] sm:$0xff] }
 0x2a5   :  { %4971 = vmatprep.subr.bf16.mxu1 %v7006_v41  ;;  %v9211_v41 = vld [vmem:[#allocation57_spill] sm:$0xff]  ;;  %v7094_v21 = vcombine.high %v704_v48, %v708_v43 }
 0x2a6   :  { %v789_v51 = vsub.s32 2, %v9211_v41  ;;  %v801_v34 = vsub.s32 5, %v9211_v41 }
 0x2a7   :  { %4921 = vmatmul.mubr.bf16.gmra.mrb[84].mxu1 %v9201_v23  ;;  %v712_v23 = vld [vmem:[#allocation4 + $0xd98] sm:$0xff] }
 0x2a8   :  { %4972 = vmatpush1.bf16.msra.mxu1 %v7005_v36  ;;  %4930 = vmatprep.mubr.bf16.mxu1 %v9202_v47  ;;  %v797_v36 = vsub.s32 4, %v9211_v41  ;;  %v9212_v47 = vld [vmem:[#allocation19_spill] sm:$0xff] }
 0x2a9   :  { %4973 = vmatprep.subr.bf16.mxu1 %v7014_v26  ;;  %v793_v26 = vsub.s32 3, %v9211_v41 }
 0x2ac   :  { %4974 = vmatpush1.bf16.msra.mxu1 %v7013_v19  ;;  %v716_v19 = vld [vmem:[#allocation4 + $0xdb8] sm:$0xff] }
 0x2ad   :  { %4975 = vmatprep.subr.bf16.mxu1 %v7022_v56  ;;  %v8775_v56 = vld [vmem:[#allocation6] sm:$0xff] }
 0x2ae   :  { %v8778_v52 = vrot.slane %v8775_v56, %v789_v51  ;;  %v8781_v40 = vrot.slane %v8775_v56, %v797_v36  ;;  %v8788_v55 = vrot.slane %v8775_v56, %v801_v34  ;;  %v8802_v34 = vld [vmem:[#allocation4 + $0xe58] sm:$0xff] }
 0x2af   :  { %4931 = vmatmul.mubr.bf16.gmra.mrb[88].mxu1 %v9203_v62  ;;  %v7102_v62 = vcombine.high %v712_v23, %v716_v19 }
 0x2b0   :  { %4976 = vmatpush1.bf16.msra.mxu1 %v7021_v25  ;;  %4940 = vmatprep.mubr.bf16.mxu1 %v9204_v45  ;;  %v8784_v25 = vrot.slane %v8775_v56, %v793_v26  ;;  %v720_v45 = vld [vmem:[#allocation4 + $0xdd8] sm:$0xff]  ;;  %v7970_v26 = vld [vmem:[#allocation7 + $0x200] ss:$8 sps:$4 sm:$0xff]  }
 0x2b1   :  { %4977 = vmatprep.subr.bf16.mxu1 %v7030_v20  ;;  %v7093_v20 = vcombine.low %v704_v48, %v708_v43 }
 0x2b4   :  { %4978 = vmatpush1.bf16.msra.mxu1 %v7029_v31 }
 0x2b5   :  { %4979 = vmatprep.subr.bf16.mxu1 %v7038_v4  ;;  %v724_v4 = vld [vmem:[#allocation4 + $0xdf8] sm:$0xff] }
 0x2b7   :  { %4941 = vmatmul.mubr.bf16.gmra.mrb[92].mxu1 %v9205_v29 }
 0x2b8   :  { %4980 = vmatpush1.bf16.msra.mxu1 %v7037_v1  ;;  %4983 = vmatprep.mubr.bf16.mxu1 %v9206_v5 }
 0x2b9   :  { %4981 = vmatprep.subr.bf16.mxu1 %v7046_v18 }
 0x2bc   :  { %4982 = vmatpush1.bf16.msra.mxu1 %v7045_v63  ;;  %v7101_v63 = vcombine.low %v712_v23, %v716_v19 }
 0x2bd   :  { %5064 = vmatprep.subr.bf16.mxu1 %v7054_v35 }
 0x2bf   :  { %4984 = vmatmul.mubr.bf16.vlgmr.msra.gmra.mrb[64].mxu1 %v9207_v24  ;;  %v728_v24 = vld [vmem:[#allocation4 + $0xe18] sm:$0xff] }
 0x2c0   :  { %5065 = vmatpush1.bf16.msra.mxu1 %v7053_v44  ;;  %4993 = vmatprep.mubr.bf16.mxu1 %v9208_v3  ;;  %v7110_v44 = vcombine.high %v720_v45, %v724_v4 }
 0x2c1   :  { %5066 = vmatprep.subr.bf16.mxu1 %v7062_v2 }
 0x2c4   :  { %5067 = vmatpush1.bf16.msra.mxu1 %v7061_v42  ;;  %v732_v42 = vld [vmem:[#allocation4 + $0xe38] sm:$0xff] }
 0x2c5   :  { %5068 = vmatprep.subr.bf16.mxu1 %v7070_v33  ;;  %v7118_v43 = vcombine.high %v728_v24, %v732_v42 }
 0x2c7   :  { %4994 = vmatmul.mubr.bf16.gmra.mrb[68].mxu1 %v9209_v7 }
 0x2c8   :  { %5069 = vmatpush1.bf16.msra.mxu1 %v7069_v6  ;;  %5003 = vmatprep.mubr.bf16.mxu1 %v9210_v32  ;;  %v7109_v6 = vcombine.low %v720_v45, %v724_v4 }
 0x2c9   :  { %5070 = vmatprep.subr.bf16.mxu1 %v7078_v28 }
 0x2cc   :  { %5071 = vmatpush1.bf16.msra.mxu1 %v7077_v39  ;;  %v9215_v39 = vld [vmem:[#allocation22_spill] sm:$0xff] }
 0x2cd   :  { %5072 = vmatprep.subr.bf16.mxu1 %v7086_v17 }
 0x2cf   :  { %5004 = vmatmul.mubr.bf16.gmra.mrb[72].mxu1 %v9212_v47 }
 0x2d0   :  { %5073 = vmatpush1.bf16.msra.mxu1 %v7085_v27  ;;  %5013 = vmatprep.mubr.bf16.mxu1 %v9213_v46  ;;  %v7975_v46 = vld [vmem:[#allocation7 + $0x214] ss:$8 sps:$4 sm:$0xff]  }
 0x2d1   :  { %5074 = vmatprep.subr.bf16.mxu1 %v7094_v21  ;;  %v8804_v21 = vld [vmem:[#allocation4 + $0xe78] sm:$0xff] }
 0x2d2   :  { %v4194_v31 = vpop.f32.mrb[32].mxu1 }
 0x2d3   :  { %v7395_v10 = vadd.f32 %v4194_v31, %v8778_v52  ;;  %v4196_v1 = vpop.f32.mrb[33].mxu1 }
 0x2d4   :  { %v4646_v14 = vpop.f32.mrb[32].mxu0  ;;  %v7396_v38 = vadd.f32 %v4196_v1, %v8784_v25  ;;  %v4198_v29 = vpop.f32.mrb[34].mxu1  ;;  %5075 = vmatpush1.bf16.msra.mxu1 %v7093_v20 }
 0x2d5   :  { %v7427_v18 = vadd.f32 %v4646_v14, %v8781_v40  ;;  %v4648_v49 = vpop.f32.mrb[33].mxu0  ;;  %v7397_v35 = vadd.f32 %v4198_v29, %v8778_v52  ;;  %v4200_v54 = vpop.f32.mrb[35].mxu1  ;;  %5076 = vmatprep.subr.bf16.mxu1 %v7102_v62  ;;  %v5179_v3 = vmax.f32 %v7395_v10, 0.0  ;;  %v7117_v10 = vcombine.low %v728_v24, %v732_v42  ;;  %v7978_v24 = vld [vmem:[#allocation7 + $0x224] ss:$8 sps:$4 sm:$0xff]  }
 0x2d6   :  { %v7428_v5 = vadd.f32 %v4648_v49, %v8788_v55  ;;  %v4650_v13 = vpop.f32.mrb[34].mxu0  ;;  %v7398_v60 = vadd.f32 %v4200_v54, %v8784_v25  ;;  %v5180_v15 = vmax.f32 %v7396_v38, 0.0  ;;  %v7126_v49 = vcombine.high %v8802_v34, %v8804_v21  ;;  %v8819_v54 = vld [vmem:[#allocation4 + $0xeb8] sm:$0xff] }
 0x2d7   :  { %v7429_v2 = vadd.f32 %v4650_v13, %v8781_v40  ;;  %v4652_v57 = vpop.f32.mrb[35].mxu0  ;;  %v5187_v33 = vmax.f32 %v7397_v35, 0.0  ;;  %5014 = vmatmul.mubr.bf16.gmra.mrb[76].mxu1 %v9214_v9  ;;  %v5181_v28 = vmax.f32 %v7427_v18, 0.0  ;;  %v7973_v35 = vld [vmem:[#allocation7 + $0x210] ss:$8 sps:$4 sm:$0xff]   ;;  %v7125_v42 = vcombine.low %v8802_v34, %v8804_v21 }
 0x2d8   :  { %v7430_v30 = vadd.f32 %v4652_v57, %v8788_v55  ;;  %v5188_v7 = vmax.f32 %v7398_v60, 0.0  ;;  %5077 = vmatpush1.bf16.msra.mxu1 %v7101_v63  ;;  %5023 = vmatprep.mubr.bf16.mxu1 %v9215_v39  ;;  %v5182_v32 = vmax.f32 %v7428_v5, 0.0  ;;  %v8817_v13 = vld [vmem:[#allocation4 + $0xe98] sm:$0xff] }
 0x2d9   :  { %v5189_v58 = vmax.f32 %v7429_v2, 0.0  ;;  %v5307_v17 = vpack.c.bf16 %v5187_v33, %v5179_v3  ;;  %5078 = vmatprep.subr.bf16.mxu1 %v7110_v44  ;;  %v9216_v57 = vld [vmem:[#allocation23_spill] sm:$0xff] }
 0x2da   :  { %v5190_v48 = vmax.f32 %v7430_v30, 0.0  ;;  %v5308_v27 = vpack.c.bf16 %v5188_v7, %v5180_v15  ;;  %v4204_v36 = vpop.f32.mrb[36].mxu1  ;;  %v7134_v7 = vcombine.high %v8817_v13, %v8819_v54 }
 0x2db   :  { %v8800_v51 = vpack.c.bf16 %v5189_v58, %v5181_v28  ;;  %v7399_v19 = vadd.f32 %v4204_v36, %v8778_v52  ;;  %v4206_v20 = vpop.f32.mrb[37].mxu1 }
 0x2dc   :  { %v8806_v23 = vpack.c.bf16 %v5190_v48, %v5182_v32  ;;  %v4656_v47 = vpop.f32.mrb[36].mxu0  ;;  %v7400_v31 = vadd.f32 %v4206_v20, %v8784_v25  ;;  %v4208_v4 = vpop.f32.mrb[38].mxu1  ;;  %6294 = vmatprep.mubr.bf16.mxu0 %v5308_v27  ;;  %5079 = vmatpush1.bf16.msra.mxu1 %v7109_v6  ;;  %v9217_v6 = vld [vmem:[#allocation24_spill] sm:$0xff]  ;;  %v7976_v48 = vld [vmem:[#allocation7 + $0x220] ss:$8 sps:$4 sm:$0xff]  }
 0x2dd   :  { %v7431_v62 = vadd.f32 %v4656_v47, %v8781_v40  ;;  %v4658_v45 = vpop.f32.mrb[37].mxu0  ;;  %v7401_v1 = vadd.f32 %v4208_v4, %v8778_v52  ;;  %v4210_v38 = vpop.f32.mrb[39].mxu1  ;;  %6295 = vmatmul.mubr.bf16.vlgmr.msra.gmra.mrb[64].mxu0 %v5307_v17  ;;  %5080 = vmatprep.subr.bf16.mxu1 %v7118_v43  ;;  %v5195_v44 = vmax.f32 %v7399_v19, 0.0  ;;  %v8830_v43 = vld [vmem:[#allocation4 + $0xed8] sm:$0xff] }
 0x2de   :  { %v7432_v14 = vadd.f32 %v4658_v45, %v8788_v55  ;;  %v4660_v18 = vpop.f32.mrb[38].mxu0  ;;  %v7402_v63 = vadd.f32 %v4210_v38, %v8784_v25  ;;  %6376 = vmatpush1.bf16.msra.mxu0 %v7970_v26  ;;  %v5196_v33 = vmax.f32 %v7400_v31, 0.0  ;;  %v8832_v27 = vld [vmem:[#allocation4 + $0xef8] sm:$0xff]  ;;  %v7133_v31 = vcombine.low %v8817_v13, %v8819_v54 }
 0x2df   :  { %v7433_v29 = vadd.f32 %v4660_v18, %v8781_v40  ;;  %v4662_v5 = vpop.f32.mrb[39].mxu0  ;;  %v5203_v2 = vmax.f32 %v7401_v1, 0.0  ;;  %5024 = vmatmul.mubr.bf16.gmra.mrb[80].mxu1 %v9216_v57  ;;  %6377 = vmatprep.subr.bf16.mxu0 %v7975_v46  ;;  %v5197_v3 = vmax.f32 %v7431_v62, 0.0  ;;  %v7981_v19 = vld [vmem:[#allocation7 + $0x234] ss:$8 sps:$4 sm:$0xff]   ;;  %v7142_v1 = vcombine.high %v8830_v43, %v8832_v27 }
 0x2e0   :  { %v7434_v60 = vadd.f32 %v4662_v5, %v8788_v55  ;;  %v5204_v9 = vmax.f32 %v7402_v63, 0.0  ;;  %5081 = vmatpush1.bf16.msra.mxu1 %v7117_v10  ;;  %5033 = vmatprep.mubr.bf16.mxu1 %v9217_v6  ;;  %v5198_v28 = vmax.f32 %v7432_v14, 0.0  ;;  %v8847_v63 = vld [vmem:[#allocation4 + $0xf18] sm:$0xff] }
 0x2e1   :  { %v5205_v30 = vmax.f32 %v7433_v29, 0.0  ;;  %v5315_v15 = vpack.c.bf16 %v5203_v2, %v5195_v44  ;;  %5082 = vmatprep.subr.bf16.mxu1 %v7126_v49  ;;  %v7979_v29 = vld [vmem:[#allocation7 + $0x230] ss:$8 sps:$4 sm:$0xff]   ;;  %v7984_v2 = vld [vmem:[#allocation7 + $0x244] ss:$8 sps:$4 sm:$0xff]  }
 0x2e2   :  { %v5206_v58 = vmax.f32 %v7434_v60, 0.0  ;;  %v5316_v32 = vpack.c.bf16 %v5204_v9, %v5196_v33  ;;  %v4214_v17 = vpop.f32.mrb[40].mxu1  ;;  %6378 = vmatpush1.bf16.msra.mxu0 %v7973_v35  ;;  %v8849_v5 = vld [vmem:[#allocation4 + $0xf38] sm:$0xff]  ;;  %v9218_v44 = vld [vmem:[#allocation25_spill] sm:$0xff]  ;;  %v7141_v60 = vcombine.low %v8830_v43, %v8832_v27  ;;  %v9219_v33 = vld [vmem:[#allocation26_spill] sm:$0xff] }
 0x2e3   :  { %v8828_v39 = vpack.c.bf16 %v5205_v30, %v5197_v3  ;;  %v7403_v26 = vadd.f32 %v4214_v17, %v8778_v52  ;;  %v4216_v21 = vpop.f32.mrb[41].mxu1  ;;  %6379 = vmatprep.subr.bf16.mxu0 %v7978_v24  ;;  %v8860_v17 = vld [vmem:[#allocation4 + $0xf58] sm:$0xff] }
 0x2e4   :  { %v8834_v36 = vpack.c.bf16 %v5206_v58, %v5198_v28  ;;  %v4666_v34 = vpop.f32.mrb[40].mxu0  ;;  %v7404_v20 = vadd.f32 %v4216_v21, %v8784_v25  ;;  %v4218_v62 = vpop.f32.mrb[42].mxu1  ;;  %6304 = vmatprep.mubr.bf16.mxu0 %v5316_v32  ;;  %5083 = vmatpush1.bf16.msra.mxu1 %v7125_v42  ;;  %v7150_v28 = vcombine.high %v8847_v63, %v8849_v5  ;;  %v7982_v32 = vld [vmem:[#allocation7 + $0x240] ss:$8 sps:$4 sm:$0xff]   ;;  %v7987_v21 = vld [vmem:[#allocation7 + $0x254] ss:$8 sps:$4 sm:$0xff]  }
 0x2e5   :  { %v7435_v47 = vadd.f32 %v4666_v34, %v8781_v40  ;;  %v4668_v46 = vpop.f32.mrb[41].mxu0  ;;  %v7405_v4 = vadd.f32 %v4218_v62, %v8778_v52  ;;  %v4220_v14 = vpop.f32.mrb[43].mxu1  ;;  %6305 = vmatmul.mubr.bf16.gmra.mrb[96].mxu0 %v5315_v15  ;;  %5084 = vmatprep.subr.bf16.mxu1 %v7134_v7  ;;  %v5211_v35 = vmax.f32 %v7403_v26, 0.0  ;;  %v7149_v62 = vcombine.low %v8847_v63, %v8849_v5 }
 0x2e6   :  { %v7436_v45 = vadd.f32 %v4668_v46, %v8788_v55  ;;  %v4670_v10 = vpop.f32.mrb[42].mxu0  ;;  %v7406_v38 = vadd.f32 %v4220_v14, %v8784_v25  ;;  %6380 = vmatpush1.bf16.msra.mxu0 %v7976_v48  ;;  %v5212_v24 = vmax.f32 %v7404_v20, 0.0  ;;  %v772_v48 = vld [vmem:[#allocation4 + $0xf78] sm:$0xff] }
 0x2e7   :  { %v7437_v18 = vadd.f32 %v4670_v10, %v8781_v40  ;;  %v4672_v49 = vpop.f32.mrb[43].mxu0  ;;  %v5219_v13 = vmax.f32 %v7405_v4, 0.0  ;;  %5034 = vmatmul.mubr.bf16.gmra.mrb[84].mxu1 %v9218_v44  ;;  %6381 = vmatprep.subr.bf16.mxu0 %v7981_v19  ;;  %v5213_v57 = vmax.f32 %v7435_v47, 0.0  ;;  %v7157_v63 = vcombine.low %v8860_v17, %v772_v48  ;;  %v7990_v44 = vld [vmem:[#allocation7 + $0x264] ss:$8 sps:$4 sm:$0xff]  }
 0x2e8   :  { %v7438_v54 = vadd.f32 %v4672_v49, %v8788_v55  ;;  %v5220_v3 = vmax.f32 %v7406_v38, 0.0  ;;  %5085 = vmatpush1.bf16.msra.mxu1 %v7133_v31  ;;  %5043 = vmatprep.mubr.bf16.mxu1 %v9219_v33  ;;  %v5214_v30 = vmax.f32 %v7436_v45, 0.0  ;;  %v776_v31 = vld [vmem:[#allocation4 + $0xf98] sm:$0xff] }
 0x2e9   :  { %v5221_v42 = vmax.f32 %v7437_v18, 0.0  ;;  %v5323_v9 = vpack.c.bf16 %v5219_v13, %v5211_v35  ;;  %5086 = vmatprep.subr.bf16.mxu1 %v7142_v1  ;;  %v7158_v1 = vcombine.high %v8860_v17, %v772_v48 }
 0x2ea   :  { %v5222_v6 = vmax.f32 %v7438_v54, 0.0  ;;  %v5324_v58 = vpack.c.bf16 %v5220_v3, %v5212_v24  ;;  %v4224_v7 = vpop.f32.mrb[44].mxu1  ;;  %6382 = vmatpush1.bf16.msra.mxu0 %v7979_v29  ;;  %v7985_v29 = vld [vmem:[#allocation7 + $0x250] ss:$8 sps:$4 sm:$0xff]  }
 0x2eb   :  { %v8858_v15 = vpack.c.bf16 %v5221_v42, %v5213_v57  ;;  %v7407_v27 = vadd.f32 %v4224_v7, %v8778_v52  ;;  %v4226_v34 = vpop.f32.mrb[45].mxu1  ;;  %6383 = vmatprep.subr.bf16.mxu0 %v7984_v2  ;;  %v9220_v54 = vld [vmem:[#allocation27_spill] sm:$0xff]  ;;  %v7166_v2 = vcombine.high %v776_v31, %v776_v31  ;;  %v9221_v3 = vld [vmem:[#allocation28_spill] sm:$0xff] }
 0x2ec   :  { %v8862_v43 = vpack.c.bf16 %v5222_v6, %v5214_v30  ;;  %v4676_v26 = vpop.f32.mrb[44].mxu0  ;;  %v7408_v47 = vadd.f32 %v4226_v34, %v8784_v25  ;;  %v4228_v46 = vpop.f32.mrb[46].mxu1  ;;  %6314 = vmatprep.mubr.bf16.mxu0 %v5324_v58  ;;  %5087 = vmatpush1.bf16.msra.mxu1 %v7141_v60  ;;  %v7165_v6 = vcombine.low %v776_v31, %v776_v31  ;;  %v7993_v34 = vld [vmem:[#allocation7 + $0x274] ss:$8 sps:$4 sm:$0xff]  }
 0x2ed   :  { %v7439_v19 = vadd.f32 %v4676_v26, %v8781_v40  ;;  %v4678_v20 = vpop.f32.mrb[45].mxu0  ;;  %v7409_v4 = vadd.f32 %v4228_v46, %v8778_v52  ;;  %v4230_v14 = vpop.f32.mrb[47].mxu1  ;;  %6315 = vmatmul.mubr.bf16.gmra.mrb[100].mxu0 %v5323_v9  ;;  %5088 = vmatprep.subr.bf16.mxu1 %v7150_v28  ;;  %v5227_v5 = vmax.f32 %v7407_v27, 0.0 }
 0x2ee   :  { %v7440_v45 = vadd.f32 %v4678_v20, %v8788_v55  ;;  %v4680_v10 = vpop.f32.mrb[46].mxu0  ;;  %v7410_v38 = vadd.f32 %v4230_v14, %v8784_v25  ;;  %6384 = vmatpush1.bf16.msra.mxu0 %v7982_v32  ;;  %v5228_v57 = vmax.f32 %v7408_v47, 0.0  ;;  %v7988_v32 = vld [vmem:[#allocation7 + $0x260] ss:$8 sps:$4 sm:$0xff]  }
 0x2ef   :  { %v7441_v18 = vadd.f32 %v4680_v10, %v8781_v40  ;;  %v4682_v49 = vpop.f32.mrb[47].mxu0  ;;  %v5235_v35 = vmax.f32 %v7409_v4, 0.0  ;;  %5044 = vmatmul.mubr.bf16.gmra.mrb[88].mxu1 %v9220_v54  ;;  %6385 = vmatprep.subr.bf16.mxu0 %v7987_v21  ;;  %v5229_v60 = vmax.f32 %v7439_v19, 0.0  ;;  %v3364_v4 = vsel %vm3344_vm0, %v7165_v6, 0 }
 0x2f0   :  { %v7442_v13 = vadd.f32 %v4682_v49, %v8788_v55  ;;  %v5236_v42 = vmax.f32 %v7410_v38, 0.0  ;;  %5089 = vmatpush1.bf16.msra.mxu1 %v7149_v62  ;;  %5053 = vmatprep.mubr.bf16.mxu1 %v9221_v3  ;;  %v5230_v33 = vmax.f32 %v7440_v45, 0.0 }
 0x2f1   :  { %v5237_v24 = vmax.f32 %v7441_v18, 0.0  ;;  %v5331_v30 = vpack.c.bf16 %v5235_v35, %v5227_v5  ;;  %5090 = vmatprep.subr.bf16.mxu1 %v7158_v1  ;;  %v7991_v18 = vld [vmem:[#allocation7 + $0x270] ss:$8 sps:$4 sm:$0xff]   ;;  %v7998_v5 = vld [vmem:[#allocation7 + $0x284] ss:$8 sps:$4 sm:$0xff]  }
 0x2f2   :  { %v5238_v9 = vmax.f32 %v7442_v13, 0.0  ;;  %v5332_v58 = vpack.c.bf16 %v5236_v42, %v5228_v57  ;;  %v4234_v7 = vpop.f32.mrb[48].mxu1  ;;  %6386 = vmatpush1.bf16.msra.mxu0 %v7985_v29 }
 0x2f3   :  { %v8878_v28 = vpack.c.bf16 %v5237_v24, %v5229_v60  ;;  %v7411_v48 = vadd.f32 %v4234_v7, %v8778_v52  ;;  %v4236_v26 = vpop.f32.mrb[49].mxu1  ;;  %6387 = vmatprep.subr.bf16.mxu0 %v7990_v44 }
 0x2f4   :  { %v8880_v17 = vpack.c.bf16 %v5238_v9, %v5230_v33  ;;  %v4686_v27 = vpop.f32.mrb[48].mxu0  ;;  %v7412_v19 = vadd.f32 %v4236_v26, %v8784_v25  ;;  %v4238_v20 = vpop.f32.mrb[50].mxu1  ;;  %6324 = vmatprep.mubr.bf16.mxu0 %v5332_v58  ;;  %5091 = vmatpush1.bf16.msra.mxu1 %v7157_v63  ;;  %v9222_v63 = vld [vmem:[#allocation29_spill] sm:$0xff] }
 0x2f5   :  { %v7443_v21 = vadd.f32 %v4686_v27, %v8781_v40  ;;  %v4688_v47 = vpop.f32.mrb[49].mxu0  ;;  %v7413_v62 = vadd.f32 %v4238_v20, %v8778_v52  ;;  %v4240_v45 = vpop.f32.mrb[51].mxu1  ;;  %6325 = vmatmul.mubr.bf16.gmra.mrb[104].mxu0 %v5331_v30  ;;  %7194 = vmatprep.subr.msk.bf16.mxu1 %vm3344_vm0, %v7166_v2  ;;  %v5243_v38 = vmax.f32 %v7411_v48, 0.0  ;;  %v9223_v2 = vld [vmem:[#allocation30_spill] sm:$0xff] }
 0x2f6   :  { %v7444_v46 = vadd.f32 %v4688_v47, %v8788_v55  ;;  %v4690_v31 = vpop.f32.mrb[50].mxu0  ;;  %v7414_v14 = vadd.f32 %v4240_v45, %v8784_v25  ;;  %6388 = vmatpush1.bf16.msra.mxu0 %v7988_v32  ;;  %v5244_v13 = vmax.f32 %v7412_v19, 0.0  ;;  %v7996_v30 = vld [vmem:[#allocation7 + $0x280] ss:$8 sps:$4 sm:$0xff]   ;;  %v8001_v32 = vld [vmem:[#allocation7 + $0x294] ss:$8 sps:$4 sm:$0xff]  }
 0x2f7   :  { %v7445_v10 = vadd.f32 %v4690_v31, %v8781_v40  ;;  %v4692_v1 = vpop.f32.mrb[51].mxu0  ;;  %v5251_v49 = vmax.f32 %v7413_v62, 0.0  ;;  %5054 = vmatmul.mubr.bf16.gmra.mrb[92].mxu1 %v9222_v63  ;;  %6389 = vmatprep.subr.bf16.mxu0 %v7993_v34  ;;  %v5245_v35 = vmax.f32 %v7443_v21, 0.0  ;;  %v7999_v45 = vld [vmem:[#allocation7 + $0x290] ss:$8 sps:$4 sm:$0xff]  }
 0x2f8   :  { %v7446_v29 = vadd.f32 %v4692_v1, %v8788_v55  ;;  %v5252_v44 = vmax.f32 %v7414_v14, 0.0  ;;  %5093 = vmatpush1.bf16.msra.mxu1 %v3364_v4  ;;  %7195 = vmatprep.mubr.msk.bf16.mxu1 %vm3319_vm1, %v9223_v2  ;;  %v5246_v60 = vmax.f32 %v7444_v46, 0.0  ;;  %v9224_v1 = vld [vmem:[#allocation31_spill] sm:$0xff] }
 0x2f9   :  { %v5253_v54 = vmax.f32 %v7445_v10, 0.0  ;;  %v5339_v57 = vpack.c.bf16 %v5251_v49, %v5243_v38 }
 0x2fa   :  { %v5254_v24 = vmax.f32 %v7446_v29, 0.0  ;;  %v5340_v3 = vpack.c.bf16 %v5252_v44, %v5244_v13  ;;  %v4244_v33 = vpop.f32.mrb[52].mxu1  ;;  %6390 = vmatpush1.bf16.msra.mxu0 %v7991_v18  ;;  %v8004_v18 = vld [vmem:[#allocation7 + $0x2a4] ss:$8 sps:$4 sm:$0xff]  }
 0x2fb   :  { %v8895_v42 = vpack.c.bf16 %v5253_v54, %v5245_v35  ;;  %v7415_v6 = vadd.f32 %v4244_v33, %v8778_v52  ;;  %v4246_v7 = vpop.f32.mrb[53].mxu1  ;;  %6391 = vmatprep.subr.bf16.mxu0 %v7998_v5  ;;  %v9225_v5 = vld [vmem:[#allocation33_spill] sm:$0xff] }
 0x2fc   :  { %v8897_v9 = vpack.c.bf16 %v5254_v24, %v5246_v60  ;;  %v4696_v58 = vpop.f32.mrb[52].mxu0  ;;  %v7416_v27 = vadd.f32 %v4246_v7, %v8784_v25  ;;  %v4248_v34 = vpop.f32.mrb[54].mxu1  ;;  %6334 = vmatprep.mubr.bf16.mxu0 %v5340_v3 }
 0x2fd   :  { %v7447_v48 = vadd.f32 %v4696_v58, %v8781_v40  ;;  %v4698_v26 = vpop.f32.mrb[53].mxu0  ;;  %v7417_v19 = vadd.f32 %v4248_v34, %v8778_v52  ;;  %v4250_v20 = vpop.f32.mrb[55].mxu1  ;;  %6335 = vmatmul.mubr.bf16.gmra.mrb[108].mxu0 %v5339_v57  ;;  %v5259_v4 = vmax.f32 %v7415_v6, 0.0  ;;  %v8002_v57 = vld [vmem:[#allocation7 + $0x2a0] ss:$8 sps:$4 sm:$0xff]  }
 0x2fe   :  { %v7448_v21 = vadd.f32 %v4698_v26, %v8788_v55  ;;  %v4700_v47 = vpop.f32.mrb[54].mxu0  ;;  %v7418_v62 = vadd.f32 %v4250_v20, %v8784_v25  ;;  %6392 = vmatpush1.bf16.msra.mxu0 %v7996_v30  ;;  %v5260_v49 = vmax.f32 %v7416_v27, 0.0  ;;  %v8007_v6 = vld [vmem:[#allocation7 + $0x2b4] ss:$8 sps:$4 sm:$0xff]  }
 0x2ff   :  { %v7449_v46 = vadd.f32 %v4700_v47, %v8781_v40  ;;  %v4702_v31 = vpop.f32.mrb[55].mxu0  ;;  %v5267_v10 = vmax.f32 %v7417_v19, 0.0  ;;  %5097 = vmatmul.mubr.bf16.vlgmr.msra.gmra.mrb[64].mxu1 %v9224_v1  ;;  %6393 = vmatprep.subr.bf16.mxu0 %v8001_v32  ;;  %v5261_v38 = vmax.f32 %v7447_v48, 0.0 }
 0x300   :  { %v7450_v14 = vadd.f32 %v4702_v31, %v8788_v55  ;;  %v5268_v63 = vmax.f32 %v7418_v62, 0.0  ;;  %7196 = vmatprep.mubr.msk.bf16.mxu1 %vm3319_vm1, %v9225_v5  ;;  %v5262_v35 = vmax.f32 %v7448_v21, 0.0 }
 0x301   :  { %v5269_v29 = vmax.f32 %v7449_v46, 0.0  ;;  %v5347_v13 = vpack.c.bf16 %v5267_v10, %v5259_v4  ;;  %v8005_v46 = vld [vmem:[#allocation7 + $0x2b0] ss:$8 sps:$4 sm:$0xff]   ;;  %v8010_v10 = vld [vmem:[#allocation7 + $0x2c4] ss:$8 sps:$4 sm:$0xff]  }
 0x302   :  { %v5270_v54 = vmax.f32 %v7450_v14, 0.0  ;;  %v5348_v2 = vpack.c.bf16 %v5268_v63, %v5260_v49  ;;  %v4254_v60 = vpop.f32.mrb[56].mxu1  ;;  %6394 = vmatpush1.bf16.msra.mxu0 %v7999_v45  ;;  %v9226_v4 = vld [vmem:[#allocation35_spill] sm:$0xff]  ;;  %v9227_v49 = vld [vmem:[#allocation37_spill] sm:$0xff] }
 0x303   :  { %v8910_v44 = vpack.c.bf16 %v5269_v29, %v5261_v38  ;;  %v7419_v3 = vadd.f32 %v4254_v60, %v8778_v52  ;;  %v4256_v30 = vpop.f32.mrb[57].mxu1  ;;  %6395 = vmatprep.subr.bf16.mxu0 %v8004_v18 }
 0x304   :  { %v8912_v24 = vpack.c.bf16 %v5270_v54, %v5262_v35  ;;  %v4706_v33 = vpop.f32.mrb[56].mxu0  ;;  %v7420_v7 = vadd.f32 %v4256_v30, %v8784_v25  ;;  %v4258_v48 = vpop.f32.mrb[58].mxu1  ;;  %6344 = vmatprep.mubr.bf16.mxu0 %v5348_v2  ;;  %v8008_v2 = vld [vmem:[#allocation7 + $0x2c0] ss:$8 sps:$4 sm:$0xff]   ;;  %v8013_v30 = vld [vmem:[#allocation7 + $0x2d4] ss:$8 sps:$4 sm:$0xff]  }
 0x305   :  { %v7451_v58 = vadd.f32 %v4706_v33, %v8781_v40  ;;  %v4708_v32 = vpop.f32.mrb[57].mxu0  ;;  %v7421_v26 = vadd.f32 %v4258_v48, %v8778_v52  ;;  %v4260_v21 = vpop.f32.mrb[59].mxu1  ;;  %6345 = vmatmul.mubr.bf16.gmra.mrb[112].mxu0 %v5347_v13  ;;  %v5275_v62 = vmax.f32 %v7419_v3, 0.0 }
 0x306   :  { %v7452_v27 = vadd.f32 %v4708_v32, %v8788_v55  ;;  %v4710_v34 = vpop.f32.mrb[58].mxu0  ;;  %v7422_v47 = vadd.f32 %v4260_v21, %v8784_v25  ;;  %6396 = vmatpush1.bf16.msra.mxu0 %v8002_v57  ;;  %v5276_v1 = vmax.f32 %v7420_v7, 0.0 }
 0x307   :  { %v7453_v19 = vadd.f32 %v4710_v34, %v8781_v40  ;;  %v4712_v20 = vpop.f32.mrb[59].mxu0  ;;  %v5283_v31 = vmax.f32 %v7421_v26, 0.0  ;;  %5107 = vmatmul.mubr.bf16.gmra.mrb[68].mxu1 %v9226_v4  ;;  %6397 = vmatprep.subr.bf16.mxu0 %v8007_v6  ;;  %v5277_v14 = vmax.f32 %v7451_v58, 0.0 }
 0x308   :  { %v7454_v45 = vadd.f32 %v4712_v20, %v8788_v55  ;;  %v5284_v38 = vmax.f32 %v7422_v47, 0.0  ;;  %7197 = vmatprep.mubr.msk.bf16.mxu1 %vm3319_vm1, %v9227_v49  ;;  %v5278_v29 = vmax.f32 %v7452_v27, 0.0  ;;  %v8011_v20 = vld [vmem:[#allocation7 + $0x2d0] ss:$8 sps:$4 sm:$0xff]   ;;  %v8014_v49 = vld [vmem:[#allocation7 + $0x2e0] ss:$8 sps:$4 sm:$0xff]  }
 0x309   :  { %v5285_v18 = vmax.f32 %v7453_v19, 0.0  ;;  %v5355_v63 = vpack.c.bf16 %v5283_v31, %v5275_v62 }
 0x30a   :  { %v5286_v5 = vmax.f32 %v7454_v45, 0.0  ;;  %v5356_v13 = vpack.c.bf16 %v5284_v38, %v5276_v1  ;;  %v4264_v54 = vpop.f32.mrb[60].mxu1  ;;  %6398 = vmatpush1.bf16.msra.mxu0 %v8005_v46  ;;  %v8016_v45 = vld [vmem:[#allocation7 + $0x2e4] ss:$8 sps:$4 sm:$0xff]  }
 0x30b   :  { %v8925_v35 = vpack.c.bf16 %v5285_v18, %v5277_v14  ;;  %v7423_v57 = vadd.f32 %v4264_v54, %v8778_v52  ;;  %v4266_v33 = vpop.f32.mrb[61].mxu1  ;;  %6399 = vmatprep.subr.bf16.mxu0 %v8010_v10 }
 0x30c   :  { %v8927_v60 = vpack.c.bf16 %v5286_v5, %v5278_v29  ;;  %v4716_v3 = vpop.f32.mrb[60].mxu0  ;;  %v7424_v58 = vadd.f32 %v4266_v33, %v8784_v25  ;;  %v4268_v32 = vpop.f32.mrb[62].mxu1  ;;  %6354 = vmatprep.mubr.bf16.mxu0 %v5356_v13  ;;  %v8017_v29 = vld [vmem:[#allocation7 + $0x2f0] ss:$8 sps:$4 sm:$0xff]   ;;  %v8025_v13 = vld [vmem:[#allocation7 + $0x314] ss:$8 sps:$4 sm:$0xff]  }
 0x30d   :  { %v7455_v6 = vadd.f32 %v4716_v3, %v8781_v40  ;;  %v4718_v7 = vpop.f32.mrb[61].mxu0  ;;  %v7425_v27 = vadd.f32 %v4268_v32, %v8778_v52  ;;  %v4270_v34 = vpop.f32.mrb[63].mxu1  ;;  %6355 = vmatmul.mubr.bf16.gmra.mrb[116].mxu0 %v5355_v63  ;;  %v5291_v46 = vmax.f32 %v7423_v57, 0.0  ;;  %v8020_v63 = vld [vmem:[#allocation7 + $0x300] ss:$8 sps:$4 sm:$0xff]  }
 0x30e   :  { %v7456_v48 = vadd.f32 %v4718_v7, %v8788_v55  ;;  %v4720_v26 = vpop.f32.mrb[62].mxu0  ;;  %v7426_v19 = vadd.f32 %v4270_v34, %v8784_v25  ;;  %6400 = vmatpush1.bf16.msra.mxu0 %v8008_v2  ;;  %v5292_v52 = vmax.f32 %v7424_v58, 0.0  ;;  %v8031_v33 = vld [vmem:[#allocation7 + $0x334] ss:$8 sps:$4 sm:$0xff]  }
 0x30f   :  { %v7457_v21 = vadd.f32 %v4720_v26, %v8781_v40  ;;  %v4722_v47 = vpop.f32.mrb[63].mxu0  ;;  %v5299_v62 = vmax.f32 %v7425_v27, 0.0  ;;  %5117 = vmatmul.mubr.bf16.gmra.mrb[72].mxu1 %v9184_v37  ;;  %6401 = vmatprep.subr.bf16.mxu0 %v8013_v30  ;;  %v5293_v4 = vmax.f32 %v7455_v6, 0.0  ;;  %v8019_v37 = vld [vmem:[#allocation7 + $0x2f4] ss:$8 sps:$4 sm:$0xff]  }
 0x310   :  { %v7458_v31 = vadd.f32 %v4722_v47, %v8788_v55  ;;  %v5300_v14 = vmax.f32 %v7426_v19, 0.0  ;;  %7198 = vmatprep.mubr.msk.bf16.mxu1 %vm3319_vm1, %v9185_v8  ;;  %v5294_v40 = vmax.f32 %v7456_v48, 0.0  ;;  %v8022_v8 = vld [vmem:[#allocation7 + $0x304] ss:$8 sps:$4 sm:$0xff]   ;;  %v8037_v7 = vld [vmem:[#allocation7 + $0x354] ss:$8 sps:$4 sm:$0xff]  }
 0x311   :  { %v5301_v10 = vmax.f32 %v7457_v21, 0.0  ;;  %v5363_v25 = vpack.c.bf16 %v5299_v62, %v5291_v46  ;;  %v8046_v19 = vld [vmem:[#allocation7 + $0x384] ss:$8 sps:$4 sm:$0xff]   ;;  %v8050_v62 = vld [vmem:[#allocation7 + $0x3a0] ss:$8 sps:$4 sm:$0xff]  }
 0x312   :  { %v5302_v1 = vmax.f32 %v7458_v31, 0.0  ;;  %v5364_v38 = vpack.c.bf16 %v5300_v14, %v5292_v52  ;;  %6402 = vmatpush1.bf16.msra.mxu0 %v8011_v20  ;;  %v8052_v31 = vld [vmem:[#allocation7 + $0x3a4] ss:$8 sps:$4 sm:$0xff]   ;;  %v8056_v14 = vld [vmem:[#allocation7 + $0x3c0] ss:$8 sps:$4 sm:$0xff]  }
 0x313   :  { %v8940_v18 = vpack.c.bf16 %v5301_v10, %v5293_v4  ;;  %6403 = vmatprep.subr.bf16.mxu0 %v8016_v45  ;;  %v8053_v10 = vld [vmem:[#allocation7 + $0x3b0] ss:$8 sps:$4 sm:$0xff]  }
 0x314   :  { %v8942_v55 = vpack.c.bf16 %v5302_v1, %v5294_v40  ;;  %6364 = vmatprep.mubr.bf16.mxu0 %v5364_v38  ;;  %v8058_v40 = vld [vmem:[#allocation7 + $0x3c4] ss:$8 sps:$4 sm:$0xff]  }
 0x315   :  { %6365 = vmatmul.mubr.bf16.gmra.mrb[120].mxu0 %v5363_v25 }
 0x316   :  { %6404 = vmatpush1.bf16.msra.mxu0 %v8014_v49  ;;  %6407 = vmatprep.mubr.bf16.mxu0 %v8806_v23  ;;  %v8023_v23 = vld [vmem:[#allocation7 + $0x310] ss:$8 sps:$4 sm:$0xff]  }
 0x317   :  { %5127 = vmatmul.mubr.bf16.gmra.mrb[76].mxu1 %v9186_v0  ;;  %6405 = vmatprep.subr.bf16.mxu0 %v8019_v37  ;;  %v8028_v0 = vld [vmem:[#allocation7 + $0x324] ss:$8 sps:$4 sm:$0xff]   ;;  %v8059_v49 = vld [vmem:[#allocation7 + $0x3d0] ss:$8 sps:$4 sm:$0xff]   ;;  %v8062_v37 = vld [vmem:[#allocation7 + $0x3e0] ss:$8 sps:$4 sm:$0xff]  }
 0x318   :  { %7199 = vmatprep.mubr.msk.bf16.mxu1 %vm3319_vm1, %v9187_v59  ;;  %v8026_v59 = vld [vmem:[#allocation7 + $0x320] ss:$8 sps:$4 sm:$0xff]  }
 0x31a   :  { %6406 = vmatpush1.bf16.msra.mxu0 %v8017_v29  ;;  %v8067_v29 = vld [vmem:[#allocation7 + $0x3f4] ss:$8 sps:$4 sm:$0xff]  }
 0x31b   :  { %6488 = vmatprep.subr.bf16.mxu0 %v8022_v8  ;;  %v8065_v8 = vld [vmem:[#allocation7 + $0x3f0] ss:$8 sps:$4 sm:$0xff]  }
 0x31c   :  { %v6193_v5 = vpop.f32.mrb[68].mxu0 }
 0x31d   :  { %v6195_v54 = vpop.f32.mrb[69].mxu0  ;;  %6408 = vmatmul.mubr.bf16.vlgmr.msra.gmra.mrb[64].mxu0 %v8800_v51 }
 0x31e   :  { %v6197_v2 = vpop.f32.mrb[70].mxu0  ;;  %6417 = vmatprep.mubr.bf16.mxu0 %v8834_v36  ;;  %6489 = vmatpush1.bf16.msra.mxu0 %v8020_v63  ;;  %v8029_v36 = vld [vmem:[#allocation7 + $0x330] ss:$8 sps:$4 sm:$0xff]  }
 0x31f   :  { %v6199_v57 = vpop.f32.mrb[71].mxu0  ;;  %5137 = vmatmul.mubr.bf16.gmra.mrb[80].mxu1 %v9188_v50  ;;  %6490 = vmatprep.subr.bf16.mxu0 %v8025_v13  ;;  %v8034_v50 = vld [vmem:[#allocation7 + $0x344] ss:$8 sps:$4 sm:$0xff]  }
 0x320   :  { %7200 = vmatprep.mubr.msk.bf16.mxu1 %vm3319_vm1, %v9189_v12  ;;  %v8032_v12 = vld [vmem:[#allocation7 + $0x340] ss:$8 sps:$4 sm:$0xff]  }
 0x322   :  { %6491 = vmatpush1.bf16.msra.mxu0 %v8023_v23 }
 0x323   :  { %6492 = vmatprep.subr.bf16.mxu0 %v8028_v0 }
 0x324   :  { %v6203_v3 = vpop.f32.mrb[72].mxu0 }
 0x325   :  { %v6205_v30 = vpop.f32.mrb[73].mxu0  ;;  %6418 = vmatmul.mubr.bf16.gmra.mrb[124].mxu0 %v8828_v39 }
 0x326   :  { %v6207_v6 = vpop.f32.mrb[74].mxu0  ;;  %6427 = vmatprep.mubr.bf16.mxu0 %v8862_v43  ;;  %6493 = vmatpush1.bf16.msra.mxu0 %v8026_v59  ;;  %v8035_v43 = vld [vmem:[#allocation7 + $0x350] ss:$8 sps:$4 sm:$0xff]  }
 0x327   :  { %v6209_v51 = vpop.f32.mrb[75].mxu0  ;;  %5147 = vmatmul.mubr.bf16.gmra.mrb[84].mxu1 %v9190_v22  ;;  %6494 = vmatprep.subr.bf16.mxu0 %v8031_v33  ;;  %v8040_v22 = vld [vmem:[#allocation7 + $0x364] ss:$8 sps:$4 sm:$0xff]   ;;  %v809_v33 = vsub.s32 7, %v9211_v41 }
 0x328   :  { %7201 = vmatprep.mubr.msk.bf16.mxu1 %vm3319_vm1, %v9191_v53  ;;  %v8038_v53 = vld [vmem:[#allocation7 + $0x360] ss:$8 sps:$4 sm:$0xff]   ;;  %v8069_v51 = vld [vmem:[#allocation6] sm:$0xff] }
 0x32a   :  { %6495 = vmatpush1.bf16.msra.mxu0 %v8029_v36  ;;  %v8978_v36 = vrot.slane %v8069_v51, %v809_v33 }
 0x32b   :  { %6496 = vmatprep.subr.bf16.mxu0 %v8034_v50 }
 0x32c   :  { %v6213_v58 = vpop.f32.mrb[76].mxu0 }
 0x32d   :  { %v6215_v32 = vpop.f32.mrb[77].mxu0  ;;  %6428 = vmatmul.mubr.bf16.gmra.mrb[128].mxu0 %v8858_v15 }
 0x32e   :  { %v6217_v48 = vpop.f32.mrb[78].mxu0  ;;  %6437 = vmatprep.mubr.bf16.mxu0 %v8880_v17  ;;  %6497 = vmatpush1.bf16.msra.mxu0 %v8032_v12  ;;  %v8041_v17 = vld [vmem:[#allocation7 + $0x370] ss:$8 sps:$4 sm:$0xff]  }
 0x32f   :  { %v6219_v39 = vpop.f32.mrb[79].mxu0  ;;  %5157 = vmatmul.mubr.bf16.gmra.mrb[88].mxu1 %v8472_v11  ;;  %6498 = vmatprep.subr.bf16.mxu0 %v8037_v7  ;;  %v8043_v11 = vld [vmem:[#allocation7 + $0x374] ss:$8 sps:$4 sm:$0xff]  }
 0x330   :  { %7202 = vmatprep.mubr.msk.bf16.mxu1 %vm3319_vm1, %v8477_v61  ;;  %v8044_v61 = vld [vmem:[#allocation7 + $0x380] ss:$8 sps:$4 sm:$0xff]  }
 0x332   :  { %6499 = vmatpush1.bf16.msra.mxu0 %v8035_v43 }
 0x333   :  { %6500 = vmatprep.subr.bf16.mxu0 %v8040_v22 }
 0x334   :  { %v6223_v27 = vpop.f32.mrb[80].mxu0 }
 0x335   :  { %v6225_v26 = vpop.f32.mrb[81].mxu0  ;;  %6438 = vmatmul.mubr.bf16.gmra.mrb[132].mxu0 %v8878_v28  ;;  %v8049_v28 = vld [vmem:[#allocation7 + $0x394] ss:$8 sps:$4 sm:$0xff]  }
 0x336   :  { %v6227_v34 = vpop.f32.mrb[82].mxu0  ;;  %6447 = vmatprep.mubr.bf16.mxu0 %v8897_v9  ;;  %6501 = vmatpush1.bf16.msra.mxu0 %v8038_v53  ;;  %v8047_v9 = vld [vmem:[#allocation7 + $0x390] ss:$8 sps:$4 sm:$0xff]  }
 0x337   :  { %v6229_v15 = vpop.f32.mrb[83].mxu0  ;;  %5167 = vmatmul.mubr.bf16.gmra.mrb[92].mxu1 %v8485_v16  ;;  %6502 = vmatprep.subr.bf16.mxu0 %v8043_v11 }
 0x33a   :  { %6503 = vmatpush1.bf16.msra.mxu0 %v8041_v17 }
 0x33b   :  { %6504 = vmatprep.subr.bf16.mxu0 %v8046_v19 }
 0x33c   :  { %v6233_v21 = vpop.f32.mrb[84].mxu0 }
 0x33d   :  { %v6235_v47 = vpop.f32.mrb[85].mxu0  ;;  %6448 = vmatmul.mubr.bf16.gmra.mrb[136].mxu0 %v8895_v42  ;;  %v8055_v42 = vld [vmem:[#allocation7 + $0x3b4] ss:$8 sps:$4 sm:$0xff]  }
 0x33e   :  { %v6237_v20 = vpop.f32.mrb[86].mxu0  ;;  %6457 = vmatprep.mubr.bf16.mxu0 %v8912_v24  ;;  %6505 = vmatpush1.bf16.msra.mxu0 %v8044_v61 }
 0x33f   :  { %v6239_v46 = vpop.f32.mrb[87].mxu0  ;;  %6506 = vmatprep.subr.bf16.mxu0 %v8049_v28 }
 0x342   :  { %6507 = vmatpush1.bf16.msra.mxu0 %v8047_v9 }
 0x343   :  { %6508 = vmatprep.subr.bf16.mxu0 %v8052_v31 }
 0x344   :  { %v6243_v16 = vpop.f32.mrb[88].mxu0 }
 0x345   :  { %v6245_v45 = vpop.f32.mrb[89].mxu0  ;;  %6458 = vmatmul.mubr.bf16.gmra.mrb[140].mxu0 %v8910_v44  ;;  %v8061_v44 = vld [vmem:[#allocation7 + $0x3d4] ss:$8 sps:$4 sm:$0xff]  }
 0x346   :  { %v6247_v4 = vpop.f32.mrb[90].mxu0  ;;  %6467 = vmatprep.mubr.bf16.mxu0 %v8927_v60  ;;  %6509 = vmatpush1.bf16.msra.mxu0 %v8050_v62  ;;  %v8064_v60 = vld [vmem:[#allocation7 + $0x3e4] ss:$8 sps:$4 sm:$0xff]  }
 0x347   :  { %v6249_v52 = vpop.f32.mrb[91].mxu0  ;;  %6510 = vmatprep.subr.bf16.mxu0 %v8055_v42 }
 0x34a   :  { %6511 = vmatpush1.bf16.msra.mxu0 %v8053_v10 }
 0x34b   :  { %6512 = vmatprep.subr.bf16.mxu0 %v8058_v40 }
 0x34c   :  { %v6253_v24 = vpop.f32.mrb[92].mxu0 }
 0x34d   :  { %v6255_v25 = vpop.f32.mrb[93].mxu0  ;;  %6468 = vmatmul.mubr.bf16.gmra.mrb[144].mxu0 %v8925_v35 }
 0x34e   :  { %v6257_v1 = vpop.f32.mrb[94].mxu0  ;;  %6477 = vmatprep.mubr.bf16.mxu0 %v8942_v55  ;;  %6513 = vmatpush1.bf16.msra.mxu0 %v8056_v14 }
 0x34f   :  { %v6259_v38 = vpop.f32.mrb[95].mxu0  ;;  %6514 = vmatprep.subr.bf16.mxu0 %v8061_v44 }
 0x352   :  { %6515 = vmatpush1.bf16.msra.mxu0 %v8059_v49 }
 0x353   :  { %6516 = vmatprep.subr.bf16.mxu0 %v8064_v60 }
 0x355   :  { %6478 = vmatmul.mubr.bf16.gmra.mrb[148].mxu0 %v8940_v18  ;;  %v805_v18 = vsub.s32 6, %v9211_v41 }
 0x356   :  { %6517 = vmatpush1.bf16.msra.mxu0 %v8062_v37 }
 0x357   :  { %6518 = vmatprep.subr.bf16.mxu0 %v8067_v29  ;;  %v8976_v30 = vrot.slane %v8775_v56, %v805_v18 }
 0x35a   :  { %6519 = vmatpush1.bf16.msra.mxu0 %v8065_v8 }
 0x3b8   :  { %v6306_v35 = vpop.f32.mrb[96].mxu0 }
 0x3b9   :  { %v6308_v63 = vpop.f32.mrb[97].mxu0 }
 0x3ba   :  { %v6310_v5 = vpop.f32.mrb[98].mxu0 }
 0x3bb   :  { %v6312_v13 = vpop.f32.mrb[99].mxu0 }
 0x3c0   :  { %v6316_v55 = vpop.f32.mrb[100].mxu0 }
 0x3c1   :  { %v6318_v54 = vpop.f32.mrb[101].mxu0 }
 0x3c2   :  { %v6320_v2 = vpop.f32.mrb[102].mxu0 }
 0x3c3   :  { %v6322_v57 = vpop.f32.mrb[103].mxu0 }
 0x3c8   :  { %v6326_v23 = vpop.f32.mrb[104].mxu0 }
 0x3c9   :  { %v6328_v0 = vpop.f32.mrb[105].mxu0 }
 0x3ca   :  { %v6330_v59 = vpop.f32.mrb[106].mxu0 }
 0x3cb   :  { %v6332_v3 = vpop.f32.mrb[107].mxu0 }
 0x3d0   :  { %v6336_v6 = vpop.f32.mrb[108].mxu0 }
 0x3d1   :  { %v6338_v50 = vpop.f32.mrb[109].mxu0 }
 0x3d2   :  { %v5098_v12 = vpop.f32.mrb[64].mxu1  ;;  %v6340_v58 = vpop.f32.mrb[110].mxu0 }
 0x3d3   :  { %v7459_v7 = vadd.f32 %v5098_v12, %v8976_v30  ;;  %v5100_v32 = vpop.f32.mrb[65].mxu1  ;;  %v6342_v48 = vpop.f32.mrb[111].mxu0 }
 0x3d4   :  { %v7460_v39 = vadd.f32 %v5100_v32, %v8978_v36  ;;  %v5102_v43 = vpop.f32.mrb[66].mxu1 }
 0x3d5   :  { %v7461_v22 = vadd.f32 %v5102_v43, %v8976_v30  ;;  %v5104_v53 = vpop.f32.mrb[67].mxu1  ;;  %v5183_v27 = vmax.f32 %v7459_v7, 0.0 }
 0x3d6   :  { %v7462_v56 = vadd.f32 %v5104_v53, %v8978_v36  ;;  %v5184_v34 = vmax.f32 %v7460_v39, 0.0 }
 0x3d7   :  { %v5191_v26 = vmax.f32 %v7461_v22, 0.0 }
 0x3d8   :  { %v5192_v15 = vmax.f32 %v7462_v56, 0.0  ;;  %v6346_v11 = vpop.f32.mrb[112].mxu0 }
 0x3d9   :  { %v5311_v17 = vpack.c.bf16 %v5191_v26, %v5183_v27  ;;  %v6348_v21 = vpop.f32.mrb[113].mxu0 }
 0x3da   :  { %v5312_v61 = vpack.c.bf16 %v5192_v15, %v5184_v34  ;;  %v5108_v19 = vpop.f32.mrb[68].mxu1  ;;  %v6350_v47 = vpop.f32.mrb[114].mxu0 }
 0x3db   :  { %v7463_v20 = vadd.f32 %v5108_v19, %v8976_v30  ;;  %v5110_v46 = vpop.f32.mrb[69].mxu1  ;;  %v6352_v28 = vpop.f32.mrb[115].mxu0 }
 0x3dc   :  { %v7464_v9 = vadd.f32 %v5110_v46, %v8978_v36  ;;  %v5112_v16 = vpop.f32.mrb[70].mxu1  ;;  %6520 = vmatprep.mubr.bf16.mxu0 %v5312_v61 }
 0x3dd   :  { %v7465_v62 = vadd.f32 %v5112_v16, %v8976_v30  ;;  %v5114_v31 = vpop.f32.mrb[71].mxu1  ;;  %6521 = vmatmul.mubr.bf16.vlgmr.msra.gmra.mrb[64].mxu0 %v5311_v17  ;;  %v5199_v4 = vmax.f32 %v7463_v20, 0.0 }
 0x3de   :  { %v7466_v45 = vadd.f32 %v5114_v31, %v8978_v36  ;;  %v5200_v42 = vmax.f32 %v7464_v9, 0.0 }
 0x3df   :  { %v5207_v52 = vmax.f32 %v7465_v62, 0.0 }
 0x3e0   :  { %v5208_v10 = vmax.f32 %v7466_v45, 0.0  ;;  %v6356_v24 = vpop.f32.mrb[116].mxu0 }
 0x3e1   :  { %v5319_v14 = vpack.c.bf16 %v5207_v52, %v5199_v4  ;;  %v6358_v40 = vpop.f32.mrb[117].mxu0 }
 0x3e2   :  { %v5320_v25 = vpack.c.bf16 %v5208_v10, %v5200_v42  ;;  %v5118_v1 = vpop.f32.mrb[72].mxu1  ;;  %v6360_v38 = vpop.f32.mrb[118].mxu0 }
 0x3e3   :  { %v7467_v44 = vadd.f32 %v5118_v1, %v8976_v30  ;;  %v5120_v49 = vpop.f32.mrb[73].mxu1  ;;  %v6362_v60 = vpop.f32.mrb[119].mxu0 }
 0x3e4   :  { %v7468_v37 = vadd.f32 %v5120_v49, %v8978_v36  ;;  %v5122_v29 = vpop.f32.mrb[74].mxu1  ;;  %6530 = vmatprep.mubr.bf16.mxu0 %v5320_v25 }
 0x3e5   :  { %v7469_v8 = vadd.f32 %v5122_v29, %v8976_v30  ;;  %v5124_v35 = vpop.f32.mrb[75].mxu1  ;;  %6531 = vmatmul.mubr.bf16.gmra.mrb[152].mxu0 %v5319_v14  ;;  %v5215_v5 = vmax.f32 %v7467_v44, 0.0 }
 0x3e6   :  { %v7470_v63 = vadd.f32 %v5124_v35, %v8978_v36  ;;  %v5216_v55 = vmax.f32 %v7468_v37, 0.0 }
 0x3e7   :  { %v5223_v13 = vmax.f32 %v7469_v8, 0.0 }
 0x3e8   :  { %v5224_v54 = vmax.f32 %v7470_v63, 0.0  ;;  %v6366_v2 = vpop.f32.mrb[120].mxu0 }
 0x3e9   :  { %v5327_v57 = vpack.c.bf16 %v5223_v13, %v5215_v5  ;;  %v6368_v23 = vpop.f32.mrb[121].mxu0 }
 0x3ea   :  { %v5328_v0 = vpack.c.bf16 %v5224_v54, %v5216_v55  ;;  %v5128_v59 = vpop.f32.mrb[76].mxu1  ;;  %v6370_v3 = vpop.f32.mrb[122].mxu0 }
 0x3eb   :  { %v7471_v18 = vadd.f32 %v5128_v59, %v8976_v30  ;;  %v5130_v33 = vpop.f32.mrb[77].mxu1  ;;  %v6372_v6 = vpop.f32.mrb[123].mxu0 }
 0x3ec   :  { %v7472_v51 = vadd.f32 %v5130_v33, %v8978_v36  ;;  %v5132_v50 = vpop.f32.mrb[78].mxu1  ;;  %6540 = vmatprep.mubr.bf16.mxu0 %v5328_v0 }
 0x3ed   :  { %v7473_v12 = vadd.f32 %v5132_v50, %v8976_v30  ;;  %v5134_v58 = vpop.f32.mrb[79].mxu1  ;;  %6541 = vmatmul.mubr.bf16.gmra.mrb[156].mxu0 %v5327_v57  ;;  %v5231_v32 = vmax.f32 %v7471_v18, 0.0 }
 0x3ee   :  { %v7474_v7 = vadd.f32 %v5134_v58, %v8978_v36  ;;  %v5232_v39 = vmax.f32 %v7472_v51, 0.0 }
 0x3ef   :  { %v5239_v48 = vmax.f32 %v7473_v12, 0.0 }
 0x3f0   :  { %v5240_v43 = vmax.f32 %v7474_v7, 0.0 }
 0x3f1   :  { %v5335_v22 = vpack.c.bf16 %v5239_v48, %v5231_v32 }
 0x3f2   :  { %v5336_v53 = vpack.c.bf16 %v5240_v43, %v5232_v39  ;;  %v5138_v56 = vpop.f32.mrb[80].mxu1 }
 0x3f3   :  { %v7475_v27 = vadd.f32 %v5138_v56, %v8976_v30  ;;  %v5140_v26 = vpop.f32.mrb[81].mxu1 }
 0x3f4   :  { %v7476_v34 = vadd.f32 %v5140_v26, %v8978_v36  ;;  %v5142_v15 = vpop.f32.mrb[82].mxu1  ;;  %6550 = vmatprep.mubr.bf16.mxu0 %v5336_v53 }
 0x3f5   :  { %v7477_v11 = vadd.f32 %v5142_v15, %v8976_v30  ;;  %v5144_v17 = vpop.f32.mrb[83].mxu1  ;;  %6551 = vmatmul.mubr.bf16.gmra.mrb[160].mxu0 %v5335_v22  ;;  %v5247_v61 = vmax.f32 %v7475_v27, 0.0 }
 0x3f6   :  { %v7478_v21 = vadd.f32 %v5144_v17, %v8978_v36  ;;  %v5248_v47 = vmax.f32 %v7476_v34, 0.0 }
 0x3f7   :  { %v5255_v19 = vmax.f32 %v7477_v11, 0.0 }
 0x3f8   :  { %v5256_v20 = vmax.f32 %v7478_v21, 0.0  ;;  %v6419_v46 = vpop.f32.mrb[124].mxu0 }
 0x3f9   :  { %v5343_v28 = vpack.c.bf16 %v5255_v19, %v5247_v61  ;;  %v6421_v9 = vpop.f32.mrb[125].mxu0 }
 0x3fa   :  { %v5344_v16 = vpack.c.bf16 %v5256_v20, %v5248_v47  ;;  %v5148_v62 = vpop.f32.mrb[84].mxu1  ;;  %v6423_v31 = vpop.f32.mrb[126].mxu0 }
 0x3fb   :  { %v7479_v45 = vadd.f32 %v5148_v62, %v8976_v30  ;;  %v5150_v4 = vpop.f32.mrb[85].mxu1  ;;  %v6425_v52 = vpop.f32.mrb[127].mxu0 }
 0x3fc   :  { %v7480_v42 = vadd.f32 %v5150_v4, %v8978_v36  ;;  %v5152_v10 = vpop.f32.mrb[86].mxu1  ;;  %6560 = vmatprep.mubr.bf16.mxu0 %v5344_v16 }
 0x3fd   :  { %v7481_v24 = vadd.f32 %v5152_v10, %v8976_v30  ;;  %v5154_v14 = vpop.f32.mrb[87].mxu1  ;;  %6561 = vmatmul.mubr.bf16.gmra.mrb[164].mxu0 %v5343_v28  ;;  %v5263_v25 = vmax.f32 %v7479_v45, 0.0  ;;  %v9228_v10 = vsub.s32 0, %v9211_v41 }
 0x3fe   :  { %v7482_v40 = vadd.f32 %v5154_v14, %v8978_v36  ;;  %v5264_v38 = vmax.f32 %v7480_v42, 0.0  ;;  %v5497_v42 = vld [vmem:[#allocation9] sm:$0x3]  ;;  %v9229_v14 = vsub.s32 1, %v9211_v41 }
 0x3ff   :  { %v5271_v1 = vmax.f32 %v7481_v24, 0.0  ;;  %v5502_v24 = vrot.slane %v5497_v42, %v9228_v10 }
 0x400   :  { %v5272_v44 = vmax.f32 %v7482_v40, 0.0  ;;  %v6429_v49 = vpop.f32.mrb[128].mxu0  ;;  %v5506_v40 = vrot.slane %v5497_v42, %v9229_v14 }
 0x401   :  { %v5351_v60 = vpack.c.bf16 %v5271_v1, %v5263_v25  ;;  %v6431_v37 = vpop.f32.mrb[129].mxu0 }
 0x402   :  { %v5352_v29 = vpack.c.bf16 %v5272_v44, %v5264_v38  ;;  %v5158_v8 = vpop.f32.mrb[88].mxu1  ;;  %v6433_v35 = vpop.f32.mrb[130].mxu0 }
 0x403   :  { %v7483_v63 = vadd.f32 %v5158_v8, %v8976_v30  ;;  %v5160_v5 = vpop.f32.mrb[89].mxu1  ;;  %v6435_v13 = vpop.f32.mrb[131].mxu0 }
 0x404   :  { %v7484_v55 = vadd.f32 %v5160_v5, %v8978_v36  ;;  %v5162_v54 = vpop.f32.mrb[90].mxu1  ;;  %6570 = vmatprep.mubr.bf16.mxu0 %v5352_v29 }
 0x405   :  { %v7485_v2 = vadd.f32 %v5162_v54, %v8976_v30  ;;  %v5164_v57 = vpop.f32.mrb[91].mxu1  ;;  %6571 = vmatmul.mubr.bf16.gmra.mrb[168].mxu0 %v5351_v60  ;;  %v5279_v0 = vmax.f32 %v7483_v63, 0.0 }
 0x406   :  { %v7486_v23 = vadd.f32 %v5164_v57, %v8978_v36  ;;  %v5280_v3 = vmax.f32 %v7484_v55, 0.0 }
 0x407   :  { %v5287_v59 = vmax.f32 %v7485_v2, 0.0 }
 0x408   :  { %v5288_v18 = vmax.f32 %v7486_v23, 0.0  ;;  %v6439_v33 = vpop.f32.mrb[132].mxu0 }
 0x409   :  { %v5359_v6 = vpack.c.bf16 %v5287_v59, %v5279_v0  ;;  %v6441_v51 = vpop.f32.mrb[133].mxu0 }
 0x40a   :  { %v5360_v50 = vpack.c.bf16 %v5288_v18, %v5280_v3  ;;  %v5168_v12 = vpop.f32.mrb[92].mxu1  ;;  %v6443_v58 = vpop.f32.mrb[134].mxu0 }
 0x40b   :  { %v7487_v7 = vadd.f32 %v5168_v12, %v8976_v30  ;;  %v5170_v32 = vpop.f32.mrb[93].mxu1  ;;  %v6445_v48 = vpop.f32.mrb[135].mxu0 }
 0x40c   :  { %v7488_v39 = vadd.f32 %v5170_v32, %v8978_v36  ;;  %v5172_v43 = vpop.f32.mrb[94].mxu1  ;;  %6580 = vmatprep.mubr.bf16.mxu0 %v5360_v50 }
 0x40d   :  { %v7489_v22 = vadd.f32 %v5172_v43, %v8976_v30  ;;  %v5174_v53 = vpop.f32.mrb[95].mxu1  ;;  %6581 = vmatmul.mubr.bf16.gmra.mrb[172].mxu0 %v5359_v6  ;;  %v5295_v27 = vmax.f32 %v7487_v7, 0.0 }
 0x40e   :  { %v7490_v56 = vadd.f32 %v5174_v53, %v8978_v36  ;;  %v5296_v34 = vmax.f32 %v7488_v39, 0.0 }
 0x40f   :  { %v5303_v26 = vmax.f32 %v7489_v22, 0.0 }
 0x410   :  { %v5304_v15 = vmax.f32 %v7490_v56, 0.0  ;;  %v6449_v11 = vpop.f32.mrb[136].mxu0 }
 0x411   :  { %v5367_v17 = vpack.c.bf16 %v5303_v26, %v5295_v27  ;;  %v6451_v21 = vpop.f32.mrb[137].mxu0 }
 0x412   :  { %v5368_v61 = vpack.c.bf16 %v5304_v15, %v5296_v34  ;;  %v6453_v19 = vpop.f32.mrb[138].mxu0 }
 0x413   :  { %v6455_v47 = vpop.f32.mrb[139].mxu0 }
 0x414   :  { %6590 = vmatprep.mubr.bf16.mxu0 %v5368_v61 }
 0x415   :  { %6591 = vmatmul.mubr.bf16.gmra.mrb[176].mxu0 %v5367_v17 }
 0x418   :  { %v6459_v20 = vpop.f32.mrb[140].mxu0 }
 0x419   :  { %v6461_v46 = vpop.f32.mrb[141].mxu0 }
 0x41a   :  { %v6463_v28 = vpop.f32.mrb[142].mxu0 }
 0x41b   :  { %v6465_v30 = vpop.f32.mrb[143].mxu0 }
 0x420   :  { %v6469_v9 = vpop.f32.mrb[144].mxu0 }
 0x421   :  { %v6471_v16 = vpop.f32.mrb[145].mxu0 }
 0x422   :  { %v6473_v62 = vpop.f32.mrb[146].mxu0 }
 0x423   :  { %v6475_v36 = vpop.f32.mrb[147].mxu0 }
 0x428   :  { %v6479_v31 = vpop.f32.mrb[148].mxu0 }
 0x429   :  { %v6481_v45 = vpop.f32.mrb[149].mxu0 }
 0x42a   :  { %v6483_v4 = vpop.f32.mrb[150].mxu0 }
 0x42b   :  { %v6485_v52 = vpop.f32.mrb[151].mxu0 }
 0x4b0   :  { %v6522_v25 = vpop.f32.mrb[64].mxu0 }
 0x4b1   :  { %v7491_v1 = vadd.f32 %v6522_v25, %v5502_v24  ;;  %v6524_v38 = vpop.f32.mrb[65].mxu0 }
 0x4b2   :  { %v7492_v44 = vadd.f32 %v6524_v38, %v5506_v40  ;;  %v6526_v49 = vpop.f32.mrb[66].mxu0 }
 0x4b3   :  { %6648 = vst [vmem:[%s9027_s5] sm:$0xff] %v7491_v1  ;;  %v6528_v60 = vpop.f32.mrb[67].mxu0 }
 0x4b4   :  { %6650 = vst [vmem:[%s9027_s5 + $0x8] sm:$0xff] %v7492_v44 }
 0x4b8   :  { %v6532_v37 = vpop.f32.mrb[152].mxu0 }
 0x4b9   :  { %v6534_v29 = vpop.f32.mrb[153].mxu0 }
 0x4ba   :  { %v6536_v8 = vpop.f32.mrb[154].mxu0 }
 0x4bb   :  { %v6538_v35 = vpop.f32.mrb[155].mxu0 }
 0x4c0   :  { %v6542_v41 = vpop.f32.mrb[156].mxu0 }
 0x4c1   :  { %v6544_v63 = vpop.f32.mrb[157].mxu0 }
 0x4c2   :  { %v6546_v5 = vpop.f32.mrb[158].mxu0 }
 0x4c3   :  { %v6548_v13 = vpop.f32.mrb[159].mxu0 }
 0x4c8   :  { %v6552_v55 = vpop.f32.mrb[160].mxu0 }
 0x4c9   :  { %v6554_v54 = vpop.f32.mrb[161].mxu0 }
 0x4ca   :  { %v6556_v2 = vpop.f32.mrb[162].mxu0 }
 0x4cb   :  { %v6558_v57 = vpop.f32.mrb[163].mxu0 }
 0x4d0   :  { %v6562_v23 = vpop.f32.mrb[164].mxu0 }
 0x4d1   :  { %v6564_v0 = vpop.f32.mrb[165].mxu0 }
 0x4d2   :  { %v6566_v59 = vpop.f32.mrb[166].mxu0 }
 0x4d3   :  { %v6568_v3 = vpop.f32.mrb[167].mxu0 }
 0x4d8   :  { %v6572_v18 = vpop.f32.mrb[168].mxu0 }
 0x4d9   :  { %v6574_v33 = vpop.f32.mrb[169].mxu0 }
 0x4da   :  { %v6576_v6 = vpop.f32.mrb[170].mxu0 }
 0x4db   :  { %v6578_v51 = vpop.f32.mrb[171].mxu0 }
 0x4e0   :  { %v6582_v50 = vpop.f32.mrb[172].mxu0 }
 0x4e1   :  { %v6584_v12 = vpop.f32.mrb[173].mxu0 }
 0x4e2   :  { %v6586_v58 = vpop.f32.mrb[174].mxu0 }
 0x4e3   :  { %v6588_v7 = vpop.f32.mrb[175].mxu0 }
 0x4e8   :  { %v6592_v32 = vpop.f32.mrb[176].mxu0 }
 0x4e9   :  { %v6594_v48 = vpop.f32.mrb[177].mxu0 }
 0x4ea   :  { %v6596_v39 = vpop.f32.mrb[178].mxu0 }
 0x4eb   :  { %v6598_v43 = vpop.f32.mrb[179].mxu0 }
 0x4ec   :  { %6656 = vsyncpa [#allocation3], 1 }
 0x4ed   :  { %6657 = vsyncpa [#allocation5], 1 }
 0x4ee   :  { %6658 = vsyncpa [#allocation8], 1 }

</bundles_post_ra>
